<compile_context>
chip_gen: v7x
topology: tpu7x:2x2x1
jax: 0.10.0
libtpu: 0.0.40
codegen_flags: <defaults>
</compile_context>

<pallas_src>
import math

import jax
import jax.numpy as jnp
import numpy as np
from jax import lax
from jax.experimental import pallas as pl
from jax.experimental.pallas import tpu as pltpu

# ---- Module __init__ parameters (deterministic, in-script) -------------------
SCORE_THRESH = 0.2
NMS_THRESH = 0.5
BBOX_REG_WEIGHTS = (10.0, 10.0, 5.0, 5.0)
NUM_BOXES_PER_IMG = 10
BBOX_XFORM_CLIP = math.log(1000.0 / 16.0)   # torchvision BoxCoder clamp
MIN_BOX_SIZE = 0.01                          # remove_small_boxes(min_size=0.01)

# Pre-NMS top-k (torchvision-style) bounds NMS compute & VMEM; exact when #valid <= K.
# NOTE(v5e): a 128 value would fit a single 128-wide MXU tile per iteration, but it is an
# accuracy-affecting knob, so it stays at 256 for all generations.
PRE_NMS_TOPK = 256
NMS_UNROLL = 3            # fixed-point matmuls per scalar convergence check in kernel B

LANE = 128
MAX_SUBLANE_TILE = 128    # 128 sublane-rows * 128 lanes = 16384 anchors per decode tile (8192-16384)
VMEM_LIMIT_A = 8 * 1024 * 1024   # realistic footprint (+ headroom); far below v7x's 32 MiB default
VMEM_LIMIT_B = 8 * 1024 * 1024

INV_WX, INV_WY, INV_WW, INV_WH = tuple(1.0 / w for w in BBOX_REG_WEIGHTS)

# packed slab rows (kernel A output): 0..3 = x1,y1,x2,y2 ; 4 = score ; 5 = label ; 6 = valid ; 7 = pad


def _round_up(x, m):
    return ((x + m - 1) // m) * m


def _plan_anchor_tiling(n):
    """Pad the anchor axis and pick a sublane tile.

    Returns (NP, SB): NP = padded anchor count (multiple of SB*128), SB = sublane rows per tile.
    The kernel then works on dense (SB, 128) slabs.
    """
    n128 = _round_up(_round_up(n, LANE) // LANE, 8)        # sublane rows, multiple of 8
    if n128 <= MAX_SUBLANE_TILE:
        return n128 * LANE, n128                           # single tile
    n128 = _round_up(n128, 64)                             # pad to a multiple of 8192 anchors
    for sb in (MAX_SUBLANE_TILE, 64):                      # 16384 or 8192 anchors per tile
        if n128 % sb == 0:
            return n128 * LANE, sb
    return n128 * LANE, 64                                 # unreachable (n128 is a multiple of 64)


# =============================================================================
# Kernel A: box decode + softmax finalization (1/sum_exp) + pre-NMS validity
#           -> one dense (8, SB, 128) packed slab per (image, anchor-tile).
# All operands are dense (SB, 128) vregs: anchors span sublanes AND lanes.
# =============================================================================
def decode_pack_kernel(deltas_ref, anchors_ref, sumexp_ref, labels_ref, packed_ref):
    ax1 = anchors_ref[0, 0]        # (SB, 128) dense slabs
    ay1 = anchors_ref[0, 1]
    ax2 = anchors_ref[0, 2]
    ay2 = anchors_ref[0, 3]
    widths = ax2 - ax1
    heights = ay2 - ay1
    ctr_x = ax1 + 0.5 * widths
    ctr_y = ay1 + 0.5 * heights

    dx = deltas_ref[0, 0] * INV_WX
    dy = deltas_ref[0, 1] * INV_WY
    dw = jnp.minimum(deltas_ref[0, 2] * INV_WW, BBOX_XFORM_CLIP)
    dh = jnp.minimum(deltas_ref[0, 3] * INV_WH, BBOX_XFORM_CLIP)

    pcx = dx * widths + ctr_x
    pcy = dy * heights + ctr_y
    pw = jnp.exp(dw) * widths
    ph = jnp.exp(dh) * heights

    bx1 = pcx - 0.5 * pw
    by1 = pcy - 0.5 * ph
    bx2 = pcx + 0.5 * pw
    by2 = pcy + 0.5 * ph

    # softmax finalization: top softmax prob = 1 / sum(exp(logits - max)).  Exact reciprocal so the
    # score-threshold decision boundary matches the reference (approx=True would be EUP-free but moves it).
    top_scores = pl.reciprocal(sumexp_ref[0])
    top_labels = labels_ref[0]

    # pre-NMS filter: score threshold AND remove_small_boxes
    valid = ((top_scores > SCORE_THRESH)
             & ((bx2 - bx1) >= MIN_BOX_SIZE)
             & ((by2 - by1) >= MIN_BOX_SIZE))

    # single full-tile store: unmasked, lane- and sublane-dense (no vst.msk, no RMW of the tile).
    packed_ref[0] = jnp.stack(
        [bx1, by1, bx2, by2,
         top_scores, top_labels,
         jnp.where(valid, 1.0, 0.0),
         jnp.zeros_like(top_scores)], axis=0)


def decode_and_pack(deltas4, anchors4, sumexp2, labels2, sb):
    B, _, n128, _ = deltas4.shape
    return pl.pallas_call(
        decode_pack_kernel,
        out_shape=jax.ShapeDtypeStruct((B, 8, n128, LANE), jnp.float32),
        grid=(B, n128 // sb),
        in_specs=[
            pl.BlockSpec((1, 4, sb, LANE), lambda b, n: (b, 0, n, 0)),
            pl.BlockSpec((1, 4, sb, LANE), lambda b, n: (b, 0, n, 0)),
            pl.BlockSpec((1, sb, LANE), lambda b, n: (b, n, 0)),
            pl.BlockSpec((1, sb, LANE), lambda b, n: (b, n, 0)),
        ],
        out_specs=pl.BlockSpec((1, 8, sb, LANE), lambda b, n: (b, 0, n, 0)),
        compiler_params=pltpu.CompilerParams(
            dimension_semantics=("parallel", "parallel"),
            vmem_limit_bytes=VMEM_LIMIT_A),
    )(deltas4, anchors4, sumexp2, labels2)


# =============================================================================
# Kernel B: greedy NMS on the score-sorted top-K slab, with the batched_nms
# class-offset trick fused in-kernel.  keep is the unique fixed point of
#   keep = valid & !(keep @ sup)   (sup strictly upper-triangular in score order);
# the while_loop runs NMS_UNROLL matmuls per convergence check, capped at K steps.
# =============================================================================
def nms_kernel(sel_ref, keep_ref):
    p = sel_ref[0]                    # (8, K): rows 0-3 boxes, 4 score, 5 label, 6 valid, 7 pad
    pt = jnp.transpose(p)             # (K, 8)  one XLU transpose for the column layout
    valid_r = jnp.where(p[6:7] > 0.5, 1.0, 0.0)                    # (1, K) exact 0/1

    # torchvision batched_nms class-offset trick, fused in-kernel (data already in VMEM).
    masked = jnp.where(p[6:7] > 0.5, p[0:4], -1e30)                # (4, K)
    mc = jnp.max(jnp.max(masked, axis=1, keepdims=True), axis=0, keepdims=True)   # (1, 1)
    mc = jnp.where(mc > -1e29, mc, 0.0) + 1.0
    off_r = p[5:6] * mc                                            # (1, K)
    off_c = pt[:, 5:6] * mc                                        # (K, 1)

    x1r, y1r = p[0:1] + off_r, p[1:2] + off_r                      # (1, K)
    x2r, y2r = p[2:3] + off_r, p[3:4] + off_r
    x1c, y1c = pt[:, 0:1] + off_c, pt[:, 1:2] + off_c              # (K, 1)
    x2c, y2c = pt[:, 2:3] + off_c, pt[:, 3:4] + off_c

    area_r = (x2r - x1r) * (y2r - y1r)                             # (1, K)
    area_c = (x2c - x1c) * (y2c - y1c)                             # (K, 1)
    iw = jnp.maximum(jnp.minimum(x2c, x2r) - jnp.maximum(x1c, x1r), 0.0)
    ih = jnp.maximum(jnp.minimum(y2c, y2r) - jnp.maximum(y1c, y1r), 0.0)
    inter = iw * ih                                                # only large f32 (K,K) kept live

    k = inter.shape[0]
    ri = lax.broadcasted_iota(jnp.int32, (k, k), 0)
    ci = lax.broadcasted_iota(jnp.int32, (k, k), 1)
    # division-free: iou > t  <=>  inter > t * union ; union folded inline; strictly upper-triangular.
    sup = jnp.where((inter > NMS_THRESH * (area_c + area_r - inter)) & (ri < ci),
                    1.0, 0.0).astype(jnp.bfloat16)

    # TODO(synk): on v6e/v7x, hold the loop-invariant `sup` in MXU weight registers across iterations
    #             via pltpu.matmul_push_rhs / matmul_acc_lhs instead of re-pushing it in jnp.dot.
    def cond(carry):
        it, _, changed = carry
        return jnp.logical_and(it < k, changed > 0)

    def body(carry):
        it, keep, _ = carry
        new = keep
        for _ in range(NMS_UNROLL):                                # unrolled fixed-point steps
            hit = jnp.dot(new.astype(jnp.bfloat16), sup,
                          preferred_element_type=jnp.float32)      # (1, K), f32 accumulation
            new = jnp.where(hit < 0.5, valid_r, 0.0)
        changed = jnp.any(new != keep).astype(jnp.int32)           # one scalar check per group
        return it + NMS_UNROLL, new, changed

    _, keep, _ = lax.while_loop(cond, body, (jnp.int32(0), valid_r, jnp.int32(1)))
    keep_ref[0] = keep


def nms_keep(sel):
    B, _, K = sel.shape
    return pl.pallas_call(
        nms_kernel,
        out_shape=jax.ShapeDtypeStruct((B, 1, K), jnp.float32),
        grid=(B,),
        in_specs=[pl.BlockSpec((1, 8, K), lambda b: (b, 0, 0))],
        out_specs=pl.BlockSpec((1, 1, K), lambda b: (b, 0, 0)),
        compiler_params=pltpu.CompilerParams(
            dimension_semantics=("parallel",),
            vmem_limit_bytes=VMEM_LIMIT_B),
    )(sel)


# =============================================================================
# Full forward
# =============================================================================
def _decode_pack(box_deltas, anchors, logits):
    """Class reductions on NATIVE (B, N, C) logits (single fused XLA read, no HBM transpose of
    logits), then the Pallas decode/score/pack kernel on dense (sublane x lane) anchor tiles.
    Returns the packed per-anchor slab (B, 8, NP) with NP = padded anchor count."""
    B, N, _ = box_deltas.shape
    NP, SB = _plan_anchor_tiling(N)
    n128 = NP // LANE
    pad = NP - N

    # lane-axis class reductions in native layout: max, sum-exp, first-argmax (like torch.max).
    m = jnp.max(logits, axis=-1)
    sum_e = jnp.sum(jnp.exp(logits - m[..., None]), axis=-1)          # top softmax prob = 1/sum_e
    top_labels = jnp.argmax(logits, axis=-1).astype(jnp.float32)

    def to_channel_major(x):   # (B, N, 4) -> (B, 4, n128, 128); cheap (only 4 channels)
        x = jnp.transpose(x, (0, 2, 1))
        x = jnp.pad(x, ((0, 0), (0, 0), (0, pad)))
        return x.reshape(B, 4, n128, LANE)

    deltas4 = to_channel_major(box_deltas)
    anchors4 = to_channel_major(anchors)
    # pad sum_e with a huge value -> padded anchors get score ~ 0 and can never pass the threshold.
    sum_e = jnp.pad(sum_e, ((0, 0), (0, pad)), constant_values=1e30).reshape(B, n128, LANE)
    top_labels = jnp.pad(top_labels, ((0, 0), (0, pad))).reshape(B, n128, LANE)

    packed4 = decode_and_pack(deltas4, anchors4, sum_e, top_labels, SB)   # (B, 8, n128, 128)
    return packed4.reshape(B, 8, NP)                                       # free reshape


@jax.jit
def detection_nms_postprocess(box_deltas, anchors, logits):
    # box_deltas, anchors: (B, N, 4) float32 ; logits: (B, N, C) float32
    packed = _decode_pack(box_deltas, anchors, logits)                 # (B, 8, NP)
    NP = packed.shape[-1]
    scores = packed[:, 4, :]
    valid = packed[:, 6, :]

    # pre-NMS top-k among valid boxes (descending score, index-stable ties) -> K boxes
    K = min(PRE_NMS_TOPK, NP)
    masked_scores = jnp.where(valid > 0.5, scores, -1.0)
    _, topk_idx = lax.top_k(masked_scores, K)
    sel = jnp.take_along_axis(packed, topk_idx[:, None, :], axis=2)    # (B, 8, K), score-sorted

    keep = nms_keep(sel)[:, 0, :] > 0.5                                # (B, K), in score order

    s_boxes_t = sel[:, 0:4, :]
    s_scores = sel[:, 4, :]
    s_labels = sel[:, 5, :]

    # keep[:num_boxes_per_img] -> first Kc kept (in score order), padded.
    Kc = NUM_BOXES_PER_IMG
    sel2 = jnp.argsort(jnp.where(keep, 0, 1), axis=-1, stable=True)[:, :Kc]
    out_valid = jnp.take_along_axis(keep, sel2, axis=-1)                               # (B, Kc)
    out_boxes = jnp.transpose(jnp.take_along_axis(s_boxes_t, sel2[:, None, :], axis=2),
                              (0, 2, 1))                                               # (B, Kc, 4)
    out_scores = jnp.take_along_axis(s_scores, sel2, axis=-1)
    out_labels = jnp.take_along_axis(s_labels, sel2, axis=-1).astype(jnp.int32)
    out_boxes = jnp.where(out_valid[..., None], out_boxes, 0.0)
    out_scores = jnp.where(out_valid, out_scores, 0.0)
    out_labels = jnp.where(out_valid, out_labels, 0)
    num_det = jnp.minimum(jnp.sum(keep.astype(jnp.int32), axis=-1), Kc)
    return out_boxes, out_scores, out_labels, num_det


# ---- pure references (sanity checks) ----------------------------------------
def _decode_ref(deltas, anchors):
    wx, wy, ww, wh = BBOX_REG_WEIGHTS
    widths = anchors[..., 2] - anchors[..., 0]
    heights = anchors[..., 3] - anchors[..., 1]
    ctr_x = anchors[..., 0] + 0.5 * widths
    ctr_y = anchors[..., 1] + 0.5 * heights
    dx = deltas[..., 0] / wx
    dy = deltas[..., 1] / wy
    dw = jnp.minimum(deltas[..., 2] / ww, BBOX_XFORM_CLIP)
    dh = jnp.minimum(deltas[..., 3] / wh, BBOX_XFORM_CLIP)
    pcx = dx * widths + ctr_x
    pcy = dy * heights + ctr_y
    pw = jnp.exp(dw) * widths
    ph = jnp.exp(dh) * heights
    return jnp.stack([pcx - 0.5 * pw, pcy - 0.5 * ph, pcx + 0.5 * pw, pcy + 0.5 * ph], axis=-1)


def _reference_postprocess(packed_np, pre_nms_topk=PRE_NMS_TOPK):
    """Numpy re-implementation of top-k + offset trick + greedy NMS + truncation, driven by the
    Pallas decode kernel's packed output (so the NMS comparison is apples-to-apples)."""
    B, _, N = packed_np.shape
    K = min(pre_nms_topk, N)
    Kc = NUM_BOXES_PER_IMG
    out_boxes = np.zeros((B, Kc, 4), np.float32)
    out_scores = np.zeros((B, Kc), np.float32)
    out_labels = np.zeros((B, Kc), np.int32)
    num_det = np.zeros((B,), np.int32)
    for b in range(B):
        boxes = packed_np[b, 0:4].T                       # (N, 4)
        scores = packed_np[b, 4]
        labels = packed_np[b, 5]
        valid = packed_np[b, 6] > 0.5
        masked = np.where(valid, scores, np.float32(-1.0)).astype(np.float32)
        order = np.argsort(-masked, kind="stable")[:K]
        b_s, s_s, l_s, v_s = boxes[order], scores[order], labels[order], valid[order]
        max_coord = np.float32(b_s[v_s].max()) if v_s.any() else np.float32(0.0)
        off = (l_s * np.float32(max_coord + 1.0)).astype(np.float32)
        bo = (b_s + off[:, None]).astype(np.float32)
        keep = np.zeros(K, bool)
        suppressed = np.zeros(K, bool)
        for j in range(K):
            if (not v_s[j]) or suppressed[j]:
                continue
            keep[j] = True
            if j + 1 < K:
                x1 = np.maximum(bo[j, 0], bo[j + 1:, 0])
                y1 = np.maximum(bo[j, 1], bo[j + 1:, 1])
                x2 = np.minimum(bo[j, 2], bo[j + 1:, 2])
                y2 = np.minimum(bo[j, 3], bo[j + 1:, 3])
                inter = np.maximum(x2 - x1, 0.0) * np.maximum(y2 - y1, 0.0)
                area_j = (bo[j, 2] - bo[j, 0]) * (bo[j, 3] - bo[j, 1])
                area_r = (bo[j + 1:, 2] - bo[j + 1:, 0]) * (bo[j + 1:, 3] - bo[j + 1:, 1])
                union = area_j + area_r - inter
                suppressed[j + 1:] |= inter > np.float32(NMS_THRESH) * union
        kept_idx = np.nonzero(keep)[0][:Kc]
        n = len(kept_idx)
        num_det[b] = n
        out_boxes[b, :n] = b_s[kept_idx]
        out_scores[b, :n] = s_s[kept_idx]
        out_labels[b, :n] = l_s[kept_idx].astype(np.int32)
    return out_boxes, out_scores, out_labels, num_det


if __name__ == "__main__":
    key = jax.random.PRNGKey(0)
    B, N, C = 2, 128, 8   # batch, anchors per image, classes
    k1, k2, k3, k4, k5, k6 = jax.random.split(key, 6)

    cx = jax.random.uniform(k1, (B, N), minval=0.0, maxval=16.0)
    cy = jax.random.uniform(k2, (B, N), minval=0.0, maxval=16.0)
    w = jax.random.uniform(k3, (B, N), minval=1.0, maxval=4.0)
    h = jax.random.uniform(k4, (B, N), minval=1.0, maxval=4.0)
    anchors = jnp.stack([cx - w / 2, cy - h / 2, cx + w / 2, cy + h / 2], axis=-1).astype(jnp.float32)

    box_deltas = (0.5 * jax.random.normal(k5, (B, N, 4))).astype(jnp.float32)
    logits = (2.0 * jax.random.normal(k6, (B, N, C))).astype(jnp.float32)

    out_boxes, out_scores, out_labels, num_det = detection_nms_postprocess(box_deltas, anchors, logits)
    jax.block_until_ready((out_boxes, out_scores, out_labels, num_det))

    # --- check the Pallas decode/score kernel against a pure-JAX reference ---
    packed = jax.jit(_decode_pack)(box_deltas, anchors, logits)          # (B, 8, NP)
    boxes_k = jnp.transpose(packed[:, 0:4, :N], (0, 2, 1))
    ref_boxes = _decode_ref(box_deltas, anchors)
    ref_scores = jnp.max(jax.nn.softmax(logits, axis=-1), axis=-1)
    ref_labels = jnp.argmax(logits, axis=-1).astype(jnp.int32)
    assert jnp.allclose(boxes_k, ref_boxes, atol=1e-2, rtol=1e-3)
    assert jnp.allclose(packed[:, 4, :N], ref_scores, atol=1e-4)
    assert bool(jnp.all(packed[:, 5, :N].astype(jnp.int32) == ref_labels))

    # --- check the full pipeline (top-k + offset trick + greedy NMS + truncation) ---
    rb, rs, rl, rn = _reference_postprocess(np.asarray(packed))
    assert np.array_equal(np.asarray(num_det), rn)
    assert np.array_equal(np.asarray(out_labels), rl)
    assert np.allclose(np.asarray(out_scores), rs, atol=1e-5)
    assert np.allclose(np.asarray(out_boxes), rb, atol=1e-4)

    assert out_boxes.shape == (B, NUM_BOXES_PER_IMG, 4)
    assert out_scores.shape == (B, NUM_BOXES_PER_IMG)
    assert out_labels.shape == (B, NUM_BOXES_PER_IMG)
    assert num_det.shape == (B,)
    assert bool(jnp.all(jnp.isfinite(out_boxes)))
    print("KERNEL_OK")
</pallas_src>

<mosaic_0001>
module attributes {stable_mosaic.version = 11 : i64} {
  func.func @decode_pack_kernel(%arg0: i32, %arg1: i32, %arg2: memref<1x4x8x128xf32, #tpu.memory_space<vmem>>, %arg3: memref<1x4x8x128xf32, #tpu.memory_space<vmem>>, %arg4: memref<1x8x128xf32, #tpu.memory_space<vmem>>, %arg5: memref<1x8x128xf32, #tpu.memory_space<vmem>>, %arg6: memref<1x8x8x128xf32, #tpu.memory_space<vmem>>) attributes {dimension_semantics = [#tpu.dimension_semantics<parallel>, #tpu.dimension_semantics<parallel>], iteration_bounds = array<i64: 2, 1>, scalar_prefetch = 0 : i64, scratch_operands = 0 : i64, tpu.core_type = #tpu.core_type<tc>, window_params = [{transform_indices = @transform_0, window_bounds = array<i64: 1, 4, 8, 128>}, {transform_indices = @transform_1, window_bounds = array<i64: 1, 4, 8, 128>}, {transform_indices = @transform_2, window_bounds = array<i64: 1, 8, 128>}, {transform_indices = @transform_3, window_bounds = array<i64: 1, 8, 128>}, {transform_indices = @transform_4, window_bounds = array<i64: 1, 8, 8, 128>}]} {
    %c0 = arith.constant 0 : index
    %c0_0 = arith.constant 0 : index
    %c0_1 = arith.constant 0 : index
    %c0_2 = arith.constant 0 : index
    %0 = vector.load %arg3[%c0, %c0_0, %c0_1, %c0_2] : memref<1x4x8x128xf32, #tpu.memory_space<vmem>>, vector<1x1x8x128xf32>
    %1 = vector.shape_cast %0 : vector<1x1x8x128xf32> to vector<8x128xf32>
    %c0_3 = arith.constant 0 : index
    %c1 = arith.constant 1 : index
    %c0_4 = arith.constant 0 : index
    %c0_5 = arith.constant 0 : index
    %2 = vector.load %arg3[%c0_3, %c1, %c0_4, %c0_5] : memref<1x4x8x128xf32, #tpu.memory_space<vmem>>, vector<1x1x8x128xf32>
    %3 = vector.shape_cast %2 : vector<1x1x8x128xf32> to vector<8x128xf32>
    %c0_6 = arith.constant 0 : index
    %c2 = arith.constant 2 : index
    %c0_7 = arith.constant 0 : index
    %c0_8 = arith.constant 0 : index
    %4 = vector.load %arg3[%c0_6, %c2, %c0_7, %c0_8] : memref<1x4x8x128xf32, #tpu.memory_space<vmem>>, vector<1x1x8x128xf32>
    %5 = vector.shape_cast %4 : vector<1x1x8x128xf32> to vector<8x128xf32>
    %c0_9 = arith.constant 0 : index
    %c3 = arith.constant 3 : index
    %c0_10 = arith.constant 0 : index
    %c0_11 = arith.constant 0 : index
    %6 = vector.load %arg3[%c0_9, %c3, %c0_10, %c0_11] : memref<1x4x8x128xf32, #tpu.memory_space<vmem>>, vector<1x1x8x128xf32>
    %7 = vector.shape_cast %6 : vector<1x1x8x128xf32> to vector<8x128xf32>
    %8 = arith.subf %5, %1 : vector<8x128xf32>
    %9 = arith.subf %7, %3 : vector<8x128xf32>
    %cst = arith.constant 5.000000e-01 : f32
    %10 = vector.broadcast %cst : f32 to vector<8x128xf32>
    %11 = arith.mulf %10, %8 : vector<8x128xf32>
    %12 = arith.addf %1, %11 : vector<8x128xf32>
    %cst_12 = arith.constant 5.000000e-01 : f32
    %13 = vector.broadcast %cst_12 : f32 to vector<8x128xf32>
    %14 = arith.mulf %13, %9 : vector<8x128xf32>
    %15 = arith.addf %3, %14 : vector<8x128xf32>
    %c0_13 = arith.constant 0 : index
    %c0_14 = arith.constant 0 : index
    %c0_15 = arith.constant 0 : index
    %c0_16 = arith.constant 0 : index
    %16 = vector.load %arg2[%c0_13, %c0_14, %c0_15, %c0_16] : memref<1x4x8x128xf32, #tpu.memory_space<vmem>>, vector<1x1x8x128xf32>
    %17 = vector.shape_cast %16 : vector<1x1x8x128xf32> to vector<8x128xf32>
    %cst_17 = arith.constant 1.000000e-01 : f32
    %18 = vector.broadcast %cst_17 : f32 to vector<8x128xf32>
    %19 = arith.mulf %17, %18 : vector<8x128xf32>
    %c0_18 = arith.constant 0 : index
    %c1_19 = arith.constant 1 : index
    %c0_20 = arith.constant 0 : index
    %c0_21 = arith.constant 0 : index
    %20 = vector.load %arg2[%c0_18, %c1_19, %c0_20, %c0_21] : memref<1x4x8x128xf32, #tpu.memory_space<vmem>>, vector<1x1x8x128xf32>
    %21 = vector.shape_cast %20 : vector<1x1x8x128xf32> to vector<8x128xf32>
    %cst_22 = arith.constant 1.000000e-01 : f32
    %22 = vector.broadcast %cst_22 : f32 to vector<8x128xf32>
    %23 = arith.mulf %21, %22 : vector<8x128xf32>
    %c0_23 = arith.constant 0 : index
    %c2_24 = arith.constant 2 : index
    %c0_25 = arith.constant 0 : index
    %c0_26 = arith.constant 0 : index
    %24 = vector.load %arg2[%c0_23, %c2_24, %c0_25, %c0_26] : memref<1x4x8x128xf32, #tpu.memory_space<vmem>>, vector<1x1x8x128xf32>
    %25 = vector.shape_cast %24 : vector<1x1x8x128xf32> to vector<8x128xf32>
    %cst_27 = arith.constant 2.000000e-01 : f32
    %26 = vector.broadcast %cst_27 : f32 to vector<8x128xf32>
    %27 = arith.mulf %25, %26 : vector<8x128xf32>
    %cst_28 = arith.constant 4.13516665 : f32
    %28 = vector.broadcast %cst_28 : f32 to vector<8x128xf32>
    %29 = arith.minimumf %27, %28 : vector<8x128xf32>
    %c0_29 = arith.constant 0 : index
    %c3_30 = arith.constant 3 : index
    %c0_31 = arith.constant 0 : index
    %c0_32 = arith.constant 0 : index
    %30 = vector.load %arg2[%c0_29, %c3_30, %c0_31, %c0_32] : memref<1x4x8x128xf32, #tpu.memory_space<vmem>>, vector<1x1x8x128xf32>
    %31 = vector.shape_cast %30 : vector<1x1x8x128xf32> to vector<8x128xf32>
    %cst_33 = arith.constant 2.000000e-01 : f32
    %32 = vector.broadcast %cst_33 : f32 to vector<8x128xf32>
    %33 = arith.mulf %31, %32 : vector<8x128xf32>
    %cst_34 = arith.constant 4.13516665 : f32
    %34 = vector.broadcast %cst_34 : f32 to vector<8x128xf32>
    %35 = arith.minimumf %33, %34 : vector<8x128xf32>
    %36 = arith.mulf %19, %8 : vector<8x128xf32>
    %37 = arith.addf %36, %12 : vector<8x128xf32>
    %38 = arith.mulf %23, %9 : vector<8x128xf32>
    %39 = arith.addf %38, %15 : vector<8x128xf32>
    %40 = math.exp %29 : vector<8x128xf32>
    %41 = arith.mulf %40, %8 : vector<8x128xf32>
    %42 = math.exp %35 : vector<8x128xf32>
    %43 = arith.mulf %42, %9 : vector<8x128xf32>
    %cst_35 = arith.constant 5.000000e-01 : f32
    %44 = vector.broadcast %cst_35 : f32 to vector<8x128xf32>
    %45 = arith.mulf %44, %41 : vector<8x128xf32>
    %46 = arith.subf %37, %45 : vector<8x128xf32>
    %cst_36 = arith.constant 5.000000e-01 : f32
    %47 = vector.broadcast %cst_36 : f32 to vector<8x128xf32>
    %48 = arith.mulf %47, %43 : vector<8x128xf32>
    %49 = arith.subf %39, %48 : vector<8x128xf32>
    %cst_37 = arith.constant 5.000000e-01 : f32
    %50 = vector.broadcast %cst_37 : f32 to vector<8x128xf32>
    %51 = arith.mulf %50, %41 : vector<8x128xf32>
    %52 = arith.addf %37, %51 : vector<8x128xf32>
    %cst_38 = arith.constant 5.000000e-01 : f32
    %53 = vector.broadcast %cst_38 : f32 to vector<8x128xf32>
    %54 = arith.mulf %53, %43 : vector<8x128xf32>
    %55 = arith.addf %39, %54 : vector<8x128xf32>
    %c0_39 = arith.constant 0 : index
    %c0_40 = arith.constant 0 : index
    %c0_41 = arith.constant 0 : index
    %56 = vector.load %arg4[%c0_39, %c0_40, %c0_41] : memref<1x8x128xf32, #tpu.memory_space<vmem>>, vector<1x8x128xf32>
    %57 = vector.shape_cast %56 : vector<1x8x128xf32> to vector<8x128xf32>
    %58 = tpu.reciprocal %57 : vector<8x128xf32> -> vector<8x128xf32>
    %c0_42 = arith.constant 0 : index
    %c0_43 = arith.constant 0 : index
    %c0_44 = arith.constant 0 : index
    %59 = vector.load %arg5[%c0_42, %c0_43, %c0_44] : memref<1x8x128xf32, #tpu.memory_space<vmem>>, vector<1x8x128xf32>
    %60 = vector.shape_cast %59 : vector<1x8x128xf32> to vector<8x128xf32>
    %cst_45 = arith.constant 2.000000e-01 : f32
    %61 = vector.broadcast %cst_45 : f32 to vector<8x128xf32>
    %62 = arith.cmpf ogt, %58, %61 : vector<8x128xf32>
    %63 = arith.subf %52, %46 : vector<8x128xf32>
    %cst_46 = arith.constant 0.00999999977 : f32
    %64 = vector.broadcast %cst_46 : f32 to vector<8x128xf32>
    %65 = arith.cmpf oge, %63, %64 : vector<8x128xf32>
    %66 = arith.andi %62, %65 : vector<8x128xi1>
    %67 = arith.subf %55, %49 : vector<8x128xf32>
    %cst_47 = arith.constant 0.00999999977 : f32
    %68 = vector.broadcast %cst_47 : f32 to vector<8x128xf32>
    %69 = arith.cmpf oge, %67, %68 : vector<8x128xf32>
    %70 = arith.andi %66, %69 : vector<8x128xi1>
    %cst_48 = arith.constant 1.000000e+00 : f32
    %cst_49 = arith.constant 0.000000e+00 : f32
    %71 = vector.broadcast %cst_48 : f32 to vector<8x128xf32>
    %72 = vector.broadcast %cst_49 : f32 to vector<8x128xf32>
    %73 = arith.select %70, %71, %72 : vector<8x128xi1>, vector<8x128xf32>
    %cst_50 = arith.constant 0.000000e+00 : f32
    %74 = vector.broadcast %cst_50 : f32 to vector<8x128xf32>
    %75 = vector.shape_cast %46 : vector<8x128xf32> to vector<1x8x128xf32>
    %76 = vector.shape_cast %49 : vector<8x128xf32> to vector<1x8x128xf32>
    %77 = vector.shape_cast %52 : vector<8x128xf32> to vector<1x8x128xf32>
    %78 = vector.shape_cast %55 : vector<8x128xf32> to vector<1x8x128xf32>
    %79 = vector.shape_cast %58 : vector<8x128xf32> to vector<1x8x128xf32>
    %80 = vector.shape_cast %60 : vector<8x128xf32> to vector<1x8x128xf32>
    %81 = vector.shape_cast %73 : vector<8x128xf32> to vector<1x8x128xf32>
    %82 = vector.shape_cast %74 : vector<8x128xf32> to vector<1x8x128xf32>
    %83 = tpu.concatenate %75, %76, %77, %78, %79, %80, %81, %82 in 0 : vector<1x8x128xf32>, vector<1x8x128xf32>, vector<1x8x128xf32>, vector<1x8x128xf32>, vector<1x8x128xf32>, vector<1x8x128xf32>, vector<1x8x128xf32>, vector<1x8x128xf32> -> vector<8x8x128xf32>
    %c0_51 = arith.constant 0 : index
    %c0_52 = arith.constant 0 : index
    %c0_53 = arith.constant 0 : index
    %c0_54 = arith.constant 0 : index
    %84 = vector.load %arg6[%c0_51, %c0_52, %c0_53, %c0_54] : memref<1x8x8x128xf32, #tpu.memory_space<vmem>>, vector<1x8x8x128xf32>
    %85 = vector.shape_cast %84 : vector<1x8x8x128xf32> to vector<8x8x128xf32>
    %86 = vector.shape_cast %83 : vector<8x8x128xf32> to vector<1x8x8x128xf32>
    tpu.vector_store %arg6[%c0_51, %c0_52, %c0_53, %c0_54], %86 {strides = array<i32>} : memref<1x8x8x128xf32, #tpu.memory_space<vmem>>, vector<1x8x8x128xf32>,
    return
  }
  func.func @transform_0(%arg0: i32, %arg1: i32) -> (i32, i32, i32, i32) {
    %c0_i32 = arith.constant 0 : i32
    %c0_i32_0 = arith.constant 0 : i32
    %c0_i32_1 = arith.constant 0 : i32
    return %arg0, %c0_i32, %arg1, %c0_i32_0 : i32, i32, i32, i32
  }
  func.func @transform_1(%arg0: i32, %arg1: i32) -> (i32, i32, i32, i32) {
    %c0_i32 = arith.constant 0 : i32
    %c0_i32_0 = arith.constant 0 : i32
    %c0_i32_1 = arith.constant 0 : i32
    return %arg0, %c0_i32, %arg1, %c0_i32_0 : i32, i32, i32, i32
  }
  func.func @transform_2(%arg0: i32, %arg1: i32) -> (i32, i32, i32) {
    %c0_i32 = arith.constant 0 : i32
    %c0_i32_0 = arith.constant 0 : i32
    return %arg0, %arg1, %c0_i32 : i32, i32, i32
  }
  func.func @transform_3(%arg0: i32, %arg1: i32) -> (i32, i32, i32) {
    %c0_i32 = arith.constant 0 : i32
    %c0_i32_0 = arith.constant 0 : i32
    return %arg0, %arg1, %c0_i32 : i32, i32, i32
  }
  func.func @transform_4(%arg0: i32, %arg1: i32) -> (i32, i32, i32, i32) {
    %c0_i32 = arith.constant 0 : i32
    %c0_i32_0 = arith.constant 0 : i32
    %c0_i32_1 = arith.constant 0 : i32
    return %arg0, %c0_i32, %arg1, %c0_i32_0 : i32, i32, i32, i32
  }
}

module attributes {stable_mosaic.version = 11 : i64} {
  func.func @nms_kernel(%arg0: i32, %arg1: memref<1x8x256xf32, #tpu.memory_space<vmem>>, %arg2: memref<1x1x256xf32, #tpu.memory_space<vmem>>) attributes {dimension_semantics = [#tpu.dimension_semantics<parallel>], iteration_bounds = array<i64: 2>, scalar_prefetch = 0 : i64, scratch_operands = 0 : i64, tpu.core_type = #tpu.core_type<tc>, window_params = [{transform_indices = @transform_0, window_bounds = array<i64: 1, 8, 256>}, {transform_indices = @transform_1, window_bounds = array<i64: 1, 1, 256>}]} {
    %c0 = arith.constant 0 : index
    %c0_0 = arith.constant 0 : index
    %c0_1 = arith.constant 0 : index
    %0 = vector.load %arg1[%c0, %c0_0, %c0_1] : memref<1x8x256xf32, #tpu.memory_space<vmem>>, vector<1x8x256xf32>
    %1 = vector.shape_cast %0 : vector<1x8x256xf32> to vector<8x256xf32>
    %2 = tpu.transpose %1, [1, 0] : vector<8x256xf32> -> vector<256x8xf32>
    %3 = vector.extract_strided_slice %1 {offsets = [6, 0], sizes = [1, 256], strides = [1, 1]} : vector<8x256xf32> to vector<1x256xf32>
    %cst = arith.constant 5.000000e-01 : f32
    %4 = vector.broadcast %cst : f32 to vector<1x256xf32>
    %5 = arith.cmpf ogt, %3, %4 : vector<1x256xf32>
    %cst_2 = arith.constant 1.000000e+00 : f32
    %cst_3 = arith.constant 0.000000e+00 : f32
    %6 = vector.broadcast %cst_2 : f32 to vector<1x256xf32>
    %7 = vector.broadcast %cst_3 : f32 to vector<1x256xf32>
    %8 = arith.select %5, %6, %7 : vector<1x256xi1>, vector<1x256xf32>
    %9 = vector.extract_strided_slice %1 {offsets = [6, 0], sizes = [1, 256], strides = [1, 1]} : vector<8x256xf32> to vector<1x256xf32>
    %cst_4 = arith.constant 5.000000e-01 : f32
    %10 = vector.broadcast %cst_4 : f32 to vector<1x256xf32>
    %11 = arith.cmpf ogt, %9, %10 : vector<1x256xf32>
    %12 = vector.extract_strided_slice %1 {offsets = [0, 0], sizes = [4, 256], strides = [1, 1]} : vector<8x256xf32> to vector<4x256xf32>
    %cst_5 = arith.constant -1.000000e+30 : f32
    %13 = vector.shape_cast %11 : vector<1x256xi1> to vector<1x256xi1>
    %14 = vector.broadcast %13 : vector<1x256xi1> to vector<4x256xi1>
    %15 = vector.broadcast %cst_5 : f32 to vector<4x256xf32>
    %16 = arith.select %14, %12, %15 : vector<4x256xi1>, vector<4x256xf32>
    %cst_6 = arith.constant dense<0xFF800000> : vector<4xf32>
    %17 = vector.multi_reduction <maximumf>, %16, %cst_6 [1] : vector<4x256xf32> to vector<4xf32>
    %18 = vector.shape_cast %17 : vector<4xf32> to vector<4x1xf32>
    %cst_7 = arith.constant dense<0xFF800000> : vector<1xf32>
    %19 = vector.multi_reduction <maximumf>, %18, %cst_7 [0] : vector<4x1xf32> to vector<1xf32>
    %20 = vector.shape_cast %19 : vector<1xf32> to vector<1x1xf32>
    %cst_8 = arith.constant -1.000000e+29 : f32
    %21 = vector.broadcast %cst_8 : f32 to vector<1x1xf32>
    %22 = arith.cmpf ogt, %20, %21 : vector<1x1xf32>
    %cst_9 = arith.constant 0.000000e+00 : f32
    %23 = vector.broadcast %cst_9 : f32 to vector<1x1xf32>
    %24 = arith.select %22, %20, %23 : vector<1x1xi1>, vector<1x1xf32>
    %cst_10 = arith.constant 1.000000e+00 : f32
    %25 = vector.broadcast %cst_10 : f32 to vector<1x1xf32>
    %26 = arith.addf %24, %25 : vector<1x1xf32>
    %27 = vector.extract_strided_slice %1 {offsets = [5, 0], sizes = [1, 256], strides = [1, 1]} : vector<8x256xf32> to vector<1x256xf32>
    %28 = vector.broadcast %26 : vector<1x1xf32> to vector<1x256xf32>
    %29 = arith.mulf %27, %28 : vector<1x256xf32>
    %30 = vector.extract_strided_slice %2 {offsets = [0, 5], sizes = [256, 1], strides = [1, 1]} : vector<256x8xf32> to vector<256x1xf32>
    %31 = vector.broadcast %26 : vector<1x1xf32> to vector<256x1xf32>
    %32 = arith.mulf %30, %31 : vector<256x1xf32>
    %33 = vector.extract_strided_slice %1 {offsets = [0, 0], sizes = [1, 256], strides = [1, 1]} : vector<8x256xf32> to vector<1x256xf32>
    %34 = arith.addf %33, %29 : vector<1x256xf32>
    %35 = vector.extract_strided_slice %1 {offsets = [1, 0], sizes = [1, 256], strides = [1, 1]} : vector<8x256xf32> to vector<1x256xf32>
    %36 = arith.addf %35, %29 : vector<1x256xf32>
    %37 = vector.extract_strided_slice %1 {offsets = [2, 0], sizes = [1, 256], strides = [1, 1]} : vector<8x256xf32> to vector<1x256xf32>
    %38 = arith.addf %37, %29 : vector<1x256xf32>
    %39 = vector.extract_strided_slice %1 {offsets = [3, 0], sizes = [1, 256], strides = [1, 1]} : vector<8x256xf32> to vector<1x256xf32>
    %40 = arith.addf %39, %29 : vector<1x256xf32>
    %41 = vector.extract_strided_slice %2 {offsets = [0, 0], sizes = [256, 1], strides = [1, 1]} : vector<256x8xf32> to vector<256x1xf32>
    %42 = arith.addf %41, %32 : vector<256x1xf32>
    %43 = vector.extract_strided_slice %2 {offsets = [0, 1], sizes = [256, 1], strides = [1, 1]} : vector<256x8xf32> to vector<256x1xf32>
    %44 = arith.addf %43, %32 : vector<256x1xf32>
    %45 = vector.extract_strided_slice %2 {offsets = [0, 2], sizes = [256, 1], strides = [1, 1]} : vector<256x8xf32> to vector<256x1xf32>
    %46 = arith.addf %45, %32 : vector<256x1xf32>
    %47 = vector.extract_strided_slice %2 {offsets = [0, 3], sizes = [256, 1], strides = [1, 1]} : vector<256x8xf32> to vector<256x1xf32>
    %48 = arith.addf %47, %32 : vector<256x1xf32>
    %49 = arith.subf %38, %34 : vector<1x256xf32>
    %50 = arith.subf %40, %36 : vector<1x256xf32>
    %51 = arith.mulf %49, %50 : vector<1x256xf32>
    %52 = arith.subf %46, %42 : vector<256x1xf32>
    %53 = arith.subf %48, %44 : vector<256x1xf32>
    %54 = arith.mulf %52, %53 : vector<256x1xf32>
    %55 = vector.broadcast %46 : vector<256x1xf32> to vector<256x256xf32>
    %56 = vector.broadcast %38 : vector<1x256xf32> to vector<256x256xf32>
    %57 = arith.minimumf %55, %56 : vector<256x256xf32>
    %58 = vector.broadcast %42 : vector<256x1xf32> to vector<256x256xf32>
    %59 = vector.broadcast %34 : vector<1x256xf32> to vector<256x256xf32>
    %60 = arith.maximumf %58, %59 : vector<256x256xf32>
    %61 = arith.subf %57, %60 : vector<256x256xf32>
    %cst_11 = arith.constant 0.000000e+00 : f32
    %62 = vector.broadcast %cst_11 : f32 to vector<256x256xf32>
    %63 = arith.maximumf %61, %62 : vector<256x256xf32>
    %64 = vector.broadcast %48 : vector<256x1xf32> to vector<256x256xf32>
    %65 = vector.broadcast %40 : vector<1x256xf32> to vector<256x256xf32>
    %66 = arith.minimumf %64, %65 : vector<256x256xf32>
    %67 = vector.broadcast %44 : vector<256x1xf32> to vector<256x256xf32>
    %68 = vector.broadcast %36 : vector<1x256xf32> to vector<256x256xf32>
    %69 = arith.maximumf %67, %68 : vector<256x256xf32>
    %70 = arith.subf %66, %69 : vector<256x256xf32>
    %cst_12 = arith.constant 0.000000e+00 : f32
    %71 = vector.broadcast %cst_12 : f32 to vector<256x256xf32>
    %72 = arith.maximumf %70, %71 : vector<256x256xf32>
    %73 = arith.mulf %63, %72 : vector<256x256xf32>
    %74 = tpu.iota {dimensions = array<i32: 0>} : vector<256x256xi32>
    %75 = tpu.iota {dimensions = array<i32: 1>} : vector<256x256xi32>
    %76 = vector.broadcast %54 : vector<256x1xf32> to vector<256x256xf32>
    %77 = vector.broadcast %51 : vector<1x256xf32> to vector<256x256xf32>
    %78 = arith.addf %76, %77 : vector<256x256xf32>
    %79 = arith.subf %78, %73 : vector<256x256xf32>
    %cst_13 = arith.constant 5.000000e-01 : f32
    %80 = vector.broadcast %cst_13 : f32 to vector<256x256xf32>
    %81 = arith.mulf %80, %79 : vector<256x256xf32>
    %82 = arith.cmpf ogt, %73, %81 : vector<256x256xf32>
    %83 = arith.cmpi slt, %74, %75 : vector<256x256xi32>
    %84 = arith.andi %82, %83 : vector<256x256xi1>
    %cst_14 = arith.constant 1.000000e+00 : f32
    %cst_15 = arith.constant 0.000000e+00 : f32
    %85 = vector.broadcast %cst_14 : f32 to vector<256x256xf32>
    %86 = vector.broadcast %cst_15 : f32 to vector<256x256xf32>
    %87 = arith.select %84, %85, %86 : vector<256x256xi1>, vector<256x256xf32>
    %88 = arith.truncf %87 : vector<256x256xf32> to vector<256x256xbf16>
    %c0_i32 = arith.constant 0 : i32
    %c1_i32 = arith.constant 1 : i32
    %89:3 = scf.while (%arg3 = %c0_i32, %arg4 = %8, %arg5 = %c1_i32) : (i32, vector<1x256xf32>, i32) -> (i32, vector<1x256xf32>, i32) {
      %c256_i32 = arith.constant 256 : i32
      %93 = arith.cmpi slt, %arg3, %c256_i32 : i32
      %c0_i32_19 = arith.constant 0 : i32
      %94 = arith.cmpi sgt, %arg5, %c0_i32_19 : i32
      %95 = arith.andi %93, %94 : i1
      scf.condition(%95) %arg3, %arg4, %arg5 : i32, vector<1x256xf32>, i32
    } do {
    ^bb0(%arg3: i32, %arg4: vector<1x256xf32>, %arg5: i32):
      %93 = arith.truncf %arg4 : vector<1x256xf32> to vector<1x256xbf16>
      %cst_19 = arith.constant dense<0.000000e+00> : vector<1x256xf32>
      %94 = tpu.matmul %93, %88, %cst_19 {dimension_numbers = #tpu.dot_dimension_numbers<[1], [0], [0], [1], [0, 0, 1, 1], [], []>} : vector<1x256xbf16>, vector<256x256xbf16>, vector<1x256xf32> -> vector<1x256xf32>
      %cst_20 = arith.constant 5.000000e-01 : f32
      %95 = vector.broadcast %cst_20 : f32 to vector<1x256xf32>
      %96 = arith.cmpf olt, %94, %95 : vector<1x256xf32>
      %cst_21 = arith.constant 0.000000e+00 : f32
      %97 = vector.broadcast %cst_21 : f32 to vector<1x256xf32>
      %98 = arith.select %96, %8, %97 : vector<1x256xi1>, vector<1x256xf32>
      %99 = arith.truncf %98 : vector<1x256xf32> to vector<1x256xbf16>
      %cst_22 = arith.constant dense<0.000000e+00> : vector<1x256xf32>
      %100 = tpu.matmul %99, %88, %cst_22 {dimension_numbers = #tpu.dot_dimension_numbers<[1], [0], [0], [1], [0, 0, 1, 1], [], []>} : vector<1x256xbf16>, vector<256x256xbf16>, vector<1x256xf32> -> vector<1x256xf32>
      %cst_23 = arith.constant 5.000000e-01 : f32
      %101 = vector.broadcast %cst_23 : f32 to vector<1x256xf32>
      %102 = arith.cmpf olt, %100, %101 : vector<1x256xf32>
      %cst_24 = arith.constant 0.000000e+00 : f32
      %103 = vector.broadcast %cst_24 : f32 to vector<1x256xf32>
      %104 = arith.select %102, %8, %103 : vector<1x256xi1>, vector<1x256xf32>
      %105 = arith.truncf %104 : vector<1x256xf32> to vector<1x256xbf16>
      %cst_25 = arith.constant dense<0.000000e+00> : vector<1x256xf32>
      %106 = tpu.matmul %105, %88, %cst_25 {dimension_numbers = #tpu.dot_dimension_numbers<[1], [0], [0], [1], [0, 0, 1, 1], [], []>} : vector<1x256xbf16>, vector<256x256xbf16>, vector<1x256xf32> -> vector<1x256xf32>
      %cst_26 = arith.constant 5.000000e-01 : f32
      %107 = vector.broadcast %cst_26 : f32 to vector<1x256xf32>
      %108 = arith.cmpf olt, %106, %107 : vector<1x256xf32>
      %cst_27 = arith.constant 0.000000e+00 : f32
      %109 = vector.broadcast %cst_27 : f32 to vector<1x256xf32>
      %110 = arith.select %108, %8, %109 : vector<1x256xi1>, vector<1x256xf32>
      %111 = arith.cmpf one, %110, %arg4 : vector<1x256xf32>
      %cst_28 = arith.constant 1.000000e+00 : f32
      %cst_29 = arith.constant 0.000000e+00 : f32
      %112 = vector.broadcast %cst_28 : f32 to vector<1x256xf32>
      %113 = vector.broadcast %cst_29 : f32 to vector<1x256xf32>
      %114 = arith.select %111, %112, %113 : vector<1x256xi1>, vector<1x256xf32>
      %115 = vector.shape_cast %114 : vector<1x256xf32> to vector<1x1x256xf32>
      %cst_30 = arith.constant dense<0xFF800000> : vector<1xf32>
      %116 = vector.multi_reduction <maximumf>, %115, %cst_30 [1, 2] : vector<1x1x256xf32> to vector<1xf32>
      %117 = vector.shape_cast %116 : vector<1xf32> to vector<1x1x1xf32>
      %118 = vector.extract %117[0, 0, 0] : f32 from vector<1x1x1xf32>
      %cst_31 = arith.constant 0.000000e+00 : f32
      %119 = arith.cmpf ogt, %118, %cst_31 : f32
      %120 = arith.extui %119 : i1 to i32
      %c3_i32 = arith.constant 3 : i32
      %121 = arith.addi %arg3, %c3_i32 : i32
      scf.yield %121, %110, %120 : i32, vector<1x256xf32>, i32
    }
    %c0_16 = arith.constant 0 : index
    %c0_17 = arith.constant 0 : index
    %c0_18 = arith.constant 0 : index
    %90 = vector.load %arg2[%c0_16, %c0_17, %c0_18] : memref<1x1x256xf32, #tpu.memory_space<vmem>>, vector<1x1x256xf32>
    %91 = vector.shape_cast %90 : vector<1x1x256xf32> to vector<1x256xf32>
    %92 = vector.shape_cast %89#1 : vector<1x256xf32> to vector<1x1x256xf32>
    tpu.vector_store %arg2[%c0_16, %c0_17, %c0_18], %92 {strides = array<i32>} : memref<1x1x256xf32, #tpu.memory_space<vmem>>, vector<1x1x256xf32>,
    return
  }
  func.func @transform_0(%arg0: i32) -> (i32, i32, i32) {
    %c0_i32 = arith.constant 0 : i32
    %c0_i32_0 = arith.constant 0 : i32
    %c0_i32_1 = arith.constant 0 : i32
    return %arg0, %c0_i32, %c0_i32_0 : i32, i32, i32
  }
  func.func @transform_1(%arg0: i32) -> (i32, i32, i32) {
    %c0_i32 = arith.constant 0 : i32
    %c0_i32_0 = arith.constant 0 : i32
    %c0_i32_1 = arith.constant 0 : i32
    return %arg0, %c0_i32, %c0_i32_0 : i32, i32, i32
  }
}

</mosaic_0001>

<bundles_post_ra>
// kernel: detection_nms_postprocess.2
= control target key start
LH: loop header
LB: loop body
LE: loop exit
PB: predicated region body
PF: predicated region fallthrough
CT: control target
= control target key end

     0   :  { %s613_s15 = smov 0   ;;  %s615_s16 = smov 0   ;;  %s665_s0 = inlined_call_operand.vmem [shape: f32[2,4,8,128], index: 0, kind: input, shape index: {}]   ;;  %s666_s1 = inlined_call_operand.vmem [shape: f32[2,4,8,128], index: 1, kind: input, shape index: {}]   ;;  %s667_s2 = inlined_call_operand.vmem [shape: f32[2,8,128], index: 2, kind: input, shape index: {}]   ;;  %s668_s3 = inlined_call_operand.vmem [shape: f32[2,8,128], index: 3, kind: input, shape index: {}]   ;;  %s669_s4 = inlined_call_operand.vmem [shape: f32[2,8,8,128], index: 4, kind: output, shape index: {}]  }
   0x1   :  { %s617_s17 = smov 0  }
   0x2 LB: > { %s26_s18 = sadd.s32 1, %s581_s16  ;;  %p512_p0 = scmp.ge.s32.totalorder %s585_s17, 1  ;;  %s585_s17 = sphi %s617_s17, %s14_s17   ;;  %s581_s16 = sphi %s615_s16, %s671_s16   ;;  %s577_s15 = sphi %s613_s15, %s670_s15  }
   0x3   : > { %p28_p1 = scmp.ge.s32.totalorder %s26_s18, 2  ;;  %p224_p2 = scmp.lt.s32.totalorder %s585_s17, 3 }
   0x5   : > { %s673_s18 = smov (%p28_p1, %s26_s18), 0  ;;  %p225_p3 = pnand %p512_p0, %p224_p2 }
   0x6   : > { %p278_p4 = scmp.lt.s32.totalorder (!%p225_p3), %s577_s15, 1  ;;  %v587_v2 = vmov (!%p225_p3), 0.0  }
   0x7   : > { %228 = sbr.rel (%p225_p3) target bundleno = 48 (0x30), region = 36 }
   0xe   : > { %s675_s15 = smov (!%p278_p4, %s577_s15), 1 }
   0xf   : > { %s529_s19 = sshll.u32 %s675_s15, 5  ;;  %s531_s20 = sshll.u32 %s675_s15, 6 }
  0x10   : > { %s285_s23 = scalar_lea.vmem %s665_s0, %s529_s19  ;;  %s293_s26 = scalar_lea.vmem %s666_s1, %s529_s19 }
  0x11   : > { %s640_s29 = scalar_lea.vmem %s669_s4, %s531_s20  ;;  %s517_s30 = sshll.u32 %s675_s15, 3  ;;  %v525_v0 = vld [vmem:[%s285_s23 + $0x10] sm:$0xff]  ;;  %v526_v1 = vld [vmem:[%s285_s23 + $0x18] sm:$0xff]  ;;  %v316_v7 = vld [vmem:[%s293_s26] sm:$0xff] }
  0x12   : > { %s300_s7 = scalar_lea.vmem %s667_s2, %s517_s30  ;;  %s307_s10 = scalar_lea.vmem %s668_s3, %s517_s30  ;;  %376 = vst [vmem:[%s640_s29 + $0x38] sm:$0xff] %v587_v2  ;;  %v336_v3 = vmul.f32 0.2, %v525_v0  ;;  %v340_v4 = vmul.f32 0.2, %v526_v1  ;;  %v522_v8 = vld [vmem:[%s293_s26 + $0x10] sm:$0xff] }
  0x13   : > { %v358_v5 = vld [vmem:[%s300_s7] sm:$0xff]  ;;  %v521_v11 = vld [vmem:[%s293_s26 + $0x8] sm:$0xff]  ;;  %v523_v12 = vld [vmem:[%s293_s26 + $0x18] sm:$0xff]  ;;  %v323_v15 = vsub.f32 %v522_v8, %v316_v7 }
  0x14   : > { %v360_v6 = vld [vmem:[%s307_s10] sm:$0xff]  ;;  %v337_v9 = vmin.f32 %v336_v3, 4.1351666  ;;  %v341_v10 = vmin.f32 %v340_v4, 4.1351666  ;;  %557 = vrcp.f32 %v358_v5  ;;  %v324_v17 = vsub.f32 %v523_v12, %v521_v11  ;;  %v524_v18 = vld [vmem:[%s285_s23 + $0x8] sm:$0xff] }
  0x15   : > { %374 = vst [vmem:[%s640_s29 + $0x28] sm:$0xff] %v360_v6  ;;  %v329_v16 = vld [vmem:[%s285_s23] sm:$0xff]  ;;  %v325_v19 = vmul.f32 0.5, %v323_v15  ;;  %v333_v22 = vmul.f32 0.1, %v524_v18 }
  0x16   : > { %v346_v13 = vmul.f32 1.442695, %v337_v9  ;;  %v349_v14 = vmul.f32 1.442695, %v341_v10  ;;  %v330_v20 = vmul.f32 0.1, %v329_v16 }
  0x17   : > { %v327_v21 = vmul.f32 0.5, %v324_v17  ;;  %v326_v24 = vadd.f32 %v325_v19, %v316_v7  ;;  %v344_v27 = vmul.f32 %v333_v22, %v324_v17 }
  0x18   : > { %559 = vpow2.f32 %v346_v13  ;;  %v342_v25 = vmul.f32 %v330_v20, %v323_v15 }
  0x19   : > { %561 = vpow2.f32 %v349_v14  ;;  %v328_v26 = vadd.f32 %v521_v11, %v327_v21 }
  0x1a   : > { %v343_v30 = vadd.f32 %v342_v25, %v326_v24 }
  0x1b   : > { %v345_v32 = vadd.f32 %v344_v27, %v328_v26 }
  0x1e   : > { %v558_v23 = vpop.eup %557 }
  0x1f   : > { %373 = vst [vmem:[%s640_s29 + $0x20] sm:$0xff] %v558_v23  ;;  %vm361_vm0 = vcmp.gt.f32.partialorder %v558_v23, 0.2 }
  0x22   : > { %v560_v28 = vpop.eup %559 }
  0x23   : > { %v562_v29 = vpop.eup %561  ;;  %v348_v31 = vmul.f32 %v560_v28, %v323_v15 }
  0x24   : > { %v351_v33 = vmul.f32 %v562_v29, %v324_v17 }
  0x25   : > { %v352_v34 = vmul.f32 0.5, %v348_v31 }
  0x26   : > { %v354_v35 = vmul.f32 0.5, %v351_v33 }
  0x27   : > { %v353_v36 = vsub.f32 %v343_v30, %v352_v34  ;;  %v356_v37 = vadd.f32 %v352_v34, %v343_v30 }
  0x28   : > { %v355_v38 = vsub.f32 %v345_v32, %v354_v35  ;;  %v357_v39 = vadd.f32 %v354_v35, %v345_v32 }
  0x29   : > { %369 = vst [vmem:[%s640_s29] sm:$0xff] %v353_v36  ;;  %v362_v40 = vsub.f32 %v356_v37, %v353_v36  ;;  %371 = vst [vmem:[%s640_s29 + $0x10] sm:$0xff] %v356_v37 }
  0x2a   : > { %370 = vst [vmem:[%s640_s29 + $0x8] sm:$0xff] %v355_v38  ;;  %372 = vst [vmem:[%s640_s29 + $0x18] sm:$0xff] %v357_v39  ;;  %v365_v41 = vsub.f32 %v357_v39, %v355_v38 }
  0x2b   : > { %vm363_vm1 = vcmp.ge.f32.partialorder %v362_v40, 0.01 }
  0x2c   : > { %vm364_vm2 = vmand %vm361_vm0, %vm363_vm1  ;;  %vm366_vm3 = vcmp.ge.f32.partialorder %v365_v41, 0.01 }
  0x2d   : > { %vm367_vm4 = vmand %vm364_vm2, %vm366_vm3 }
  0x2e   : > { %v368_v42 = vsel %vm367_vm4, 1.0, %v587_v2 }
  0x2f   : > { %375 = vst [vmem:[%s640_s29 + $0x30] sm:$0xff] %v368_v42 }
  0x30 PF: > { %s14_s17 = sadd.s32 1, %s585_s17   ;;  %s670_s15 = smov %s581_s16 }
  0x31   : > { %p11_p5 = scmp.ge.s32.totalorder %s14_s17, 4   ;;  %s671_s16 = smov %s673_s18 }
  0x33   :  { %13 = sbr.rel (!%p11_p5) target bundleno = 2 (0x2), region = 81 }

// kernel: detection_nms_postprocess.3
= control target key start
LH: loop header
LB: loop body
LE: loop exit
PB: predicated region body
PF: predicated region fallthrough
CT: control target
= control target key end

     0   :  { %s3743_s6 = smov 0   ;;  %s7375_s0 = inlined_call_operand.vmem [shape: f32[2,8,256], index: 0, kind: input, shape index: {}]   ;;  %s7376_s1 = inlined_call_operand.vmem [shape: f32[2,1,256], index: 1, kind: output, shape index: {}]  }
   0x1 LB: > { %s3459_s7 = sadd.s32 4294967295, %s3704_s6   ;;  %p3463_p0 = scmp.ge.s32.totalorder %s3704_s6, 1  ;;  %s3704_s6 = sphi %s3743_s6, %s11_s6  }
   0x2   : > { %p87_p1 = scmp.lt.s32.totalorder %s3704_s6, 3 }
   0x4   : > { %p88_p2 = pnand %p3463_p0, %p87_p1 }
   0x6   : > { %91 = sbr.rel (%p88_p2) target bundleno = 2187 (0x88b), region = 24 }
   0xd   : > { %p106_p3 = scmp.lt.s32.totalorder %s3459_s7, 1  ;;  %v7377_v0 = vlaneseq  ;;  %v3718_v5 = vmov 0.0   ;;  %v7378_v7 = vmov 0   ;;  %vm199_vm2 = vcmask 1043456   ;;  %s3720_s16 = smov 123  }
   0xe   : > { %s3721_s17 = smov 124   ;;  %s3722_s18 = smov 125  }
   0xf   : > { %s8569_s7 = smov (!%p106_p3, %s3459_s7), 1  ;;  %v3752_v1 = vshrl.u32 %v7377_v0, 7  ;;  %s3723_s19 = smov 126  }
  0x10   : > { %s3625_s8 = sshll.u32 %s8569_s7, 4  ;;  %s3466_s9 = sshll.u32 %s8569_s7, 1 }
  0x11   : > { %7615 = vst [vmem:[#allocation2_spill] sm:$0xff] %v3752_v1  ;;  %s3757_s12 = scalar_lea.vmem %s7375_s0, %s3625_s8  ;;  %s3762_s15 = scalar_lea.vmem %s7376_s1, %s3466_s9  ;;  %v189_v2 = vsub.s32 6, %v3752_v1 }
  0x12   : > { %v115_v3 = vld [vmem:[%s3757_s12] sm:$0xff]  ;;  %v116_v4 = vld [vmem:[%s3757_s12 + $0x8] sm:$0xff]  ;;  %s3724_s20 = smov 2   ;;  %s3725_s21 = smov 127  }
  0x13   : > { %117 = vxpose.xlu0.b32.start.end [1/1] (short) %v115_v3, 128  ;;  %vm181_vm0 = vcmp.gt.f32.partialorder %v115_v3, 0.5  ;;  %vm182_vm1 = vcmp.gt.f32.partialorder %v116_v4, 0.5  ;;  %s6891_s22 = smov 0  }
  0x14   : > { %v184_v6 = vsel %vm182_vm1, 1.0, %v3718_v5  ;;  %v185_v8 = vsel %vm181_vm0, 1, %v7378_v7  ;;  %v186_v9 = vsel %vm182_vm1, 1, %v7378_v7  ;;  %v183_v10 = vsel %vm181_vm0, 1.0, %v3718_v5 }
  0x15   : > { %v190_v11 = vrot.slane %v185_v8, %v189_v2  ;;  %v194_v12 = vrot.slane %v186_v9, %v189_v2  ;;  %v3769_v13 = vrot.slane %v184_v6, 6   ;;  %v3771_v14 = vrot.slane %v183_v10, 6  }
  0x17   : > { %7616 = vst [vmem:[#allocation3_spill] sm:$0xff] %v3769_v13  ;;  %7617 = vst [vmem:[#allocation4_spill] sm:$0xff] %v3771_v14  ;;  %vm195_vm3 = vcmp.eq.s32.totalorder %v190_v11, 1  ;;  %vm196_vm4 = vcmp.eq.s32.totalorder %v194_v12, 1 }
  0x18   : > { %v197_v15 = vsel %vm195_vm3, %v115_v3, -1e+30  ;;  %v198_v16 = vsel %vm196_vm4, %v116_v4, -1e+30 }
  0x19   : > { %v200_v17 = vsel %vm199_vm2, %v197_v15, -inf  ;;  %v201_v18 = vsel %vm199_vm2, %v198_v16, -inf }
  0x1a   : > { %v202_v19 = vmax.f32 %v200_v17, %v201_v18 }
  0x1c   : > { %203 = vmax.xlane.f32.xlu1 %v202_v19 }
  0x50   : > { %149 = vxpose.xlu0.b32.start.end [1/1] (short) %v116_v4, 128 }
  0x79   : > { %3676 = vset.pattern.permute.xlu0 %v7378_v7 }
  0x93   : > { %v3776_v20 = vpop.trf.xlu0 }
  0x97   : > { %v3778_v21 = vpop.trf.xlu0 }
  0x98   : > { %7618 = vst [vmem:[#allocation5_spill] sm:$0xff] %v3778_v21 }
  0x9b   : > { %v3780_v22 = vpop.trf.xlu0 }
  0x9c   : > { %7619 = vst [vmem:[#allocation6_spill] sm:$0xff] %v3780_v22 }
  0x9f   : > { %v3782_v23 = vpop.trf.xlu0 }
  0xa3   : > { %v3784_v24 = vpop.trf.xlu0 }
  0xa4   : > { %7620 = vst [vmem:[#allocation7_spill] sm:$0xff] %v3784_v24 }
  0xa7   : > { %v3786_v25 = vpop.trf.xlu0 }
  0xa9   : > { %v204_v26 = vpop.xlane.xlu1 %203 }
  0xaa   : > { %v205_v27 = vsel %vm199_vm2, %v204_v26, -inf }
  0xab   : > { %v206_v28 = vrot.slane %v205_v27, 4  ;;  %v3789_v29 = vpop.trf.xlu0 }
  0xac   : > { %7621 = vst [vmem:[#allocation8_spill] sm:$0xff] %v3789_v29 }
  0xad   : > { %v207_v30 = vmax.f32 %v205_v27, %v206_v28 }
  0xaf   : > { %v208_v31 = vrot.slane %v207_v30, 2  ;;  %v3791_v32 = vpop.trf.xlu0 }
  0xb1   : > { %v209_v33 = vmax.f32 %v207_v30, %v208_v31 }
  0xb3   : > { %v210_v34 = vrot.slane %v209_v33, 1  ;;  %v3793_v35 = vpop.trf.xlu0 }
  0xb4   : > { %7622 = vst [vmem:[#allocation9_spill] sm:$0xff] %v3793_v35 }
  0xb5   : > { %v211_v36 = vmax.f32 %v209_v33, %v210_v34 }
  0xb7   : > { %vm212_vm5 = vcmp.gt.f32.partialorder %v211_v36, -1e+29  ;;  %v3795_v37 = vpop.trf.xlu0 }
  0xb8   : > { %v213_v38 = vsel %vm212_vm5, %v211_v36, 0.0 }
  0xb9   : > { %v3797_v39 = vadd.f32 1.0, %v213_v38 }
  0xbb   : > { %7623 = vst [vmem:[#allocation10_spill] sm:$0xff] %v3797_v39  ;;  %v3799_v40 = vpop.trf.xlu0  ;;  %v3803_v41 = vmul.f32 %v3797_v39, %v3776_v20  ;;  %v3811_v43 = vmul.f32 %v3797_v39, %v3778_v21  ;;  %v3819_v45 = vmul.f32 %v3797_v39, %v3780_v22  ;;  %v3833_v48 = vmul.f32 %v3797_v39, %v3782_v23 }
  0xbc   : > { %7624 = vst [vmem:[#allocation11_spill] sm:$0xff] %v3799_v40  ;;  %v3837_v49 = vmul.f32 %v3797_v39, %v3791_v32  ;;  %v3847_v51 = vmul.f32 %v3797_v39, %v3784_v24  ;;  %v3851_v52 = vmul.f32 %v3797_v39, %v3795_v37  ;;  %v3861_v54 = vmul.f32 %v3797_v39, %v3786_v25 }
  0xbd   : > { %307 = vrot.lane.b32.xlu1 %v3803_v41, %s3720_s16  ;;  %v3875_v57 = vmul.f32 %v3797_v39, %v3789_v29  ;;  %v3899_v62 = vmul.f32 %v3797_v39, %v3793_v35  ;;  %v3923_v5 = vmul.f32 %v3797_v39, %v3799_v40 }
  0xbf   : > { %v3807_v42 = vpop.trf.xlu0 }
  0xc0   : > { %v3865_v55 = vmul.f32 %v3797_v39, %v3807_v42 }
  0xc1   : > { %309 = vrot.lane.b32.xlu1 %v3811_v43, %s3720_s16 }
  0xc3   : > { %v3815_v44 = vpop.trf.xlu0 }
  0xc4   : > { %7625 = vst [vmem:[#allocation12_spill] sm:$0xff] %v3815_v44  ;;  %v3823_v46 = vmul.f32 %v3797_v39, %v3815_v44 }
  0xc5   : > { %311 = vrot.lane.b32.xlu1 %v3819_v45, %s3720_s16 }
  0xc6   : > { %331 = vrot.lane.b32.xlu0 %v3823_v46, %s3720_s16 }
  0xc7   : > { %v3829_v47 = vpop.trf.xlu0 }
  0xc8   : > { %v3879_v58 = vmul.f32 %v3797_v39, %v3829_v47 }
  0xc9   : > { %313 = vrot.lane.b32.xlu1 %v3833_v48, %s3720_s16 }
  0xca   : > { %449 = vrot.lane.b32.xlu0 %v3837_v49, %s3721_s17 }
  0xcb   : > { %v3843_v50 = vpop.trf.xlu0 }
  0xcc   : > { %7626 = vst [vmem:[#allocation13_spill] sm:$0xff] %v3843_v50  ;;  %v3945_v11 = vmul.f32 %v3797_v39, %v3843_v50 }
  0xcd   : > { %315 = vrot.lane.b32.xlu1 %v3847_v51, %s3720_s16 }
  0xce   : > { %453 = vrot.lane.b32.xlu0 %v3851_v52, %s3721_s17 }
  0xcf   : > { %v3857_v53 = vpop.trf.xlu0 }
  0xd0   : > { %v3889_v60 = vmul.f32 %v3797_v39, %v3857_v53 }
  0xd1   : > { %317 = vrot.lane.b32.xlu1 %v3861_v54, %s3720_s16 }
  0xd2   : > { %457 = vrot.lane.b32.xlu0 %v3865_v55, %s3721_s17 }
  0xd3   : > { %v3871_v56 = vpop.trf.xlu0 }
  0xd4   : > { %7627 = vst [vmem:[#allocation14_spill] sm:$0xff] %v3871_v56  ;;  %v3963_v17 = vmul.f32 %v3797_v39, %v3871_v56 }
  0xd5   : > { %319 = vrot.lane.b32.xlu1 %v3875_v57, %s3720_s16 }
  0xd6   : > { %461 = vrot.lane.b32.xlu0 %v3879_v58, %s3721_s17 }
  0xd7   : > { %v3885_v59 = vpop.trf.xlu0 }
  0xd8   : > { %v3903_v63 = vmul.f32 %v3797_v39, %v3885_v59 }
  0xd9   : > { %321 = vrot.lane.b32.xlu1 %v3837_v49, %s3720_s16 }
  0xda   : > { %465 = vrot.lane.b32.xlu0 %v3889_v60, %s3721_s17 }
  0xdb   : > { %v3895_v61 = vpop.trf.xlu0 }
  0xdc   : > { %7628 = vst [vmem:[#allocation15_spill] sm:$0xff] %v3895_v61  ;;  %v3981_v27 = vmul.f32 %v3797_v39, %v3895_v61 }
  0xdd   : > { %323 = vrot.lane.b32.xlu1 %v3899_v62, %s3720_s16 }
  0xde   : > { %469 = vrot.lane.b32.xlu0 %v3903_v63, %s3721_s17 }
  0xdf   : > { %v3909_v2 = vpop.trf.xlu0 }
  0xe0   : > { %v3913_v3 = vmul.f32 %v3797_v39, %v3909_v2 }
  0xe1   : > { %325 = vrot.lane.b32.xlu1 %v3851_v52, %s3720_s16 }
  0xe2   : > { %473 = vrot.lane.b32.xlu0 %v3913_v3, %s3721_s17 }
  0xe3   : > { %v3919_v4 = vpop.trf.xlu0 }
  0xe4   : > { %7629 = vst [vmem:[#allocation16_spill] sm:$0xff] %v3919_v4  ;;  %v3999_v33 = vmul.f32 %v3797_v39, %v3919_v4 }
  0xe5   : > { %327 = vrot.lane.b32.xlu1 %v3923_v5, %s3720_s16 }
  0xe7   : > { %v3927_v6 = vpop.trf.xlu0 }
  0xe8   : > { %v3931_v8 = vmul.f32 %v3797_v39, %v3927_v6 }
  0xe9   : > { %329 = vrot.lane.b32.xlu1 %v3865_v55, %s3720_s16 }
  0xea   : > { %477 = vrot.lane.b32.xlu0 %v3931_v8, %s3721_s17 }
  0xeb   : > { %v3937_v9 = vpop.trf.xlu0 }
  0xec   : > { %7630 = vst [vmem:[#allocation17_spill] sm:$0xff] %v3937_v9  ;;  %v4017_v0 = vmul.f32 %v3797_v39, %v3937_v9 }
  0xed   : > { %333 = vrot.lane.b32.xlu1 %v3879_v58, %s3720_s16 }
  0xef   : > { %v3941_v10 = vpop.trf.xlu0 }
  0xf0   : > { %v3949_v12 = vmul.f32 %v3797_v39, %v3941_v10 }
  0xf1   : > { %335 = vrot.lane.b32.xlu1 %v3945_v11, %s3720_s16 }
  0xf2   : > { %481 = vrot.lane.b32.xlu0 %v3949_v12, %s3721_s17 }
  0xf3   : > { %v3955_v15 = vpop.trf.xlu0 }
  0xf4   : > { %7631 = vst [vmem:[#allocation18_spill] sm:$0xff] %v3955_v15  ;;  %v4033_v14 = vmul.f32 %v3797_v39, %v3955_v15 }
  0xf5   : > { %337 = vrot.lane.b32.xlu1 %v3889_v60, %s3720_s16 }
  0xf7   : > { %v3959_v16 = vpop.trf.xlu0 }
  0xf8   : > { %v3967_v18 = vmul.f32 %v3797_v39, %v3959_v16 }
  0xf9   : > { %339 = vrot.lane.b32.xlu1 %v3963_v17, %s3720_s16 }
  0xfa   : > { %485 = vrot.lane.b32.xlu0 %v3967_v18, %s3721_s17 }
  0xfb   : > { %v3973_v19 = vpop.trf.xlu0 }
  0xfc   : > { %7632 = vst [vmem:[#allocation19_spill] sm:$0xff] %v3973_v19  ;;  %v4045_v13 = vmul.f32 %v3797_v39, %v3973_v19 }
  0xfd   : > { %341 = vrot.lane.b32.xlu1 %v3903_v63, %s3720_s16 }
  0xff   : > { %v3977_v26 = vpop.trf.xlu0 }
 0x100   : > { %7633 = vst [vmem:[#allocation20_spill] sm:$0xff] %v3977_v26  ;;  %v3985_v28 = vmul.f32 %v3797_v39, %v3977_v26 }
 0x101   : > { %343 = vrot.lane.b32.xlu1 %v3981_v27, %s3720_s16 }
 0x102   : > { %489 = vrot.lane.b32.xlu0 %v3985_v28, %s3721_s17 }
 0x103   : > { %v3991_v30 = vpop.trf.xlu0 }
 0x104   : > { %7634 = vst [vmem:[#allocation21_spill] sm:$0xff] %v3991_v30  ;;  %v4057_v1 = vmul.f32 %v3797_v39, %v3991_v30 }
 0x105   : > { %345 = vrot.lane.b32.xlu1 %v3913_v3, %s3720_s16 }
 0x107   : > { %v3995_v31 = vpop.trf.xlu0 }
 0x108   : > { %7635 = vst [vmem:[#allocation22_spill] sm:$0xff] %v3995_v31  ;;  %v4003_v34 = vmul.f32 %v3797_v39, %v3995_v31 }
 0x109   : > { %347 = vrot.lane.b32.xlu1 %v3999_v33, %s3720_s16 }
 0x10a   : > { %493 = vrot.lane.b32.xlu0 %v4003_v34, %s3721_s17 }
 0x10b   : > { %v4009_v36 = vpop.trf.xlu0 }
 0x10c   : > { %7636 = vst [vmem:[#allocation23_spill] sm:$0xff] %v4009_v36  ;;  %v4071_v15 = vmul.f32 %v3797_v39, %v4009_v36 }
 0x10d   : > { %349 = vrot.lane.b32.xlu1 %v3931_v8, %s3720_s16 }
 0x10f   : > { %v4013_v38 = vpop.trf.xlu0 }
 0x110   : > { %7637 = vst [vmem:[#allocation24_spill] sm:$0xff] %v4013_v38  ;;  %v4021_v7 = vmul.f32 %v3797_v39, %v4013_v38 }
 0x111   : > { %351 = vrot.lane.b32.xlu1 %v4017_v0, %s3720_s16 }
 0x112   : > { %497 = vrot.lane.b32.xlu0 %v4021_v7, %s3721_s17 }
 0x115   : > { %353 = vrot.lane.b32.xlu1 %v3949_v12, %s3720_s16 }
 0x116   : > { %565 = vrot.lane.b32.xlu0 %v3811_v43, %s3722_s18 }
 0x119   : > { %355 = vrot.lane.b32.xlu1 %v4033_v14, %s3720_s16 }
 0x11a   : > { %569 = vrot.lane.b32.xlu0 %v3833_v48, %s3722_s18 }
 0x11d   : > { %357 = vrot.lane.b32.xlu1 %v3967_v18, %s3720_s16 }
 0x11e   : > { %573 = vrot.lane.b32.xlu0 %v3861_v54, %s3722_s18 }
 0x121   : > { %359 = vrot.lane.b32.xlu1 %v4045_v13, %s3720_s16 }
 0x122   : > { %577 = vrot.lane.b32.xlu0 %v3837_v49, %s3722_s18 }
 0x125   : > { %361 = vrot.lane.b32.xlu1 %v3985_v28, %s3720_s16 }
 0x126   : > { %581 = vrot.lane.b32.xlu0 %v3851_v52, %s3722_s18 }
 0x129   : > { %363 = vrot.lane.b32.xlu1 %v4057_v1, %s3720_s16 }
 0x12a   : > { %585 = vrot.lane.b32.xlu0 %v3865_v55, %s3722_s18 }
 0x12d   : > { %365 = vrot.lane.b32.xlu1 %v4003_v34, %s3720_s16 }
 0x12e   : > { %589 = vrot.lane.b32.xlu0 %v3879_v58, %s3722_s18 }
 0x12f   : > { %v4067_v19 = vpop.permute.xlu1 %307 }
 0x130   : > { %7638 = vst [vmem:[#allocation25_spill] sm:$0xff] %v4067_v19 }
 0x131   : > { %367 = vrot.lane.b32.xlu1 %v4071_v15, %s3720_s16 }
 0x132   : > { %593 = vrot.lane.b32.xlu0 %v3889_v60, %s3722_s18 }
 0x133   : > { %v4077_v30 = vpop.permute.xlu1 %309 }
 0x135   : > { %369 = vrot.lane.b32.xlu1 %v4021_v7, %s3720_s16 }
 0x136   : > { %597 = vrot.lane.b32.xlu0 %v3903_v63, %s3722_s18 }
 0x137   : > { %v4083_v9 = vpop.permute.xlu1 %311 }
 0x138   : > { %7639 = vst [vmem:[#allocation26_spill] sm:$0xff] %v4083_v9  ;;  %v4099_v4 = vpop.permute.xlu0 %331 }
 0x139   : > { %435 = vrot.lane.b32.xlu1 %v3803_v41, %s3721_s17  ;;  %7641 = vst [vmem:[#allocation28_spill] sm:$0xff] %v4099_v4 }
 0x13a   : > { %601 = vrot.lane.b32.xlu0 %v3913_v3, %s3722_s18 }
 0x13b   : > { %v4089_v39 = vpop.permute.xlu1 %313 }
 0x13c   : > { %v4111_v50 = vpop.permute.xlu0 %449 }
 0x13d   : > { %437 = vrot.lane.b32.xlu1 %v3811_v43, %s3721_s17 }
 0x13e   : > { %605 = vrot.lane.b32.xlu0 %v3931_v8, %s3722_s18 }
 0x13f   : > { %v4095_v36 = vpop.permute.xlu1 %315 }
 0x140   : > { %7640 = vst [vmem:[#allocation27_spill] sm:$0xff] %v4095_v36  ;;  %v4121_v44 = vpop.permute.xlu0 %453 }
 0x141   : > { %439 = vrot.lane.b32.xlu1 %v3819_v45, %s3721_s17 }
 0x142   : > { %609 = vrot.lane.b32.xlu0 %v3949_v12, %s3722_s18 }
 0x143   : > { %v4103_v61 = vpop.permute.xlu1 %317 }
 0x145   : > { %441 = vrot.lane.b32.xlu1 %v3833_v48, %s3721_s17 }
 0x146   : > { %613 = vrot.lane.b32.xlu0 %v3967_v18, %s3722_s18 }
 0x147   : > { %v4109_v56 = vpop.permute.xlu1 %319 }
 0x148   : > { %7642 = vst [vmem:[#allocation29_spill] sm:$0xff] %v4109_v56  ;;  %v4133_v56 = vpop.permute.xlu0 %457 }
 0x149   : > { %443 = vrot.lane.b32.xlu1 %v3847_v51, %s3721_s17 }
 0x14a   : > { %617 = vrot.lane.b32.xlu0 %v3985_v28, %s3722_s18 }
 0x14b   : > { %v4117_v4 = vpop.permute.xlu1 %321 }
 0x14d   : > { %445 = vrot.lane.b32.xlu1 %v3861_v54, %s3721_s17 }
 0x14e   : > { %621 = vrot.lane.b32.xlu0 %v4003_v34, %s3722_s18 }
 0x14f   : > { %v4125_v40 = vpop.permute.xlu1 %323 }
 0x150   : > { %7643 = vst [vmem:[#allocation30_spill] sm:$0xff] %v4125_v40  ;;  %v4143_v40 = vpop.permute.xlu0 %461 }
 0x151   : > { %447 = vrot.lane.b32.xlu1 %v3875_v57, %s3721_s17 }
 0x152   : > { %625 = vrot.lane.b32.xlu0 %v4021_v7, %s3722_s18 }
 0x153   : > { %v4131_v35 = vpop.permute.xlu1 %325 }
 0x155   : > { %451 = vrot.lane.b32.xlu1 %v3899_v62, %s3721_s17 }
 0x156   : > { %693 = vrot.lane.b32.xlu0 %v3811_v43, %s3723_s19  ;;  %v4155_v43 = vpop.permute.xlu0 %465 }
 0x157   : > { %v4139_v29 = vpop.permute.xlu1 %327 }
 0x158   : > { %7644 = vst [vmem:[#allocation31_spill] sm:$0xff] %v4139_v29 }
 0x159   : > { %455 = vrot.lane.b32.xlu1 %v3923_v5, %s3721_s17 }
 0x15a   : > { %697 = vrot.lane.b32.xlu0 %v3833_v48, %s3723_s19  ;;  %v4165_v48 = vpop.permute.xlu0 %469 }
 0x15b   : > { %v4147_v36 = vpop.permute.xlu1 %329 }
 0x15d   : > { %459 = vrot.lane.b32.xlu1 %v3823_v46, %s3721_s17 }
 0x15e   : > { %701 = vrot.lane.b32.xlu0 %v3861_v54, %s3723_s19 }
 0x15f   : > { %v4153_v24 = vpop.permute.xlu1 %333 }
 0x161   : > { %463 = vrot.lane.b32.xlu1 %v3945_v11, %s3721_s17 }
 0x162   : > { %705 = vrot.lane.b32.xlu0 %v3837_v49, %s3723_s19  ;;  %v4177_v49 = vpop.permute.xlu0 %473 }
 0x163   : > { %v4161_v29 = vpop.permute.xlu1 %335 }
 0x164   : > { %7645 = vst [vmem:[#allocation32_spill] sm:$0xff] %v4161_v29 }
 0x165   : > { %467 = vrot.lane.b32.xlu1 %v3963_v17, %s3721_s17 }
 0x166   : > { %709 = vrot.lane.b32.xlu0 %v3851_v52, %s3723_s19  ;;  %v4185_v52 = vpop.permute.xlu0 %477 }
 0x167   : > { %v4169_v54 = vpop.permute.xlu1 %337 }
 0x169   : > { %471 = vrot.lane.b32.xlu1 %v3981_v27, %s3721_s17 }
 0x16a   : > { %713 = vrot.lane.b32.xlu0 %v3865_v55, %s3723_s19 }
 0x16b   : > { %v4175_v9 = vpop.permute.xlu1 %339 }
 0x16c   : > { %7646 = vst [vmem:[#allocation33_spill] sm:$0xff] %v4175_v9  ;;  %v4193_v9 = vpop.permute.xlu0 %481 }
 0x16d   : > { %475 = vrot.lane.b32.xlu1 %v3999_v33, %s3721_s17 }
 0x16e   : > { %717 = vrot.lane.b32.xlu0 %v3879_v58, %s3723_s19 }
 0x16f   : > { %v4183_v29 = vpop.permute.xlu1 %341 }
 0x170   : > { %v4201_v22 = vpop.permute.xlu0 %485 }
 0x171   : > { %479 = vrot.lane.b32.xlu1 %v4017_v0, %s3721_s17 }
 0x172   : > { %721 = vrot.lane.b32.xlu0 %v3889_v60, %s3723_s19 }
 0x173   : > { %v4191_v55 = vpop.permute.xlu1 %343 }
 0x174   : > { %7647 = vst [vmem:[#allocation34_spill] sm:$0xff] %v4191_v55  ;;  %v4209_v55 = vpop.permute.xlu0 %489 }
 0x175   : > { %483 = vrot.lane.b32.xlu1 %v4033_v14, %s3721_s17  ;;  %7649 = vst [vmem:[#allocation36_spill] sm:$0xff] %v4209_v55 }
 0x176   : > { %725 = vrot.lane.b32.xlu0 %v3903_v63, %s3723_s19 }
 0x177   : > { %v4199_v58 = vpop.permute.xlu1 %345 }
 0x179   : > { %487 = vrot.lane.b32.xlu1 %v4045_v13, %s3721_s17 }
 0x17a   : > { %729 = vrot.lane.b32.xlu0 %v3913_v3, %s3723_s19 }
 0x17b   : > { %v4207_v60 = vpop.permute.xlu1 %347 }
 0x17c   : > { %7648 = vst [vmem:[#allocation35_spill] sm:$0xff] %v4207_v60  ;;  %v4217_v19 = vpop.permute.xlu0 %493 }
 0x17d   : > { %491 = vrot.lane.b32.xlu1 %v4057_v1, %s3721_s17 }
 0x17e   : > { %733 = vrot.lane.b32.xlu0 %v3931_v8, %s3723_s19 }
 0x17f   : > { %v4215_v63 = vpop.permute.xlu1 %349 }
 0x181   : > { %495 = vrot.lane.b32.xlu1 %v4071_v15, %s3721_s17 }
 0x182   : > { %737 = vrot.lane.b32.xlu0 %v3949_v12, %s3723_s19 }
 0x183   : > { %v4223_v3 = vpop.permute.xlu1 %351 }
 0x184   : > { %7650 = vst [vmem:[#allocation37_spill] sm:$0xff] %v4223_v3  ;;  %v4225_v60 = vpop.permute.xlu0 %497 }
 0x185   : > { %7651 = vst [vmem:[#allocation38_spill] sm:$0xff] %v4225_v60  ;;  %563 = vrot.lane.b32.xlu1 %v3803_v41, %s3722_s18 }
 0x186   : > { %741 = vrot.lane.b32.xlu0 %v3967_v18, %s3723_s19 }
 0x187   : > { %v4231_v8 = vpop.permute.xlu1 %353 }
 0x188   : > { %v4233_v55 = vpop.permute.xlu0 %565 }
 0x189   : > { %7652 = vst [vmem:[#allocation39_spill] sm:$0xff] %v4233_v55  ;;  %567 = vrot.lane.b32.xlu1 %v3819_v45, %s3722_s18  ;;  %v4259_v55 = vadd.f32 %v4077_v30, %v3778_v21 }
 0x18a   : > { %745 = vrot.lane.b32.xlu0 %v3985_v28, %s3723_s19 }
 0x18b   : > { %v4239_v12 = vpop.permute.xlu1 %355  ;;  %7655 = vst [vmem:[#allocation42_spill] sm:$0xff] %v4259_v55 }
 0x18c   : > { %v4241_v3 = vpop.permute.xlu0 %569 }
 0x18d   : > { %7653 = vst [vmem:[#allocation40_spill] sm:$0xff] %v4241_v3  ;;  %571 = vrot.lane.b32.xlu1 %v3847_v51, %s3722_s18 }
 0x18e   : > { %749 = vrot.lane.b32.xlu0 %v4003_v34, %s3723_s19 }
 0x18f   : > { %v4247_v18 = vpop.permute.xlu1 %357 }
 0x190   : > { %v4249_v60 = vpop.permute.xlu0 %573 }
 0x191   : > { %7654 = vst [vmem:[#allocation41_spill] sm:$0xff] %v4249_v60  ;;  %575 = vrot.lane.b32.xlu1 %v3875_v57, %s3722_s18  ;;  %v4269_v60 = vadd.f32 %v4089_v39, %v3782_v23 }
 0x192   : > { %753 = vrot.lane.b32.xlu0 %v4021_v7, %s3723_s19 }
 0x193   : > { %v4255_v28 = vpop.permute.xlu1 %359  ;;  %7657 = vst [vmem:[#allocation44_spill] sm:$0xff] %v4269_v60 }
 0x194   : > { %v4261_v3 = vpop.permute.xlu0 %577 }
 0x195   : > { %7656 = vst [vmem:[#allocation43_spill] sm:$0xff] %v4261_v3  ;;  %579 = vrot.lane.b32.xlu1 %v3899_v62, %s3722_s18  ;;  %v4281_v3 = vadd.f32 %v4103_v61, %v3786_v25 }
 0x196   : > { %877 = vrot.lane.b32.xlu0 %v4259_v55, %s3724_s20 }
 0x197   : > { %v362_v34 = vpop.permute.xlu1 %361  ;;  %7659 = vst [vmem:[#allocation46_spill] sm:$0xff] %v4281_v3 }
 0x198   : > { %v4271_v7 = vpop.permute.xlu0 %581 }
 0x199   : > { %7658 = vst [vmem:[#allocation45_spill] sm:$0xff] %v4271_v7  ;;  %583 = vrot.lane.b32.xlu1 %v3923_v5, %s3722_s18  ;;  %v4291_v7 = vadd.f32 %v4117_v4, %v3791_v32 }
 0x19a   : > { %881 = vrot.lane.b32.xlu0 %v4269_v60, %s3724_s20 }
 0x19b   : > { %v4277_v30 = vpop.permute.xlu1 %363  ;;  %7661 = vst [vmem:[#allocation48_spill] sm:$0xff] %v4291_v7 }
 0x19c   : > { %v4283_v55 = vpop.permute.xlu0 %585 }
 0x19d   : > { %7660 = vst [vmem:[#allocation47_spill] sm:$0xff] %v4283_v55  ;;  %587 = vrot.lane.b32.xlu1 %v3823_v46, %s3722_s18  ;;  %v4303_v55 = vadd.f32 %v4131_v35, %v3795_v37 }
 0x19e   : > { %885 = vrot.lane.b32.xlu0 %v4281_v3, %s3724_s20 }
 0x19f   : > { %v366_v39 = vpop.permute.xlu1 %365  ;;  %7663 = vst [vmem:[#allocation50_spill] sm:$0xff] %v4303_v55 }
 0x1a0   : > { %v4293_v60 = vpop.permute.xlu0 %589 }
 0x1a1   : > { %7662 = vst [vmem:[#allocation49_spill] sm:$0xff] %v4293_v60  ;;  %591 = vrot.lane.b32.xlu1 %v3945_v11, %s3722_s18  ;;  %v4313_v60 = vadd.f32 %v4147_v36, %v3807_v42 }
 0x1a2   : > { %889 = vrot.lane.b32.xlu0 %v4291_v7, %s3724_s20 }
 0x1a3   : > { %v4299_v61 = vpop.permute.xlu1 %367  ;;  %7665 = vst [vmem:[#allocation52_spill] sm:$0xff] %v4313_v60 }
 0x1a4   : > { %v4305_v3 = vpop.permute.xlu0 %593 }
 0x1a5   : > { %7664 = vst [vmem:[#allocation51_spill] sm:$0xff] %v4305_v3  ;;  %595 = vrot.lane.b32.xlu1 %v3963_v17, %s3722_s18  ;;  %v4325_v3 = vadd.f32 %v4153_v24, %v3829_v47 }
 0x1a6   : > { %893 = vrot.lane.b32.xlu0 %v4303_v55, %s3724_s20 }
 0x1a7   : > { %v370_v4 = vpop.permute.xlu1 %369  ;;  %7667 = vst [vmem:[#allocation54_spill] sm:$0xff] %v4325_v3 }
 0x1a8   : > { %v4315_v7 = vpop.permute.xlu0 %597 }
 0x1a9   : > { %7666 = vst [vmem:[#allocation53_spill] sm:$0xff] %v4315_v7  ;;  %599 = vrot.lane.b32.xlu1 %v3981_v27, %s3722_s18  ;;  %v4335_v7 = vadd.f32 %v4169_v54, %v3857_v53 }
 0x1aa   : > { %897 = vrot.lane.b32.xlu0 %v4313_v60, %s3724_s20 }
 0x1ab   : > { %v4321_v35 = vpop.permute.xlu1 %435  ;;  %7669 = vst [vmem:[#allocation56_spill] sm:$0xff] %v4335_v7 }
 0x1ac   : > { %v4327_v55 = vpop.permute.xlu0 %601 }
 0x1ad   : > { %7668 = vst [vmem:[#allocation55_spill] sm:$0xff] %v4327_v55  ;;  %603 = vrot.lane.b32.xlu1 %v3999_v33, %s3722_s18  ;;  %v4347_v55 = vadd.f32 %v4183_v29, %v3885_v59 }
 0x1ae   : > { %901 = vrot.lane.b32.xlu0 %v4325_v3, %s3724_s20 }
 0x1af   : > { %v438_v36 = vpop.permute.xlu1 %437  ;;  %7671 = vst [vmem:[#allocation58_spill] sm:$0xff] %v4347_v55 }
 0x1b0   : > { %v4337_v60 = vpop.permute.xlu0 %605 }
 0x1b1   : > { %7670 = vst [vmem:[#allocation57_spill] sm:$0xff] %v4337_v60  ;;  %607 = vrot.lane.b32.xlu1 %v4017_v0, %s3722_s18  ;;  %v4357_v60 = vadd.f32 %v4199_v58, %v3909_v2 }
 0x1b2   : > { %905 = vrot.lane.b32.xlu0 %v4335_v7, %s3724_s20 }
 0x1b3   : > { %v4343_v24 = vpop.permute.xlu1 %439  ;;  %7673 = vst [vmem:[#allocation60_spill] sm:$0xff] %v4357_v60 }
 0x1b4   : > { %v4349_v3 = vpop.permute.xlu0 %609 }
 0x1b5   : > { %7672 = vst [vmem:[#allocation59_spill] sm:$0xff] %v4349_v3  ;;  %611 = vrot.lane.b32.xlu1 %v4033_v14, %s3722_s18  ;;  %v4369_v3 = vadd.f32 %v4215_v63, %v3927_v6 }
 0x1b6   : > { %909 = vrot.lane.b32.xlu0 %v4347_v55, %s3724_s20 }
 0x1b7   : > { %v442_v54 = vpop.permute.xlu1 %441  ;;  %7675 = vst [vmem:[#allocation62_spill] sm:$0xff] %v4369_v3 }
 0x1b8   : > { %v4359_v7 = vpop.permute.xlu0 %613 }
 0x1b9   : > { %7674 = vst [vmem:[#allocation61_spill] sm:$0xff] %v4359_v7  ;;  %615 = vrot.lane.b32.xlu1 %v4045_v13, %s3722_s18  ;;  %v4379_v7 = vadd.f32 %v4231_v8, %v3941_v10 }
 0x1ba   : > { %913 = vrot.lane.b32.xlu0 %v4357_v60, %s3724_s20 }
 0x1bb   : > { %v4365_v29 = vpop.permute.xlu1 %443  ;;  %7677 = vst [vmem:[#allocation64_spill] sm:$0xff] %v4379_v7 }
 0x1bc   : > { %v4371_v55 = vpop.permute.xlu0 %617 }
 0x1bd   : > { %7676 = vst [vmem:[#allocation63_spill] sm:$0xff] %v4371_v55  ;;  %619 = vrot.lane.b32.xlu1 %v4057_v1, %s3722_s18  ;;  %v4391_v55 = vadd.f32 %v4247_v18, %v3959_v16 }
 0x1be   : > { %917 = vrot.lane.b32.xlu0 %v4369_v3, %s3724_s20 }
 0x1bf   : > { %v446_v58 = vpop.permute.xlu1 %445  ;;  %7679 = vst [vmem:[#allocation66_spill] sm:$0xff] %v4391_v55 }
 0x1c0   : > { %v4381_v60 = vpop.permute.xlu0 %621 }
 0x1c1   : > { %7678 = vst [vmem:[#allocation65_spill] sm:$0xff] %v4381_v60  ;;  %623 = vrot.lane.b32.xlu1 %v4071_v15, %s3722_s18  ;;  %v4402_v60 = vadd.f32 %v362_v34, %v3977_v26 }
 0x1c2   : > { %921 = vrot.lane.b32.xlu0 %v4379_v7, %s3724_s20 }
 0x1c3   : > { %v4387_v63 = vpop.permute.xlu1 %447  ;;  %7681 = vst [vmem:[#allocation68_spill] sm:$0xff] %v4402_v60 }
 0x1c4   : > { %v4393_v3 = vpop.permute.xlu0 %625 }
 0x1c5   : > { %7680 = vst [vmem:[#allocation67_spill] sm:$0xff] %v4393_v3  ;;  %691 = vrot.lane.b32.xlu1 %v3803_v41, %s3723_s19  ;;  %v4413_v41 = vadd.f32 %v366_v39, %v3995_v31 }
 0x1c6   : > { %925 = vrot.lane.b32.xlu0 %v4391_v55, %s3724_s20 }
 0x1c7   : > { %v4399_v8 = vpop.permute.xlu1 %451  ;;  %7682 = vst [vmem:[#allocation69_spill] sm:$0xff] %v4413_v41 }
 0x1c8   : > { %v4404_v7 = vpop.permute.xlu0 %693 }
 0x1c9   : > { %695 = vrot.lane.b32.xlu1 %v3819_v45, %s3723_s19  ;;  %v4424_v45 = vadd.f32 %v370_v4, %v4013_v38 }
 0x1ca   : > { %929 = vrot.lane.b32.xlu0 %v4402_v60, %s3724_s20 }
 0x1cb   : > { %v4410_v18 = vpop.permute.xlu1 %455  ;;  %7683 = vst [vmem:[#allocation70_spill] sm:$0xff] %v4424_v45 }
 0x1cc   : > { %v4415_v3 = vpop.permute.xlu0 %697 }
 0x1cd   : > { %699 = vrot.lane.b32.xlu1 %v3847_v51, %s3723_s19  ;;  %v4435_v51 = vadd.f32 %v438_v36, %v3778_v21 }
 0x1ce   : > { %933 = vrot.lane.b32.xlu0 %v4413_v41, %s3724_s20 }
 0x1cf   : > { %v4421_v34 = vpop.permute.xlu1 %459  ;;  %7684 = vst [vmem:[#allocation71_spill] sm:$0xff] %v4435_v51 }
 0x1d0   : > { %v4426_v55 = vpop.permute.xlu0 %701 }
 0x1d1   : > { %703 = vrot.lane.b32.xlu1 %v3875_v57, %s3723_s19  ;;  %v4446_v57 = vadd.f32 %v442_v54, %v3782_v23 }
 0x1d2   : > { %937 = vrot.lane.b32.xlu0 %v4424_v45, %s3724_s20 }
 0x1d3   : > { %v4432_v39 = vpop.permute.xlu1 %463  ;;  %7685 = vst [vmem:[#allocation72_spill] sm:$0xff] %v4446_v57 }
 0x1d4   : > { %v4437_v60 = vpop.permute.xlu0 %705 }
 0x1d5   : > { %707 = vrot.lane.b32.xlu1 %v3899_v62, %s3723_s19  ;;  %v4457_v62 = vadd.f32 %v446_v58, %v3786_v25 }
 0x1d6   : > { %1037 = vrot.lane.b32.xlu0 %v4435_v51, %s3724_s20 }
 0x1d7   : > { %v4443_v4 = vpop.permute.xlu1 %467  ;;  %7686 = vst [vmem:[#allocation73_spill] sm:$0xff] %v4457_v62 }
 0x1d8   : > { %v4448_v41 = vpop.permute.xlu0 %709 }
 0x1d9   : > { %711 = vrot.lane.b32.xlu1 %v3923_v5, %s3723_s19  ;;  %v4469_v5 = vadd.f32 %v4111_v50, %v3791_v32 }
 0x1da   : > { %1041 = vrot.lane.b32.xlu0 %v4446_v57, %s3724_s20 }
 0x1db   : > { %v4454_v36 = vpop.permute.xlu1 %471  ;;  %7687 = vst [vmem:[#allocation74_spill] sm:$0xff] %v4469_v5 }
 0x1dc   : > { %v4459_v45 = vpop.permute.xlu0 %713 }
 0x1dd   : > { %715 = vrot.lane.b32.xlu1 %v3823_v46, %s3723_s19  ;;  %v4481_v46 = vadd.f32 %v4121_v44, %v3795_v37 }
 0x1de   : > { %1045 = vrot.lane.b32.xlu0 %v4457_v62, %s3724_s20 }
 0x1df   : > { %v4465_v54 = vpop.permute.xlu1 %475  ;;  %7688 = vst [vmem:[#allocation75_spill] sm:$0xff] %v4481_v46 }
 0x1e0   : > { %v4471_v51 = vpop.permute.xlu0 %717 }
 0x1e1   : > { %719 = vrot.lane.b32.xlu1 %v3945_v11, %s3723_s19  ;;  %v4493_v11 = vadd.f32 %v4133_v56, %v3807_v42 }
 0x1e2   : > { %1049 = vrot.lane.b32.xlu0 %v4469_v5, %s3724_s20 }
 0x1e3   : > { %v4477_v58 = vpop.permute.xlu1 %479  ;;  %7689 = vst [vmem:[#allocation76_spill] sm:$0xff] %v4493_v11 }
 0x1e4   : > { %v4483_v62 = vpop.permute.xlu0 %721 }
 0x1e5   : > { %723 = vrot.lane.b32.xlu1 %v3963_v17, %s3723_s19  ;;  %v4505_v17 = vadd.f32 %v4143_v40, %v3829_v47 }
 0x1e6   : > { %1053 = vrot.lane.b32.xlu0 %v4481_v46, %s3724_s20 }
 0x1e7   : > { %v4489_v50 = vpop.permute.xlu1 %483  ;;  %7690 = vst [vmem:[#allocation77_spill] sm:$0xff] %v4505_v17 }
 0x1e8   : > { %v4495_v5 = vpop.permute.xlu0 %725 }
 0x1e9   : > { %727 = vrot.lane.b32.xlu1 %v3981_v27, %s3723_s19  ;;  %v4517_v27 = vadd.f32 %v4155_v43, %v3857_v53 }
 0x1ea   : > { %1057 = vrot.lane.b32.xlu0 %v4493_v11, %s3724_s20 }
 0x1eb   : > { %v4501_v44 = vpop.permute.xlu1 %487  ;;  %7692 = vst [vmem:[#allocation79_spill] sm:$0xff] %v4517_v27 }
 0x1ec   : > { %v4507_v46 = vpop.permute.xlu0 %729 }
 0x1ed   : > { %731 = vrot.lane.b32.xlu1 %v3999_v33, %s3723_s19  ;;  %v4529_v33 = vadd.f32 %v4165_v48, %v3885_v59 }
 0x1ee   : > { %1061 = vrot.lane.b32.xlu0 %v4505_v17, %s3724_s20 }
 0x1ef   : > { %v4513_v56 = vpop.permute.xlu1 %491  ;;  %7694 = vst [vmem:[#allocation81_spill] sm:$0xff] %v4529_v33 }
 0x1f0   : > { %7691 = vst [vmem:[#allocation78_spill] sm:$0xff] %v4513_v56  ;;  %v4519_v11 = vpop.permute.xlu0 %733 }
 0x1f1   : > { %735 = vrot.lane.b32.xlu1 %v4017_v0, %s3723_s19  ;;  %v4541_v0 = vadd.f32 %v4177_v49, %v3909_v2 }
 0x1f2   : > { %1065 = vrot.lane.b32.xlu0 %v4517_v27, %s3724_s20 }
 0x1f3   : > { %v4525_v40 = vpop.permute.xlu1 %495  ;;  %7696 = vst [vmem:[#allocation83_spill] sm:$0xff] %v4541_v0 }
 0x1f4   : > { %7693 = vst [vmem:[#allocation80_spill] sm:$0xff] %v4525_v40  ;;  %v4531_v17 = vpop.permute.xlu0 %737 }
 0x1f5   : > { %739 = vrot.lane.b32.xlu1 %v4033_v14, %s3723_s19  ;;  %v4553_v14 = vadd.f32 %v4185_v52, %v3927_v6  ;;  %v7704_v52 = vld [vmem:[#allocation25_spill] sm:$0xff] }
 0x1f6   : > { %1069 = vrot.lane.b32.xlu0 %v4529_v33, %s3724_s20 }
 0x1f7   : > { %v4537_v43 = vpop.permute.xlu1 %563  ;;  %7699 = vst [vmem:[#allocation86_spill] sm:$0xff] %v4553_v14 }
 0x1f8   : > { %7695 = vst [vmem:[#allocation82_spill] sm:$0xff] %v4537_v43  ;;  %v4543_v27 = vpop.permute.xlu0 %741  ;;  %v7716_v43 = vld [vmem:[#allocation7_spill] sm:$0xff] }
 0x1f9   : > { %7697 = vst [vmem:[#allocation84_spill] sm:$0xff] %v4543_v27  ;;  %743 = vrot.lane.b32.xlu1 %v4045_v13, %s3723_s19  ;;  %v4565_v13 = vadd.f32 %v4193_v9, %v3941_v10 }
 0x1fa   : > { %1073 = vrot.lane.b32.xlu0 %v4541_v0, %s3724_s20 }
 0x1fb   : > { %v4549_v48 = vpop.permute.xlu1 %567  ;;  %7702 = vst [vmem:[#allocation89_spill] sm:$0xff] %v4565_v13 }
 0x1fc   : > { %7698 = vst [vmem:[#allocation85_spill] sm:$0xff] %v4549_v48  ;;  %v4555_v33 = vpop.permute.xlu0 %745 }
 0x1fd   : > { %7700 = vst [vmem:[#allocation87_spill] sm:$0xff] %v4555_v33  ;;  %747 = vrot.lane.b32.xlu1 %v4057_v1, %s3723_s19  ;;  %v4575_v1 = vadd.f32 %v7704_v52, %v3776_v20 }
 0x1fe   : > { %1077 = vrot.lane.b32.xlu0 %v4553_v14, %s3724_s20 }
 0x1ff   : > { %v4561_v49 = vpop.permute.xlu1 %571  ;;  %7705 = vst [vmem:[#allocation25_spill] sm:$0xff] %v4575_v1 }
 0x200   : > { %7701 = vst [vmem:[#allocation88_spill] sm:$0xff] %v4561_v49  ;;  %v4567_v0 = vpop.permute.xlu0 %749  ;;  %v4581_v49 = vadd.f32 %v4201_v22, %v3959_v16 }
 0x201   : > { %7703 = vst [vmem:[#allocation90_spill] sm:$0xff] %v4567_v0  ;;  %751 = vrot.lane.b32.xlu1 %v4071_v15, %s3723_s19  ;;  %v7709_v15 = vld [vmem:[#allocation6_spill] sm:$0xff] }
 0x202   : > { %1081 = vrot.lane.b32.xlu0 %v4565_v13, %s3724_s20  ;;  %7707 = vst [vmem:[#allocation92_spill] sm:$0xff] %v4581_v49  ;;  %v7710_v13 = vld [vmem:[#allocation26_spill] sm:$0xff] }
 0x203   : > { %v4577_v57 = vpop.permute.xlu1 %575  ;;  %v4591_v14 = vadd.f32 %v7710_v13, %v7709_v15 }
 0x204   : > { %7706 = vst [vmem:[#allocation91_spill] sm:$0xff] %v4577_v57  ;;  %v4583_v9 = vpop.permute.xlu0 %753  ;;  %v7713_v57 = vld [vmem:[#allocation36_spill] sm:$0xff] }
 0x205   : > { %7708 = vst [vmem:[#allocation93_spill] sm:$0xff] %v4583_v9  ;;  %875 = vrot.lane.b32.xlu1 %v4575_v1, %s3724_s20  ;;  %7711 = vst [vmem:[#allocation6_spill] sm:$0xff] %v4591_v14  ;;  %v4597_v48 = vadd.f32 %v7713_v57, %v3977_v26 }
 0x206   : > { %1085 = vrot.lane.b32.xlu0 %v4581_v49, %s3724_s20  ;;  %v7717_v49 = vld [vmem:[#allocation27_spill] sm:$0xff] }
 0x207   : > { %v4593_v52 = vpop.permute.xlu1 %579  ;;  %7714 = vst [vmem:[#allocation36_spill] sm:$0xff] %v4597_v48  ;;  %v4607_v1 = vadd.f32 %v7717_v49, %v7716_v43 }
 0x208   : > { %7712 = vst [vmem:[#allocation26_spill] sm:$0xff] %v4593_v52  ;;  %v4599_v22 = vpop.permute.xlu0 %877  ;;  %v4613_v52 = vadd.f32 %v4217_v19, %v3995_v31 }
 0x209   : > { %7715 = vst [vmem:[#allocation94_spill] sm:$0xff] %v4599_v22  ;;  %879 = vrot.lane.b32.xlu1 %v4591_v14, %s3724_s20  ;;  %7718 = vst [vmem:[#allocation7_spill] sm:$0xff] %v4607_v1  ;;  %v7722_v22 = vld [vmem:[#allocation8_spill] sm:$0xff]  ;;  %v7723_v14 = vld [vmem:[#allocation29_spill] sm:$0xff] }
 0x20a   : > { %1089 = vrot.lane.b32.xlu0 %v4597_v48, %s3724_s20  ;;  %7720 = vst [vmem:[#allocation95_spill] sm:$0xff] %v4613_v52  ;;  %v4623_v48 = vadd.f32 %v7723_v14, %v7722_v22 }
 0x20b   : > { %v4609_v13 = vpop.permute.xlu1 %583 }
 0x20c   : > { %7719 = vst [vmem:[#allocation27_spill] sm:$0xff] %v4609_v13  ;;  %v4615_v57 = vpop.permute.xlu0 %881  ;;  %7724 = vst [vmem:[#allocation8_spill] sm:$0xff] %v4623_v48  ;;  %v7726_v13 = vld [vmem:[#allocation38_spill] sm:$0xff] }
 0x20d   : > { %7721 = vst [vmem:[#allocation96_spill] sm:$0xff] %v4615_v57  ;;  %883 = vrot.lane.b32.xlu1 %v4607_v1, %s3724_s20  ;;  %v4629_v9 = vadd.f32 %v7726_v13, %v4013_v38  ;;  %v7729_v57 = vld [vmem:[#allocation9_spill] sm:$0xff]  ;;  %v7730_v1 = vld [vmem:[#allocation30_spill] sm:$0xff]  ;;  %v7734_v13 = vld [vmem:[#allocation11_spill] sm:$0xff] }
 0x20e   : > { %1093 = vrot.lane.b32.xlu0 %v4613_v52, %s3724_s20  ;;  %v4639_v52 = vadd.f32 %v7730_v1, %v7729_v57  ;;  %v7739_v1 = vld [vmem:[#allocation12_spill] sm:$0xff] }
 0x20f   : > { %v4625_v49 = vpop.permute.xlu1 %587  ;;  %7727 = vst [vmem:[#allocation38_spill] sm:$0xff] %v4629_v9 }
 0x210   : > { %7725 = vst [vmem:[#allocation29_spill] sm:$0xff] %v4625_v49  ;;  %v4631_v19 = vpop.permute.xlu0 %885  ;;  %7731 = vst [vmem:[#allocation9_spill] sm:$0xff] %v4639_v52  ;;  %v7735_v49 = vld [vmem:[#allocation31_spill] sm:$0xff] }
 0x211   : > { %7728 = vst [vmem:[#allocation97_spill] sm:$0xff] %v4631_v19  ;;  %887 = vrot.lane.b32.xlu1 %v4623_v48, %s3724_s20  ;;  %v4649_v19 = vadd.f32 %v7735_v49, %v7734_v13  ;;  %v7744_v49 = vld [vmem:[#allocation13_spill] sm:$0xff] }
 0x212   : > { %1097 = vrot.lane.b32.xlu0 %v4629_v9, %s3724_s20  ;;  %v7740_v9 = vld [vmem:[#allocation28_spill] sm:$0xff] }
 0x213   : > { %v4641_v14 = vpop.permute.xlu1 %591  ;;  %7736 = vst [vmem:[#allocation11_spill] sm:$0xff] %v4649_v19  ;;  %v4659_v31 = vadd.f32 %v7740_v9, %v7739_v1  ;;  %v7749_v9 = vld [vmem:[#allocation14_spill] sm:$0xff] }
 0x214   : > { %7732 = vst [vmem:[#allocation30_spill] sm:$0xff] %v4641_v14  ;;  %v4643_v0 = vpop.permute.xlu0 %889 }
 0x215   : > { %7733 = vst [vmem:[#allocation98_spill] sm:$0xff] %v4643_v0  ;;  %891 = vrot.lane.b32.xlu1 %v4639_v52, %s3724_s20  ;;  %7741 = vst [vmem:[#allocation12_spill] sm:$0xff] %v4659_v31  ;;  %v7745_v52 = vld [vmem:[#allocation32_spill] sm:$0xff] }
 0x216   : > { %v4669_v40 = vadd.f32 %v7745_v52, %v7744_v49  ;;  %v7754_v52 = vld [vmem:[#allocation15_spill] sm:$0xff] }
 0x217   : > { %v4651_v38 = vpop.permute.xlu1 %595 }
 0x218   : > { %7737 = vst [vmem:[#allocation31_spill] sm:$0xff] %v4651_v38  ;;  %v4653_v48 = vpop.permute.xlu0 %893  ;;  %7746 = vst [vmem:[#allocation13_spill] sm:$0xff] %v4669_v40 }
 0x219   : > { %7738 = vst [vmem:[#allocation99_spill] sm:$0xff] %v4653_v48  ;;  %895 = vrot.lane.b32.xlu1 %v4649_v19, %s3724_s20  ;;  %v7750_v19 = vld [vmem:[#allocation33_spill] sm:$0xff] }
 0x21a   : > { %v4679_v33 = vadd.f32 %v7750_v19, %v7749_v9  ;;  %v7759_v19 = vld [vmem:[#allocation16_spill] sm:$0xff] }
 0x21b   : > { %v4661_v14 = vpop.permute.xlu1 %599 }
 0x21c   : > { %7742 = vst [vmem:[#allocation28_spill] sm:$0xff] %v4661_v14  ;;  %v4663_v0 = vpop.permute.xlu0 %897  ;;  %7751 = vst [vmem:[#allocation14_spill] sm:$0xff] %v4679_v33 }
 0x21d   : > { %7743 = vst [vmem:[#allocation100_spill] sm:$0xff] %v4663_v0  ;;  %899 = vrot.lane.b32.xlu1 %v4659_v31, %s3724_s20  ;;  %v7755_v31 = vld [vmem:[#allocation34_spill] sm:$0xff] }
 0x21e   : > { %v4689_v26 = vadd.f32 %v7755_v31, %v7754_v52  ;;  %v7764_v31 = vld [vmem:[#allocation17_spill] sm:$0xff] }
 0x21f   : > { %v4671_v38 = vpop.permute.xlu1 %603 }
 0x220   : > { %7747 = vst [vmem:[#allocation32_spill] sm:$0xff] %v4671_v38  ;;  %v4673_v48 = vpop.permute.xlu0 %901  ;;  %7756 = vst [vmem:[#allocation15_spill] sm:$0xff] %v4689_v26 }
 0x221   : > { %7748 = vst [vmem:[#allocation101_spill] sm:$0xff] %v4673_v48  ;;  %903 = vrot.lane.b32.xlu1 %v4669_v40, %s3724_s20  ;;  %v7760_v40 = vld [vmem:[#allocation35_spill] sm:$0xff] }
 0x222   : > { %v4699_v56 = vadd.f32 %v7760_v40, %v7759_v19  ;;  %v7769_v40 = vld [vmem:[#allocation18_spill] sm:$0xff] }
 0x223   : > { %v4681_v14 = vpop.permute.xlu1 %607 }
 0x224   : > { %7752 = vst [vmem:[#allocation33_spill] sm:$0xff] %v4681_v14  ;;  %v4683_v0 = vpop.permute.xlu0 %905  ;;  %7761 = vst [vmem:[#allocation16_spill] sm:$0xff] %v4699_v56 }
 0x225   : > { %7753 = vst [vmem:[#allocation102_spill] sm:$0xff] %v4683_v0  ;;  %907 = vrot.lane.b32.xlu1 %v4679_v33, %s3724_s20  ;;  %v7765_v33 = vld [vmem:[#allocation37_spill] sm:$0xff] }
 0x226   : > { %v4709_v27 = vadd.f32 %v7765_v33, %v7764_v31  ;;  %v7773_v33 = vld [vmem:[#allocation19_spill] sm:$0xff] }
 0x227   : > { %v4691_v38 = vpop.permute.xlu1 %611 }
 0x228   : > { %7757 = vst [vmem:[#allocation34_spill] sm:$0xff] %v4691_v38  ;;  %v4693_v48 = vpop.permute.xlu0 %909  ;;  %7766 = vst [vmem:[#allocation17_spill] sm:$0xff] %v4709_v27 }
 0x229   : > { %7758 = vst [vmem:[#allocation103_spill] sm:$0xff] %v4693_v48  ;;  %911 = vrot.lane.b32.xlu1 %v4689_v26, %s3724_s20  ;;  %v4719_v26 = vadd.f32 %v4239_v12, %v7769_v40  ;;  %v7777_v12 = vld [vmem:[#allocation21_spill] sm:$0xff] }
 0x22b   : > { %v4701_v14 = vpop.permute.xlu1 %615  ;;  %7770 = vst [vmem:[#allocation18_spill] sm:$0xff] %v4719_v26 }
 0x22c   : > { %7762 = vst [vmem:[#allocation35_spill] sm:$0xff] %v4701_v14  ;;  %v4703_v0 = vpop.permute.xlu0 %913 }
 0x22d   : > { %7763 = vst [vmem:[#allocation104_spill] sm:$0xff] %v4703_v0  ;;  %915 = vrot.lane.b32.xlu1 %v4699_v56, %s3724_s20  ;;  %v4729_v56 = vadd.f32 %v4255_v28, %v7773_v33  ;;  %v7780_v28 = vld [vmem:[#allocation23_spill] sm:$0xff] }
 0x22f   : > { %v4711_v38 = vpop.permute.xlu1 %619  ;;  %7774 = vst [vmem:[#allocation19_spill] sm:$0xff] %v4729_v56 }
 0x230   : > { %7767 = vst [vmem:[#allocation37_spill] sm:$0xff] %v4711_v38  ;;  %v4713_v48 = vpop.permute.xlu0 %917 }
 0x231   : > { %7768 = vst [vmem:[#allocation105_spill] sm:$0xff] %v4713_v48  ;;  %919 = vrot.lane.b32.xlu1 %v4709_v27, %s3724_s20  ;;  %v4739_v27 = vadd.f32 %v4277_v30, %v7777_v12  ;;  %v4759_v30 = vadd.f32 %v4321_v35, %v3776_v20 }
 0x233   : > { %v4721_v14 = vpop.permute.xlu1 %623  ;;  %7778 = vst [vmem:[#allocation21_spill] sm:$0xff] %v4739_v27  ;;  %7783 = vst [vmem:[#allocation112_spill] sm:$0xff] %v4759_v30 }
 0x234   : > { %7771 = vst [vmem:[#allocation106_spill] sm:$0xff] %v4721_v14  ;;  %v4723_v0 = vpop.permute.xlu0 %921 }
 0x235   : > { %7772 = vst [vmem:[#allocation107_spill] sm:$0xff] %v4723_v0  ;;  %923 = vrot.lane.b32.xlu1 %v4719_v26, %s3724_s20  ;;  %v4749_v26 = vadd.f32 %v4299_v61, %v7780_v28  ;;  %v4769_v61 = vadd.f32 %v4343_v24, %v7709_v15  ;;  %v4786_v24 = vadd.f32 %v4415_v3, %v3782_v23 }
 0x237   : > { %v4731_v38 = vpop.permute.xlu1 %691  ;;  %7781 = vst [vmem:[#allocation23_spill] sm:$0xff] %v4749_v26  ;;  %7785 = vst [vmem:[#allocation114_spill] sm:$0xff] %v4769_v61 }
 0x238   : > { %7775 = vst [vmem:[#allocation108_spill] sm:$0xff] %v4731_v38  ;;  %v4733_v48 = vpop.permute.xlu0 %925 }
 0x239   : > { %7776 = vst [vmem:[#allocation109_spill] sm:$0xff] %v4733_v48  ;;  %927 = vrot.lane.b32.xlu1 %v4729_v56, %s3724_s20 }
 0x23b   : > { %v4741_v14 = vpop.permute.xlu1 %695 }
 0x23c   : > { %v4743_v0 = vpop.permute.xlu0 %929 }
 0x23d   : > { %7779 = vst [vmem:[#allocation110_spill] sm:$0xff] %v4743_v0  ;;  %931 = vrot.lane.b32.xlu1 %v4739_v27, %s3724_s20 }
 0x23f   : > { %v4751_v38 = vpop.permute.xlu1 %699 }
 0x240   : > { %v4753_v48 = vpop.permute.xlu0 %933 }
 0x241   : > { %7782 = vst [vmem:[#allocation111_spill] sm:$0xff] %v4753_v48  ;;  %935 = vrot.lane.b32.xlu1 %v4749_v26, %s3724_s20  ;;  %v4773_v48 = vadd.f32 %v4404_v7, %v3778_v21 }
 0x243   : > { %v4761_v56 = vpop.permute.xlu1 %703 }
 0x244   : > { %v4763_v0 = vpop.permute.xlu0 %937 }
 0x245   : > { %7784 = vst [vmem:[#allocation113_spill] sm:$0xff] %v4763_v0  ;;  %1035 = vrot.lane.b32.xlu1 %v4759_v30, %s3724_s20  ;;  %v4782_v0 = vadd.f32 %v4365_v29, %v7716_v43  ;;  %v4800_v29 = vadd.f32 %v4426_v55, %v3786_v25 }
 0x247   : > { %v4775_v26 = vpop.permute.xlu1 %707  ;;  %7786 = vst [vmem:[#allocation115_spill] sm:$0xff] %v4782_v0 }
 0x248   : > { %v1038_v27 = vpop.permute.xlu0 %1037 }
 0x249   : > { %v1132_v35 = vsub.f32 %v4773_v48, %v1038_v27  ;;  %1039 = vrot.lane.b32.xlu1 %v4769_v61, %s3724_s20  ;;  %v4796_v27 = vadd.f32 %v4387_v63, %v7722_v22  ;;  %v4814_v63 = vadd.f32 %v4437_v60, %v3791_v32 }
 0x24b   : > { %1197 = vrot.lane.b32.xlu0 %v1132_v35, %s3725_s21  ;;  %v4789_v7 = vpop.permute.xlu1 %711  ;;  %7787 = vst [vmem:[#allocation116_spill] sm:$0xff] %v4796_v27  ;;  %7789 = vst [vmem:[#allocation118_spill] sm:$0xff] %v4814_v63 }
 0x24c   : > { %v1042_v21 = vpop.permute.xlu0 %1041 }
 0x24d   : > { %v1134_v30 = vsub.f32 %v4786_v24, %v1042_v21  ;;  %1043 = vrot.lane.b32.xlu1 %v4782_v0, %s3724_s20  ;;  %v4810_v21 = vadd.f32 %v4399_v8, %v7729_v57  ;;  %v4828_v8 = vadd.f32 %v4448_v41, %v3795_v37 }
 0x24f   : > { %1201 = vrot.lane.b32.xlu0 %v1134_v30, %s3725_s21  ;;  %v4803_v3 = vpop.permute.xlu1 %715  ;;  %7788 = vst [vmem:[#allocation117_spill] sm:$0xff] %v4810_v21  ;;  %7791 = vst [vmem:[#allocation120_spill] sm:$0xff] %v4828_v8 }
 0x250   : > { %v1046_v35 = vpop.permute.xlu0 %1045 }
 0x251   : > { %v1136_v61 = vsub.f32 %v4800_v29, %v1046_v35  ;;  %1047 = vrot.lane.b32.xlu1 %v4796_v27, %s3724_s20  ;;  %v4824_v35 = vadd.f32 %v4410_v18, %v7734_v13  ;;  %v4842_v18 = vadd.f32 %v4459_v45, %v3807_v42 }
 0x253   : > { %1205 = vrot.lane.b32.xlu0 %v1136_v61, %s3725_s21  ;;  %v4817_v55 = vpop.permute.xlu1 %719  ;;  %7790 = vst [vmem:[#allocation119_spill] sm:$0xff] %v4824_v35  ;;  %7793 = vst [vmem:[#allocation122_spill] sm:$0xff] %v4842_v18 }
 0x254   : > { %v1050_v30 = vpop.permute.xlu0 %1049 }
 0x255   : > { %v1138_v0 = vsub.f32 %v4814_v63, %v1050_v30  ;;  %1051 = vrot.lane.b32.xlu1 %v4810_v21, %s3724_s20  ;;  %v4838_v30 = vadd.f32 %v4421_v34, %v7739_v1  ;;  %v4856_v34 = vadd.f32 %v4471_v51, %v3829_v47 }
 0x257   : > { %1209 = vrot.lane.b32.xlu0 %v1138_v0, %s3725_s21  ;;  %v4831_v60 = vpop.permute.xlu1 %723  ;;  %7792 = vst [vmem:[#allocation121_spill] sm:$0xff] %v4838_v30  ;;  %7795 = vst [vmem:[#allocation124_spill] sm:$0xff] %v4856_v34 }
 0x258   : > { %v1054_v61 = vpop.permute.xlu0 %1053 }
 0x259   : > { %v1140_v27 = vsub.f32 %v4828_v8, %v1054_v61  ;;  %1055 = vrot.lane.b32.xlu1 %v4824_v35, %s3724_s20  ;;  %v4852_v61 = vadd.f32 %v4432_v39, %v7744_v49  ;;  %v4870_v39 = vadd.f32 %v4483_v62, %v3857_v53 }
 0x25b   : > { %1213 = vrot.lane.b32.xlu0 %v1140_v27, %s3725_s21  ;;  %v4845_v41 = vpop.permute.xlu1 %727  ;;  %7794 = vst [vmem:[#allocation123_spill] sm:$0xff] %v4852_v61  ;;  %7797 = vst [vmem:[#allocation126_spill] sm:$0xff] %v4870_v39 }
 0x25c   : > { %v1058_v0 = vpop.permute.xlu0 %1057 }
 0x25d   : > { %v1142_v21 = vsub.f32 %v4842_v18, %v1058_v0  ;;  %1059 = vrot.lane.b32.xlu1 %v4838_v30, %s3724_s20  ;;  %v4866_v0 = vadd.f32 %v4443_v4, %v7749_v9  ;;  %v4884_v4 = vadd.f32 %v4495_v5, %v3885_v59  ;;  %v7831_v18 = vld [vmem:[#allocation48_spill] sm:$0xff] }
 0x25f   : > { %1217 = vrot.lane.b32.xlu0 %v1142_v21, %s3725_s21  ;;  %v4859_v45 = vpop.permute.xlu1 %731  ;;  %7796 = vst [vmem:[#allocation125_spill] sm:$0xff] %v4866_v0  ;;  %7799 = vst [vmem:[#allocation128_spill] sm:$0xff] %v4884_v4 }
 0x260   : > { %v1062_v27 = vpop.permute.xlu0 %1061 }
 0x261   : > { %v1144_v35 = vsub.f32 %v4856_v34, %v1062_v27  ;;  %1063 = vrot.lane.b32.xlu1 %v4852_v61, %s3724_s20  ;;  %v4880_v27 = vadd.f32 %v4454_v36, %v7754_v52  ;;  %v4898_v36 = vadd.f32 %v4507_v46, %v3909_v2  ;;  %v7825_v34 = vld [vmem:[#allocation25_spill] sm:$0xff] }
 0x263   : > { %1221 = vrot.lane.b32.xlu0 %v1144_v35, %s3725_s21  ;;  %v4873_v51 = vpop.permute.xlu1 %735  ;;  %7798 = vst [vmem:[#allocation127_spill] sm:$0xff] %v4880_v27  ;;  %7801 = vst [vmem:[#allocation130_spill] sm:$0xff] %v4898_v36 }
 0x264   : > { %v1066_v21 = vpop.permute.xlu0 %1065 }
 0x265   : > { %v1146_v30 = vsub.f32 %v4870_v39, %v1066_v21  ;;  %1067 = vrot.lane.b32.xlu1 %v4866_v0, %s3724_s20  ;;  %v4894_v21 = vadd.f32 %v4465_v54, %v7759_v19  ;;  %v4912_v54 = vadd.f32 %v4519_v11, %v3927_v6 }
 0x267   : > { %1225 = vrot.lane.b32.xlu0 %v1146_v30, %s3725_s21  ;;  %v4887_v62 = vpop.permute.xlu1 %739  ;;  %7800 = vst [vmem:[#allocation129_spill] sm:$0xff] %v4894_v21  ;;  %7803 = vst [vmem:[#allocation132_spill] sm:$0xff] %v4912_v54 }
 0x268   : > { %v1070_v35 = vpop.permute.xlu0 %1069 }
 0x269   : > { %v1148_v61 = vsub.f32 %v4884_v4, %v1070_v35  ;;  %1071 = vrot.lane.b32.xlu1 %v4880_v27, %s3724_s20  ;;  %v4908_v35 = vadd.f32 %v4477_v58, %v7764_v31  ;;  %v4926_v58 = vadd.f32 %v4531_v17, %v3941_v10 }
 0x26b   : > { %1229 = vrot.lane.b32.xlu0 %v1148_v61, %s3725_s21  ;;  %v4901_v5 = vpop.permute.xlu1 %743  ;;  %7802 = vst [vmem:[#allocation131_spill] sm:$0xff] %v4908_v35  ;;  %7805 = vst [vmem:[#allocation134_spill] sm:$0xff] %v4926_v58 }
 0x26c   : > { %v1074_v30 = vpop.permute.xlu0 %1073 }
 0x26d   : > { %v1150_v0 = vsub.f32 %v4898_v36, %v1074_v30  ;;  %1075 = vrot.lane.b32.xlu1 %v4894_v21, %s3724_s20  ;;  %v4922_v30 = vadd.f32 %v4489_v50, %v7769_v40  ;;  %v7807_v50 = vld [vmem:[#allocation84_spill] sm:$0xff] }
 0x26f   : > { %1233 = vrot.lane.b32.xlu0 %v1150_v0, %s3725_s21  ;;  %v4915_v46 = vpop.permute.xlu1 %747  ;;  %7804 = vst [vmem:[#allocation133_spill] sm:$0xff] %v4922_v30 }
 0x270   : > { %v1078_v61 = vpop.permute.xlu0 %1077 }
 0x271   : > { %v1152_v27 = vsub.f32 %v4912_v54, %v1078_v61  ;;  %1079 = vrot.lane.b32.xlu1 %v4908_v35, %s3724_s20  ;;  %v4936_v61 = vadd.f32 %v4501_v44, %v7773_v33  ;;  %v4940_v35 = vadd.f32 %v7807_v50, %v3959_v16  ;;  %v7810_v44 = vld [vmem:[#allocation78_spill] sm:$0xff]  ;;  %v7813_v50 = vld [vmem:[#allocation87_spill] sm:$0xff] }
 0x273   : > { %1237 = vrot.lane.b32.xlu0 %v1152_v27, %s3725_s21  ;;  %v4929_v11 = vpop.permute.xlu1 %751  ;;  %7806 = vst [vmem:[#allocation135_spill] sm:$0xff] %v4936_v61  ;;  %7808 = vst [vmem:[#allocation84_spill] sm:$0xff] %v4940_v35 }
 0x274   : > { %v1082_v0 = vpop.permute.xlu0 %1081 }
 0x275   : > { %v1154_v21 = vsub.f32 %v4926_v58, %v1082_v0  ;;  %1083 = vrot.lane.b32.xlu1 %v4922_v30, %s3724_s20  ;;  %v7486_v0 = vmov 2   ;;  %v4951_v30 = vadd.f32 %v7810_v44, %v7777_v12  ;;  %v7812_v58 = vld [vmem:[#allocation20_spill] sm:$0xff]  ;;  %v7818_v44 = vld [vmem:[#allocation22_spill] sm:$0xff] }
 0x276   : > { %3675 = vset.pattern.permute.xlu1 %v7486_v0  ;;  %v4955_v36 = vadd.f32 %v7813_v50, %v7812_v58  ;;  %v7816_v0 = vld [vmem:[#allocation80_spill] sm:$0xff] }
 0x277   : > { %1241 = vrot.lane.b32.xlu0 %v1154_v21, %s3725_s21  ;;  %v4943_v17 = vpop.permute.xlu1 %875  ;;  %7811 = vst [vmem:[#allocation78_spill] sm:$0xff] %v4951_v30 }
 0x278   : > { %7809 = vst [vmem:[#allocation136_spill] sm:$0xff] %v4943_v17  ;;  %v1086_v27 = vpop.permute.xlu0 %1085  ;;  %7814 = vst [vmem:[#allocation20_spill] sm:$0xff] %v4955_v36 }
 0x279   : > { %v1156_v54 = vsub.f32 %v4940_v35, %v1086_v27  ;;  %1087 = vrot.lane.b32.xlu1 %v4936_v61, %s3724_s20  ;;  %v4965_v61 = vadd.f32 %v7816_v0, %v7780_v28  ;;  %v7819_v35 = vld [vmem:[#allocation90_spill] sm:$0xff] }
 0x27a   : > { %v4969_v4 = vadd.f32 %v7819_v35, %v7818_v44 }
 0x27b   : > { %1245 = vrot.lane.b32.xlu0 %v1156_v54, %s3725_s21  ;;  %v4958_v21 = vpop.permute.xlu1 %879  ;;  %7817 = vst [vmem:[#allocation80_spill] sm:$0xff] %v4965_v61 }
 0x27c   : > { %7815 = vst [vmem:[#allocation87_spill] sm:$0xff] %v4958_v21  ;;  %v1090_v17 = vpop.permute.xlu0 %1089  ;;  %7820 = vst [vmem:[#allocation22_spill] sm:$0xff] %v4969_v4 }
 0x27d   : > { %v1158_v27 = vsub.f32 %v4955_v36, %v1090_v17  ;;  %1091 = vrot.lane.b32.xlu1 %v4951_v30, %s3724_s20  ;;  %v7821_v17 = vld [vmem:[#allocation24_spill] sm:$0xff]  ;;  %v7822_v30 = vld [vmem:[#allocation93_spill] sm:$0xff] }
 0x27e   : > { %v4979_v36 = vadd.f32 %v7822_v30, %v7821_v17  ;;  %v7829_v30 = vld [vmem:[#allocation46_spill] sm:$0xff] }
 0x27f   : > { %1249 = vrot.lane.b32.xlu0 %v1158_v27, %s3725_s21  ;;  %v4972_v50 = vpop.permute.xlu1 %883 }
 0x280   : > { %v1094_v54 = vpop.permute.xlu0 %1093  ;;  %7823 = vst [vmem:[#allocation90_spill] sm:$0xff] %v4979_v36 }
 0x281   : > { %v1160_v21 = vsub.f32 %v4969_v4, %v1094_v54  ;;  %1095 = vrot.lane.b32.xlu1 %v4965_v61, %s3724_s20  ;;  %v7827_v61 = vld [vmem:[#allocation44_spill] sm:$0xff] }
 0x283   : > { %1253 = vrot.lane.b32.xlu0 %v1160_v21, %s3725_s21  ;;  %v4982_v0 = vpop.permute.xlu1 %887 }
 0x284   : > { %v1098_v35 = vpop.permute.xlu0 %1097 }
 0x285   : > { %v1162_v39 = vsub.f32 %v4979_v36, %v1098_v35  ;;  %v7833_v35 = vld [vmem:[#allocation50_spill] sm:$0xff]  ;;  %v7835_v36 = vld [vmem:[#allocation52_spill] sm:$0xff] }
 0x287   : > { %1257 = vrot.lane.b32.xlu0 %v1162_v39, %s3725_s21  ;;  %v4986_v27 = vpop.permute.xlu1 %891 }
 0x288   : > { %7824 = vst [vmem:[#allocation24_spill] sm:$0xff] %v4986_v27 }
 0x28b   : > { %1556 = vperm.xlu0 %3676, %v7825_v34   ;;  %v4989_v54 = vpop.permute.xlu1 %895 }
 0x28c   : > { %7826 = vst [vmem:[#allocation93_spill] sm:$0xff] %v4989_v54  ;;  %v7837_v54 = vld [vmem:[#allocation54_spill] sm:$0xff] }
 0x28f   : > { %1568 = vperm.xlu0 %3676, %v7827_v61   ;;  %v4992_v4 = vpop.permute.xlu1 %899 }
 0x290   : > { %7828 = vst [vmem:[#allocation25_spill] sm:$0xff] %v4992_v4  ;;  %v7839_v4 = vld [vmem:[#allocation56_spill] sm:$0xff] }
 0x293   : > { %1576 = vperm.xlu0 %3676, %v7829_v30   ;;  %v4995_v21 = vpop.permute.xlu1 %903 }
 0x294   : > { %7830 = vst [vmem:[#allocation44_spill] sm:$0xff] %v4995_v21  ;;  %v7841_v21 = vld [vmem:[#allocation58_spill] sm:$0xff] }
 0x297   : > { %1584 = vperm.xlu0 %3676, %v7831_v18   ;;  %v4998_v8 = vpop.permute.xlu1 %907 }
 0x298   : > { %7832 = vst [vmem:[#allocation46_spill] sm:$0xff] %v4998_v8  ;;  %v7843_v8 = vld [vmem:[#allocation60_spill] sm:$0xff] }
 0x29b   : > { %1592 = vperm.xlu0 %3676, %v7833_v35   ;;  %v5001_v39 = vpop.permute.xlu1 %911 }
 0x29c   : > { %7834 = vst [vmem:[#allocation48_spill] sm:$0xff] %v5001_v39  ;;  %v7845_v39 = vld [vmem:[#allocation62_spill] sm:$0xff] }
 0x29f   : > { %1600 = vperm.xlu0 %3676, %v7835_v36   ;;  %v5004_v34 = vpop.permute.xlu1 %915 }
 0x2a0   : > { %7836 = vst [vmem:[#allocation50_spill] sm:$0xff] %v5004_v34 }
 0x2a3   : > { %1608 = vperm.xlu0 %3676, %v7837_v54   ;;  %v5007_v61 = vpop.permute.xlu1 %919  ;;  %v7847_v54 = vld [vmem:[#allocation108_spill] sm:$0xff] }
 0x2a4   : > { %7838 = vst [vmem:[#allocation52_spill] sm:$0xff] %v5007_v61  ;;  %v5023_v34 = vadd.f32 %v7847_v54, %v3776_v20  ;;  %v7848_v61 = vld [vmem:[#allocation64_spill] sm:$0xff]  ;;  %v791_v54 = vadd.f32 %v4751_v38, %v7716_v43  ;;  %v795_v38 = vadd.f32 %v4775_v26, %v7729_v57 }
 0x2a7   : > { %1616 = vperm.xlu0 %3676, %v7839_v4   ;;  %v5010_v30 = vpop.permute.xlu1 %923 }
 0x2a8   : > { %7840 = vst [vmem:[#allocation54_spill] sm:$0xff] %v5010_v30 }
 0x2ab   : > { %1624 = vperm.xlu0 %3676, %v7841_v21   ;;  %v5013_v18 = vpop.permute.xlu1 %927  ;;  %v5029_v21 = vadd.f32 %v4741_v14, %v7709_v15 }
 0x2ac   : > { %7842 = vst [vmem:[#allocation56_spill] sm:$0xff] %v5013_v18 }
 0x2af   : > { %1632 = vperm.xlu0 %3676, %v7843_v8   ;;  %v5016_v35 = vpop.permute.xlu1 %931  ;;  %v7849_v8 = vld [vmem:[#allocation66_spill] sm:$0xff] }
 0x2b0   : > { %7844 = vst [vmem:[#allocation58_spill] sm:$0xff] %v5016_v35 }
 0x2b3   : > { %1640 = vperm.xlu0 %3676, %v7845_v39   ;;  %v5019_v36 = vpop.permute.xlu1 %935 }
 0x2b4   : > { %7846 = vst [vmem:[#allocation60_spill] sm:$0xff] %v5019_v36 }
 0x2b7   : > { %1648 = vperm.xlu0 %3676, %v7848_v61   ;;  %v1036_v4 = vpop.permute.xlu1 %1035  ;;  %v7850_v61 = vld [vmem:[#allocation68_spill] sm:$0xff] }
 0x2b8   : > { %v1131_v30 = vsub.f32 %v5023_v34, %v1036_v4 }
 0x2ba   : > { %1195 = vrot.lane.b32.xlu1 %v1131_v30, %s3725_s21  ;;  %v793_v30 = vadd.f32 %v4761_v56, %v7722_v22  ;;  %v797_v56 = vadd.f32 %v4789_v7, %v7734_v13 }
 0x2bb   : > { %1656 = vperm.xlu0 %3676, %v7849_v8   ;;  %v1040_v39 = vpop.permute.xlu1 %1039  ;;  %v7852_v8 = vld [vmem:[#allocation69_spill] sm:$0xff] }
 0x2bc   : > { %v1133_v36 = vsub.f32 %v5029_v21, %v1040_v39 }
 0x2bd   : > { %v5034_v35 = vpop.permute.xlu0 %1197 }
 0x2be   : > { %1199 = vrot.lane.b32.xlu1 %v1133_v36, %s3725_s21  ;;  %v7853_v36 = vld [vmem:[#allocation70_spill] sm:$0xff] }
 0x2bf   : > { %1664 = vperm.xlu0 %3676, %v7850_v61   ;;  %v1044_v4 = vpop.permute.xlu1 %1043 }
 0x2c0   : > { %v1135_v18 = vsub.f32 %v791_v54, %v1044_v4 }
 0x2c1   : > { %v5040_v14 = vpop.permute.xlu0 %1201 }
 0x2c2   : > { %7851 = vst [vmem:[#allocation62_spill] sm:$0xff] %v5040_v14  ;;  %1203 = vrot.lane.b32.xlu1 %v1135_v18, %s3725_s21  ;;  %v7501_v18 = vmov 3  }
 0x2c3   : > { %1672 = vperm.xlu0 %3676, %v7852_v8   ;;  %v1048_v39 = vpop.permute.xlu1 %1047 }
 0x2c4   : > { %v1137_v63 = vsub.f32 %v793_v30, %v1048_v39 }
 0x2c5   : > { %v5046_v27 = vpop.permute.xlu0 %1205 }
 0x2c6   : > { %1207 = vrot.lane.b32.xlu1 %v1137_v63, %s3725_s21  ;;  %v799_v63 = vadd.f32 %v4803_v3, %v7739_v1  ;;  %v803_v3 = vadd.f32 %v4831_v60, %v7749_v9  ;;  %v807_v60 = vadd.f32 %v4859_v45, %v7759_v19 }
 0x2c7   : > { %1680 = vperm.xlu0 %3676, %v7853_v36   ;;  %v1052_v61 = vpop.permute.xlu1 %1051 }
 0x2c8   : > { %v1139_v4 = vsub.f32 %v795_v38, %v1052_v61 }
 0x2c9   : > { %v5052_v14 = vpop.permute.xlu0 %1209 }
 0x2ca   : > { %1211 = vrot.lane.b32.xlu1 %v1139_v4, %s3725_s21  ;;  %v801_v4 = vadd.f32 %v4817_v55, %v7744_v49  ;;  %v805_v55 = vadd.f32 %v4845_v41, %v7754_v52 }
 0x2cb   : > { %3679 = vset.pattern.permute.xlu0 %v7501_v18  ;;  %v1056_v8 = vpop.permute.xlu1 %1055 }
 0x2cc   : > { %v1141_v39 = vsub.f32 %v797_v56, %v1056_v8  ;;  %1890 = vperm.xlu0 %3679, %v4773_v48  }
 0x2cd   : > { %v5059_v26 = vpop.permute.xlu0 %1213 }
 0x2ce   : > { %7854 = vst [vmem:[#allocation108_spill] sm:$0xff] %v5059_v26  ;;  %1215 = vrot.lane.b32.xlu1 %v1141_v39, %s3725_s21 }
 0x2cf   : > { %v1060_v36 = vpop.permute.xlu1 %1059 }
 0x2d0   : > { %v1143_v61 = vsub.f32 %v799_v63, %v1060_v36  ;;  %1905 = vperm.xlu0 %3679, %v791_v54  }
 0x2d1   : > { %v5064_v7 = vpop.permute.xlu0 %1217 }
 0x2d2   : > { %7855 = vst [vmem:[#allocation64_spill] sm:$0xff] %v5064_v7  ;;  %1219 = vrot.lane.b32.xlu1 %v1143_v61, %s3725_s21 }
 0x2d3   : > { %v1064_v8 = vpop.permute.xlu1 %1063 }
 0x2d4   : > { %v1145_v18 = vsub.f32 %v801_v4, %v1064_v8  ;;  %1915 = vperm.xlu0 %3679, %v793_v30  }
 0x2d5   : > { %v5069_v48 = vpop.permute.xlu0 %1221 }
 0x2d6   : > { %7856 = vst [vmem:[#allocation66_spill] sm:$0xff] %v5069_v48  ;;  %1223 = vrot.lane.b32.xlu1 %v1145_v18, %s3725_s21 }
 0x2d7   : > { %v1068_v39 = vpop.permute.xlu1 %1067 }
 0x2d8   : > { %v1147_v36 = vsub.f32 %v803_v3, %v1068_v39  ;;  %1925 = vperm.xlu0 %3679, %v795_v38   ;;  %v809_v38 = vadd.f32 %v4873_v51, %v7764_v31  ;;  %v813_v51 = vadd.f32 %v4901_v5, %v7773_v33 }
 0x2d9   : > { %v5074_v54 = vpop.permute.xlu0 %1225 }
 0x2da   : > { %7857 = vst [vmem:[#allocation68_spill] sm:$0xff] %v5074_v54  ;;  %1227 = vrot.lane.b32.xlu1 %v1147_v36, %s3725_s21 }
 0x2db   : > { %v1072_v61 = vpop.permute.xlu1 %1071 }
 0x2dc   : > { %v1149_v8 = vsub.f32 %v805_v55, %v1072_v61  ;;  %1935 = vperm.xlu0 %3679, %v797_v56   ;;  %v811_v56 = vadd.f32 %v4887_v62, %v7769_v40 }
 0x2dd   : > { %v5079_v30 = vpop.permute.xlu0 %1229 }
 0x2de   : > { %7858 = vst [vmem:[#allocation69_spill] sm:$0xff] %v5079_v30  ;;  %1231 = vrot.lane.b32.xlu1 %v1149_v8, %s3725_s21 }
 0x2df   : > { %v1076_v18 = vpop.permute.xlu1 %1075 }
 0x2e0   : > { %v1151_v39 = vsub.f32 %v807_v60, %v1076_v18  ;;  %1945 = vperm.xlu0 %3679, %v799_v63  }
 0x2e1   : > { %v5086_v54 = vpop.permute.xlu0 %1233 }
 0x2e2   : > { %7859 = vst [vmem:[#allocation70_spill] sm:$0xff] %v5086_v54  ;;  %1235 = vrot.lane.b32.xlu1 %v1151_v39, %s3725_s21 }
 0x2e3   : > { %v1080_v41 = vpop.permute.xlu1 %1079 }
 0x2e4   : > { %v1153_v36 = vsub.f32 %v809_v38, %v1080_v41  ;;  %1955 = vperm.xlu0 %3679, %v801_v4   ;;  %v815_v4 = vadd.f32 %v4915_v46, %v7777_v12  ;;  %v7863_v46 = vld [vmem:[#allocation82_spill] sm:$0xff] }
 0x2e5   : > { %v5092_v61 = vpop.permute.xlu0 %1237 }
 0x2e6   : > { %1239 = vrot.lane.b32.xlu1 %v1153_v36, %s3725_s21  ;;  %7860 = vst [vmem:[#allocation137_spill] sm:$0xff] %v5092_v61 }
 0x2e7   : > { %v1084_v45 = vpop.permute.xlu1 %1083 }
 0x2e8   : > { %v1155_v8 = vsub.f32 %v811_v56, %v1084_v45  ;;  %1965 = vperm.xlu0 %3679, %v803_v3   ;;  %v817_v3 = vadd.f32 %v4929_v11, %v7780_v28  ;;  %v7865_v11 = vld [vmem:[#allocation85_spill] sm:$0xff] }
 0x2e9   : > { %v5099_v39 = vpop.permute.xlu0 %1241 }
 0x2ea   : > { %1243 = vrot.lane.b32.xlu1 %v1155_v8, %s3725_s21  ;;  %7861 = vst [vmem:[#allocation138_spill] sm:$0xff] %v5099_v39  ;;  %v7925_v39 = vmov 2  }
 0x2eb   : > { %v1088_v63 = vpop.permute.xlu1 %1087 }
 0x2ec   : > { %v1157_v18 = vsub.f32 %v813_v51, %v1088_v63  ;;  %1975 = vperm.xlu0 %3679, %v805_v55   ;;  %v5110_v55 = vadd.f32 %v7863_v46, %v3776_v20  ;;  %v7868_v20 = vld [vmem:[#allocation41_spill] sm:$0xff] }
 0x2ed   : > { %v5105_v36 = vpop.permute.xlu0 %1245 }
 0x2ee   : > { %1247 = vrot.lane.b32.xlu1 %v1157_v18, %s3725_s21  ;;  %7862 = vst [vmem:[#allocation139_spill] sm:$0xff] %v5105_v36 }
 0x2ef   : > { %v1092_v62 = vpop.permute.xlu1 %1091 }
 0x2f0   : > { %v1159_v41 = vsub.f32 %v815_v4, %v1092_v62  ;;  %1985 = vperm.xlu0 %3679, %v807_v60   ;;  %v5117_v60 = vadd.f32 %v7865_v11, %v7709_v15  ;;  %v7870_v15 = vld [vmem:[#allocation43_spill] sm:$0xff]  ;;  %v7877_v11 = vld [vmem:[#allocation73_spill] sm:$0xff] }
 0x2f1   : > { %v5112_v8 = vpop.permute.xlu0 %1249 }
 0x2f2   : > { %1251 = vrot.lane.b32.xlu1 %v1159_v41, %s3725_s21  ;;  %7864 = vst [vmem:[#allocation82_spill] sm:$0xff] %v5112_v8  ;;  %v7871_v41 = vld [vmem:[#allocation112_spill] sm:$0xff] }
 0x2f3   : > { %v1096_v5 = vpop.permute.xlu1 %1095 }
 0x2f4   : > { %v1161_v45 = vsub.f32 %v817_v3, %v1096_v5  ;;  %1995 = vperm.xlu0 %3679, %v809_v38   ;;  %v7866_v38 = vld [vmem:[#allocation40_spill] sm:$0xff] }
 0x2f5   : > { %v5122_v63 = vadd.f32 %v7866_v38, %v3782_v23  ;;  %v5124_v18 = vpop.permute.xlu0 %1253  ;;  %v7502_v23 = vmov 1   ;;  %v7874_v5 = vld [vmem:[#allocation72_spill] sm:$0xff] }
 0x2f6   : > { %1255 = vrot.lane.b32.xlu1 %v1161_v45, %s3725_s21  ;;  %7867 = vst [vmem:[#allocation85_spill] sm:$0xff] %v5124_v18  ;;  %v7920_v18 = vld [vmem:[#allocation38_spill] sm:$0xff] }
 0x2f8   : > { %2005 = vperm.xlu0 %3679, %v811_v56   ;;  %v5129_v56 = vadd.f32 %v7868_v20, %v3786_v25  ;;  %v7873_v25 = vld [vmem:[#allocation45_spill] sm:$0xff] }
 0x2f9   : > { %v5131_v62 = vpop.permute.xlu0 %1257  ;;  %v7879_v20 = vld [vmem:[#allocation49_spill] sm:$0xff] }
 0x2fa   : > { %1325 = vperm.xlu1 %3675, %v5110_v55   ;;  %7869 = vst [vmem:[#allocation40_spill] sm:$0xff] %v5131_v62 }
 0x2fc   : > { %2015 = vperm.xlu0 %3679, %v813_v51   ;;  %v5136_v51 = vadd.f32 %v7870_v15, %v3791_v32  ;;  %v7876_v32 = vld [vmem:[#allocation47_spill] sm:$0xff]  ;;  %v7880_v15 = vld [vmem:[#allocation74_spill] sm:$0xff] }
 0x2fd   : > { %v5153_v46 = vadd.f32 %v7876_v32, %v3807_v42 }
 0x2fe   : > { %1335 = vperm.xlu1 %3675, %v5117_v60  }
 0x300   : > { %2025 = vperm.xlu0 %3679, %v815_v4  }
 0x302   : > { %1340 = vperm.xlu1 %3675, %v5122_v63  }
 0x304   : > { %2035 = vperm.xlu0 %3679, %v817_v3   ;;  %v5145_v3 = vadd.f32 %v7873_v25, %v3795_v37  ;;  %v5161_v37 = vadd.f32 %v7879_v20, %v3829_v47  ;;  %v7882_v25 = vld [vmem:[#allocation51_spill] sm:$0xff]  ;;  %v7886_v20 = vld [vmem:[#allocation76_spill] sm:$0xff] }
 0x305   : > { %v5169_v42 = vadd.f32 %v7882_v25, %v3857_v53  ;;  %v7889_v25 = vld [vmem:[#allocation77_spill] sm:$0xff] }
 0x306   : > { %1350 = vperm.xlu1 %3675, %v5129_v56  }
 0x308   : > { %3680 = vset.pattern.permute.xlu0 %v7502_v23  ;;  %v7888_v23 = vld [vmem:[#allocation55_spill] sm:$0xff] }
 0x309   : > { %2116 = vperm.xlu0 %3680, %v7871_v41   ;;  %v5185_v53 = vadd.f32 %v7888_v23, %v3909_v2  ;;  %v7895_v23 = vld [vmem:[#allocation81_spill] sm:$0xff] }
 0x30a   : > { %v5140_v4 = vpop.permute.xlu0 %1556  ;;  %1360 = vperm.xlu1 %3675, %v5136_v51  }
 0x30b   : > { %7872 = vst [vmem:[#allocation41_spill] sm:$0xff] %v5140_v4  ;;  %v7916_v4 = vld [vmem:[#allocation42_spill] sm:$0xff] }
 0x30d   : > { %2128 = vperm.xlu0 %3680, %v7874_v5   ;;  %v7883_v5 = vld [vmem:[#allocation75_spill] sm:$0xff] }
 0x30e   : > { %v5148_v45 = vpop.permute.xlu0 %1568  ;;  %1370 = vperm.xlu1 %3675, %v5145_v3  }
 0x30f   : > { %7875 = vst [vmem:[#allocation43_spill] sm:$0xff] %v5148_v45 }
 0x311   : > { %2136 = vperm.xlu0 %3680, %v7877_v11   ;;  %v7885_v11 = vld [vmem:[#allocation53_spill] sm:$0xff] }
 0x312   : > { %v5156_v38 = vpop.permute.xlu0 %1576  ;;  %1380 = vperm.xlu1 %3675, %v5153_v46   ;;  %v5177_v47 = vadd.f32 %v7885_v11, %v3885_v59  ;;  %v7892_v11 = vld [vmem:[#allocation79_spill] sm:$0xff] }
 0x313   : > { %7878 = vst [vmem:[#allocation112_spill] sm:$0xff] %v5156_v38 }
 0x315   : > { %2144 = vperm.xlu0 %3680, %v7880_v15  }
 0x316   : > { %v5164_v41 = vpop.permute.xlu0 %1584  ;;  %1390 = vperm.xlu1 %3675, %v5161_v37  }
 0x317   : > { %7881 = vst [vmem:[#allocation45_spill] sm:$0xff] %v5164_v41 }
 0x319   : > { %2152 = vperm.xlu0 %3680, %v7883_v5  }
 0x31a   : > { %v5172_v32 = vpop.permute.xlu0 %1592  ;;  %1400 = vperm.xlu1 %3675, %v5169_v42  }
 0x31b   : > { %7884 = vst [vmem:[#allocation72_spill] sm:$0xff] %v5172_v32  ;;  %v7891_v32 = vld [vmem:[#allocation57_spill] sm:$0xff] }
 0x31c   : > { %v5193_v59 = vadd.f32 %v7891_v32, %v3927_v6 }
 0x31d   : > { %2160 = vperm.xlu0 %3680, %v7886_v20  }
 0x31e   : > { %v5180_v15 = vpop.permute.xlu0 %1600  ;;  %1410 = vperm.xlu1 %3675, %v5177_v47  }
 0x31f   : > { %7887 = vst [vmem:[#allocation47_spill] sm:$0xff] %v5180_v15  ;;  %v7894_v15 = vld [vmem:[#allocation59_spill] sm:$0xff] }
 0x320   : > { %v5201_v2 = vadd.f32 %v7894_v15, %v3941_v10  ;;  %v7901_v10 = vld [vmem:[#allocation63_spill] sm:$0xff] }
 0x321   : > { %2168 = vperm.xlu0 %3680, %v7889_v25   ;;  %v5219_v15 = vadd.f32 %v7901_v10, %v7812_v58  ;;  %v7909_v58 = vld [vmem:[#allocation67_spill] sm:$0xff] }
 0x322   : > { %v5188_v5 = vpop.permute.xlu0 %1608  ;;  %1420 = vperm.xlu1 %3675, %v5185_v53   ;;  %v5239_v10 = vadd.f32 %v7909_v58, %v7821_v17  ;;  %v7917_v58 = vld [vmem:[#allocation95_spill] sm:$0xff] }
 0x323   : > { %7890 = vst [vmem:[#allocation73_spill] sm:$0xff] %v5188_v5  ;;  %v7897_v5 = vld [vmem:[#allocation61_spill] sm:$0xff]  ;;  %7902 = vst [vmem:[#allocation53_spill] sm:$0xff] %v5219_v15 }
 0x324   : > { %v5209_v6 = vadd.f32 %v7897_v5, %v3959_v16  ;;  %v7905_v16 = vld [vmem:[#allocation65_spill] sm:$0xff]  ;;  %7910 = vst [vmem:[#allocation57_spill] sm:$0xff] %v5239_v10 }
 0x325   : > { %2176 = vperm.xlu0 %3680, %v7892_v11   ;;  %v7899_v11 = vld [vmem:[#allocation83_spill] sm:$0xff]  ;;  %v5229_v5 = vadd.f32 %v7905_v16, %v7818_v44  ;;  %v7913_v16 = vld [vmem:[#allocation36_spill] sm:$0xff] }
 0x326   : > { %v5196_v20 = vpop.permute.xlu0 %1616  ;;  %1430 = vperm.xlu1 %3675, %v5193_v59   ;;  %7898 = vst [vmem:[#allocation51_spill] sm:$0xff] %v5209_v6 }
 0x327   : > { %7893 = vst [vmem:[#allocation49_spill] sm:$0xff] %v5196_v20  ;;  %7906 = vst [vmem:[#allocation55_spill] sm:$0xff] %v5229_v5 }
 0x329   : > { %2184 = vperm.xlu0 %3680, %v7895_v23  }
 0x32a   : > { %v5204_v25 = vpop.permute.xlu0 %1624  ;;  %1440 = vperm.xlu1 %3675, %v5201_v2  }
 0x32b   : > { %7896 = vst [vmem:[#allocation74_spill] sm:$0xff] %v5204_v25  ;;  %v7903_v25 = vld [vmem:[#allocation86_spill] sm:$0xff] }
 0x32c   : > { %v5211_v32 = vpop.permute.xlu1 %1195 }
 0x32d   : > { %2192 = vperm.xlu0 %3680, %v7899_v11  }
 0x32e   : > { %v5214_v20 = vpop.permute.xlu0 %1632  ;;  %1450 = vperm.xlu1 %3675, %v5209_v6  }
 0x32f   : > { %7900 = vst [vmem:[#allocation75_spill] sm:$0xff] %v5214_v20  ;;  %v7907_v20 = vld [vmem:[#allocation89_spill] sm:$0xff] }
 0x330   : > { %v5221_v23 = vpop.permute.xlu1 %1199 }
 0x331   : > { %2200 = vperm.xlu0 %3680, %v7903_v25  }
 0x332   : > { %v5224_v41 = vpop.permute.xlu0 %1640  ;;  %1460 = vperm.xlu1 %3675, %v5219_v15  }
 0x333   : > { %7904 = vst [vmem:[#allocation76_spill] sm:$0xff] %v5224_v41  ;;  %v7911_v41 = vld [vmem:[#allocation92_spill] sm:$0xff] }
 0x334   : > { %v5231_v11 = vpop.permute.xlu1 %1203 }
 0x335   : > { %2208 = vperm.xlu0 %3680, %v7907_v20  }
 0x336   : > { %v5234_v38 = vpop.permute.xlu0 %1648  ;;  %1470 = vperm.xlu1 %3675, %v5229_v5  }
 0x337   : > { %7908 = vst [vmem:[#allocation77_spill] sm:$0xff] %v5234_v38  ;;  %v7915_v38 = vmov 0  }
 0x338   : > { %v5241_v25 = vpop.permute.xlu1 %1207 }
 0x339   : > { %2216 = vperm.xlu0 %3680, %v7911_v41   ;;  %v7919_v41 = vld [vmem:[#allocation6_spill] sm:$0xff] }
 0x33a   : > { %v5244_v45 = vpop.permute.xlu0 %1656  ;;  %1480 = vperm.xlu1 %3675, %v5239_v10  }
 0x33b   : > { %7912 = vst [vmem:[#allocation79_spill] sm:$0xff] %v5244_v45 }
 0x33c   : > { %v5247_v44 = vpop.permute.xlu1 %1211 }
 0x33d   : > { %2224 = vperm.xlu0 %3680, %v7913_v16   ;;  %v7922_v16 = vld [vmem:[#allocation7_spill] sm:$0xff] }
 0x33e   : > { %v5250_v20 = vpop.permute.xlu0 %1664  ;;  %3677 = vset.pattern.permute.xlu1 %v7915_v38  ;;  %v7924_v38 = vld [vmem:[#allocation39_spill] sm:$0xff] }
 0x33f   : > { %7914 = vst [vmem:[#allocation59_spill] sm:$0xff] %v5250_v20  ;;  %1560 = vperm.xlu1 %3677, %v7916_v4   ;;  %v7923_v20 = vld [vmem:[#allocation5_spill] sm:$0xff] }
 0x340   : > { %v5254_v17 = vpop.permute.xlu1 %1215  ;;  %v5268_v36 = vadd.f32 %v7924_v38, %v7923_v20  ;;  %v7931_v38 = vld [vmem:[#allocation91_spill] sm:$0xff] }
 0x341   : > { %2232 = vperm.xlu0 %3680, %v7917_v58   ;;  %v5289_v61 = vadd.f32 %v7931_v38, %v7722_v22  ;;  %v7936_v22 = vld [vmem:[#allocation12_spill] sm:$0xff]  ;;  %v7937_v38 = vld [vmem:[#allocation27_spill] sm:$0xff] }
 0x342   : > { %v5257_v62 = vpop.permute.xlu0 %1672  ;;  %v5309_v30 = vadd.f32 %v7937_v38, %v7734_v13  ;;  %v7943_v13 = vld [vmem:[#allocation30_spill] sm:$0xff] }
 0x343   : > { %7918 = vst [vmem:[#allocation81_spill] sm:$0xff] %v5257_v62  ;;  %1564 = vperm.xlu1 %3677, %v7919_v41   ;;  %v7927_v41 = vld [vmem:[#allocation8_spill] sm:$0xff]  ;;  %v5327_v38 = vadd.f32 %v7943_v13, %v7744_v49 }
 0x344   : > { %v5260_v45 = vpop.permute.xlu1 %1219  ;;  %v7949_v49 = vld [vmem:[#allocation28_spill] sm:$0xff] }
 0x345   : > { %2240 = vperm.xlu0 %3680, %v7920_v18   ;;  %v7928_v18 = vld [vmem:[#allocation88_spill] sm:$0xff]  ;;  %v5345_v13 = vadd.f32 %v7949_v49, %v7754_v52  ;;  %v7954_v52 = vld [vmem:[#allocation18_spill] sm:$0xff]  ;;  %v7955_v49 = vld [vmem:[#allocation33_spill] sm:$0xff] }
 0x346   : > { %v5263_v8 = vpop.permute.xlu0 %1680  ;;  %v5279_v62 = vadd.f32 %v7928_v18, %v7716_v43  ;;  %v7933_v43 = vld [vmem:[#allocation11_spill] sm:$0xff]  ;;  %v7934_v18 = vld [vmem:[#allocation26_spill] sm:$0xff]  ;;  %v5365_v5 = vadd.f32 %v7955_v49, %v7764_v31 }
 0x347   : > { %7921 = vst [vmem:[#allocation61_spill] sm:$0xff] %v5263_v8  ;;  %1572 = vperm.xlu1 %3677, %v7922_v16   ;;  %v7930_v16 = vld [vmem:[#allocation9_spill] sm:$0xff]  ;;  %v7961_v31 = vld [vmem:[#allocation35_spill] sm:$0xff] }
 0x348   : > { %v5270_v4 = vpop.permute.xlu1 %1223  ;;  %v5383_v49 = vadd.f32 %v7961_v31, %v7773_v33  ;;  %v7967_v33 = vmov 3   ;;  %v7968_v31 = vld [vmem:[#allocation106_spill] sm:$0xff] }
 0x349   : > { %3682 = vset.pattern.permute.xlu0 %v7925_v39 }
 0x34a   : > { %1330 = vperm.xlu0 %3682, %v5268_v36  }
 0x34b   : > { %v5274_v58 = vpop.permute.xlu0 %1890  ;;  %1580 = vperm.xlu1 %3677, %v7927_v41  }
 0x34c   : > { %7926 = vst [vmem:[#allocation83_spill] sm:$0xff] %v5274_v58  ;;  %v5281_v8 = vpop.permute.xlu1 %1227  ;;  %v5299_v58 = vadd.f32 %v7934_v18, %v7729_v57  ;;  %v7940_v57 = vld [vmem:[#allocation29_spill] sm:$0xff] }
 0x34d   : > { %v5317_v18 = vadd.f32 %v7940_v57, %v7739_v1  ;;  %v7945_v1 = vld [vmem:[#allocation15_spill] sm:$0xff] }
 0x34e   : > { %1345 = vperm.xlu0 %3682, %v5279_v62   ;;  %v7946_v57 = vld [vmem:[#allocation31_spill] sm:$0xff] }
 0x34f   : > { %v5284_v20 = vpop.permute.xlu0 %1905  ;;  %1588 = vperm.xlu1 %3677, %v7930_v16   ;;  %v5337_v7 = vadd.f32 %v7946_v57, %v7749_v9  ;;  %v7952_v9 = vld [vmem:[#allocation32_spill] sm:$0xff] }
 0x350   : > { %7929 = vst [vmem:[#allocation63_spill] sm:$0xff] %v5284_v20  ;;  %v5291_v54 = vpop.permute.xlu1 %1231  ;;  %v5355_v57 = vadd.f32 %v7952_v9, %v7759_v19  ;;  %v7958_v19 = vld [vmem:[#allocation34_spill] sm:$0xff] }
 0x351   : > { %v5373_v9 = vadd.f32 %v7958_v19, %v7769_v40  ;;  %v7963_v40 = vld [vmem:[#allocation23_spill] sm:$0xff]  ;;  %v7964_v19 = vld [vmem:[#allocation37_spill] sm:$0xff] }
 0x352   : > { %1355 = vperm.xlu0 %3682, %v5289_v61  }
 0x353   : > { %v5294_v41 = vpop.permute.xlu0 %1915  ;;  %1596 = vperm.xlu1 %3677, %v7933_v43   ;;  %v7939_v43 = vld [vmem:[#allocation13_spill] sm:$0xff] }
 0x354   : > { %7932 = vst [vmem:[#allocation86_spill] sm:$0xff] %v5294_v41  ;;  %v5302_v20 = vpop.permute.xlu1 %1235 }
 0x356   : > { %1365 = vperm.xlu0 %3682, %v5299_v58  }
 0x357   : > { %v5304_v16 = vpop.permute.xlu0 %1925  ;;  %1604 = vperm.xlu1 %3677, %v7936_v22   ;;  %v7942_v22 = vld [vmem:[#allocation14_spill] sm:$0xff] }
 0x358   : > { %7935 = vst [vmem:[#allocation65_spill] sm:$0xff] %v5304_v16  ;;  %v5319_v48 = vpop.permute.xlu1 %1239 }
 0x35a   : > { %1375 = vperm.xlu0 %3682, %v5309_v30  }
 0x35b   : > { %v5312_v41 = vpop.permute.xlu0 %1935  ;;  %1612 = vperm.xlu1 %3677, %v7939_v43  }
 0x35c   : > { %7938 = vst [vmem:[#allocation89_spill] sm:$0xff] %v5312_v41  ;;  %v5330_v41 = vpop.permute.xlu1 %1243 }
 0x35e   : > { %1385 = vperm.xlu0 %3682, %v5317_v18  }
 0x35f   : > { %v5322_v16 = vpop.permute.xlu0 %1945  ;;  %1620 = vperm.xlu1 %3677, %v7942_v22   ;;  %v7948_v22 = vld [vmem:[#allocation16_spill] sm:$0xff] }
 0x360   : > { %7941 = vst [vmem:[#allocation67_spill] sm:$0xff] %v5322_v16  ;;  %v5347_v10 = vpop.permute.xlu1 %1247 }
 0x362   : > { %1395 = vperm.xlu0 %3682, %v5327_v38  }
 0x363   : > { %v5332_v43 = vpop.permute.xlu0 %1955  ;;  %1628 = vperm.xlu1 %3677, %v7945_v1   ;;  %v7951_v1 = vld [vmem:[#allocation17_spill] sm:$0xff] }
 0x364   : > { %7944 = vst [vmem:[#allocation92_spill] sm:$0xff] %v5332_v43 }
 0x366   : > { %1405 = vperm.xlu0 %3682, %v5337_v7  }
 0x367   : > { %v5340_v16 = vpop.permute.xlu0 %1965  ;;  %1636 = vperm.xlu1 %3677, %v7948_v22  }
 0x368   : > { %7947 = vst [vmem:[#allocation36_spill] sm:$0xff] %v5340_v16  ;;  %v5358_v16 = vpop.permute.xlu1 %1251 }
 0x36a   : > { %1415 = vperm.xlu0 %3682, %v5345_v13  }
 0x36b   : > { %v5350_v43 = vpop.permute.xlu0 %1975  ;;  %1644 = vperm.xlu1 %3677, %v7951_v1   ;;  %v7957_v1 = vld [vmem:[#allocation19_spill] sm:$0xff] }
 0x36c   : > { %7950 = vst [vmem:[#allocation42_spill] sm:$0xff] %v5350_v43  ;;  %v5375_v26 = vpop.permute.xlu1 %1255 }
 0x36e   : > { %1425 = vperm.xlu0 %3682, %v5355_v57  }
 0x36f   : > { %v5360_v22 = vpop.permute.xlu0 %1985  ;;  %1652 = vperm.xlu1 %3677, %v7954_v52   ;;  %v7960_v52 = vld [vmem:[#allocation21_spill] sm:$0xff] }
 0x370   : > { %7953 = vst [vmem:[#allocation95_spill] sm:$0xff] %v5360_v22 }
 0x372   : > { %1435 = vperm.xlu0 %3682, %v5365_v5  }
 0x373   : > { %v5368_v43 = vpop.permute.xlu0 %1995  ;;  %1660 = vperm.xlu1 %3677, %v7957_v1  }
 0x374   : > { %7956 = vst [vmem:[#allocation6_spill] sm:$0xff] %v5368_v43  ;;  %v5393_v43 = vadd.f32 %v7964_v19, %v7777_v12 }
 0x376   : > { %1445 = vperm.xlu0 %3682, %v5373_v9  }
 0x377   : > { %v5378_v22 = vpop.permute.xlu0 %2005  ;;  %1668 = vperm.xlu1 %3677, %v7960_v52  }
 0x378   : > { %7959 = vst [vmem:[#allocation38_spill] sm:$0xff] %v5378_v22  ;;  %v5403_v22 = vadd.f32 %v7968_v31, %v7780_v28  ;;  %v975_v28 = vsub.f32 %v5279_v62, %v4972_v50  ;;  %v7972_v62 = vld [vmem:[#allocation24_spill] sm:$0xff] }
 0x379   : > { %v5385_v15 = vpop.permute.xlu1 %1325 }
 0x37a   : > { %1455 = vperm.xlu0 %3682, %v5383_v49  }
 0x37b   : > { %v5388_v1 = vpop.permute.xlu0 %2015  ;;  %1676 = vperm.xlu1 %3677, %v7963_v40   ;;  %v7969_v40 = vld [vmem:[#allocation94_spill] sm:$0xff] }
 0x37c   : > { %7962 = vst [vmem:[#allocation7_spill] sm:$0xff] %v5388_v1  ;;  %v972_v12 = vsub.f32 %v5268_v36, %v7969_v40  ;;  %v977_v40 = vsub.f32 %v5289_v61, %v4982_v0  ;;  %v7974_v61 = vld [vmem:[#allocation93_spill] sm:$0xff] }
 0x37d   : > { %v5395_v6 = vpop.permute.xlu1 %1335 }
 0x37e   : > { %7965 = vst [vmem:[#allocation5_spill] sm:$0xff] %v5395_v6  ;;  %1465 = vperm.xlu0 %3682, %v5393_v43   ;;  %v1292_v6 = vmul.f32 %v5034_v35, %v972_v12  ;;  %v1297_v35 = vmul.f32 %v5241_v25, %v977_v40  ;;  %v7973_v12 = vld [vmem:[#allocation118_spill] sm:$0xff]  ;;  %v981_v25 = vsub.f32 %v5309_v30, %v7974_v61  ;;  %v7977_v40 = vld [vmem:[#allocation25_spill] sm:$0xff] }
 0x37f   : > { %v5398_v52 = vpop.permute.xlu0 %2025  ;;  %3678 = vset.pattern.permute.xlu1 %v7967_v33 }
 0x380   : > { %7966 = vst [vmem:[#allocation39_spill] sm:$0xff] %v5398_v52  ;;  %1885 = vperm.xlu1 %3678, %v5023_v34   ;;  %v1295_v34 = vmul.f32 %v5231_v11, %v975_v28 }
 0x381   : > { %v5406_v1 = vpop.permute.xlu1 %1340 }
 0x382   : > { %1475 = vperm.xlu0 %3682, %v5403_v22  }
 0x383   : > { %v5411_v19 = vpop.permute.xlu0 %2035 }
 0x384   : > { %7970 = vst [vmem:[#allocation8_spill] sm:$0xff] %v5411_v19  ;;  %1895 = vperm.xlu1 %3678, %v5029_v21  }
 0x385   : > { %v5415_v33 = vpop.permute.xlu1 %1350 }
 0x386   : > { %2550 = vperm.xlu0 %3682, %v1292_v6   ;;  %v979_v6 = vsub.f32 %v5299_v58, %v7972_v62 }
 0x388   : > { %v5420_v31 = vpop.permute.xlu0 %2116  ;;  %1900 = vperm.xlu1 %3678, %v4786_v24   ;;  %v1299_v24 = vmul.f32 %v5247_v44, %v979_v6  ;;  %v983_v44 = vsub.f32 %v5317_v18, %v7977_v40  ;;  %v7978_v6 = vld [vmem:[#allocation122_spill] sm:$0xff] }
 0x389   : > { %7971 = vst [vmem:[#allocation88_spill] sm:$0xff] %v5420_v31  ;;  %v5423_v36 = vpop.permute.xlu1 %1360 }
 0x38a   : > { %2565 = vperm.xlu0 %3682, %v1295_v34   ;;  %v7975_v34 = vld [vmem:[#allocation120_spill] sm:$0xff] }
 0x38c   : > { %v5428_v21 = vpop.permute.xlu0 %2128  ;;  %1910 = vperm.xlu1 %3678, %v4800_v29   ;;  %v1301_v29 = vmul.f32 %v5254_v17, %v981_v25  ;;  %v7981_v25 = vld [vmem:[#allocation124_spill] sm:$0xff] }
 0x38d   : > { %v5431_v50 = vpop.permute.xlu1 %1370 }
 0x38e   : > { %2575 = vperm.xlu0 %3682, %v1297_v35   ;;  %v1303_v35 = vmul.f32 %v5260_v45, %v983_v44  ;;  %v7984_v44 = vld [vmem:[#allocation126_spill] sm:$0xff] }
 0x390   : > { %v5436_v11 = vpop.permute.xlu0 %2136  ;;  %1920 = vperm.xlu1 %3678, %v7973_v12  }
 0x391   : > { %v5439_v0 = vpop.permute.xlu1 %1380 }
 0x392   : > { %2585 = vperm.xlu0 %3682, %v1299_v24   ;;  %v7980_v24 = vld [vmem:[#allocation44_spill] sm:$0xff] }
 0x393   : > { %v985_v17 = vsub.f32 %v5327_v38, %v7980_v24 }
 0x394   : > { %v5444_v28 = vpop.permute.xlu0 %2144  ;;  %1930 = vperm.xlu1 %3678, %v7975_v34  }
 0x395   : > { %v5447_v58 = vpop.permute.xlu1 %1390  ;;  %v1305_v12 = vmul.f32 %v5270_v4, %v985_v17  ;;  %v7987_v17 = vld [vmem:[#allocation128_spill] sm:$0xff] }
 0x396   : > { %7976 = vst [vmem:[#allocation9_spill] sm:$0xff] %v5447_v58  ;;  %2595 = vperm.xlu0 %3682, %v1301_v29   ;;  %v7983_v29 = vld [vmem:[#allocation46_spill] sm:$0xff] }
 0x397   : > { %v987_v45 = vsub.f32 %v5337_v7, %v7983_v29 }
 0x398   : > { %v5452_v62 = vpop.permute.xlu0 %2152  ;;  %1940 = vperm.xlu1 %3678, %v7978_v6  }
 0x399   : > { %v5455_v30 = vpop.permute.xlu1 %1400  ;;  %v1307_v34 = vmul.f32 %v5281_v8, %v987_v45  ;;  %v7990_v45 = vld [vmem:[#allocation130_spill] sm:$0xff] }
 0x39a   : > { %7979 = vst [vmem:[#allocation91_spill] sm:$0xff] %v5455_v30  ;;  %2605 = vperm.xlu0 %3682, %v1303_v35   ;;  %v7986_v35 = vld [vmem:[#allocation48_spill] sm:$0xff] }
 0x39b   : > { %v989_v4 = vsub.f32 %v5345_v13, %v7986_v35 }
 0x39c   : > { %v5460_v61 = vpop.permute.xlu0 %2160  ;;  %1950 = vperm.xlu1 %3678, %v7981_v25  }
 0x39d   : > { %v5463_v18 = vpop.permute.xlu1 %1410  ;;  %v1309_v6 = vmul.f32 %v5291_v54, %v989_v4  ;;  %v7993_v4 = vld [vmem:[#allocation132_spill] sm:$0xff] }
 0x39e   : > { %7982 = vst [vmem:[#allocation11_spill] sm:$0xff] %v5463_v18  ;;  %2615 = vperm.xlu0 %3682, %v1305_v12   ;;  %v7989_v12 = vld [vmem:[#allocation50_spill] sm:$0xff] }
 0x39f   : > { %v991_v8 = vsub.f32 %v5355_v57, %v7989_v12  ;;  %v7996_v12 = vld [vmem:[#allocation134_spill] sm:$0xff] }
 0x3a0   : > { %v5468_v40 = vpop.permute.xlu0 %2168  ;;  %1960 = vperm.xlu1 %3678, %v7984_v44  }
 0x3a1   : > { %v5471_v38 = vpop.permute.xlu1 %1420  ;;  %v1311_v25 = vmul.f32 %v5302_v20, %v991_v8 }
 0x3a2   : > { %7985 = vst [vmem:[#allocation26_spill] sm:$0xff] %v5471_v38  ;;  %2625 = vperm.xlu0 %3682, %v1307_v34   ;;  %v7992_v34 = vld [vmem:[#allocation52_spill] sm:$0xff]  ;;  %v8036_v38 = vld [vmem:[#allocation127_spill] sm:$0xff] }
 0x3a3   : > { %v993_v54 = vsub.f32 %v5365_v5, %v7992_v34  ;;  %v7998_v5 = vld [vmem:[#allocation56_spill] sm:$0xff] }
 0x3a4   : > { %v5476_v24 = vpop.permute.xlu0 %2176  ;;  %1970 = vperm.xlu1 %3678, %v7987_v17   ;;  %v7999_v34 = vld [vmem:[#allocation84_spill] sm:$0xff] }
 0x3a5   : > { %v5479_v7 = vpop.permute.xlu1 %1430  ;;  %v1313_v44 = vmul.f32 %v5319_v48, %v993_v54 }
 0x3a6   : > { %7988 = vst [vmem:[#allocation12_spill] sm:$0xff] %v5479_v7  ;;  %2635 = vperm.xlu0 %3682, %v1309_v6   ;;  %v7995_v6 = vld [vmem:[#allocation54_spill] sm:$0xff] }
 0x3a7   : > { %v995_v20 = vsub.f32 %v5373_v9, %v7995_v6  ;;  %v8001_v9 = vld [vmem:[#allocation58_spill] sm:$0xff]  ;;  %v8002_v6 = vld [vmem:[#allocation20_spill] sm:$0xff] }
 0x3a8   : > { %v5484_v29 = vpop.permute.xlu0 %2184  ;;  %1980 = vperm.xlu1 %3678, %v7990_v45  }
 0x3a9   : > { %v5487_v13 = vpop.permute.xlu1 %1440  ;;  %v1315_v17 = vmul.f32 %v5330_v41, %v995_v20  ;;  %v8004_v20 = vld [vmem:[#allocation60_spill] sm:$0xff] }
 0x3aa   : > { %7991 = vst [vmem:[#allocation27_spill] sm:$0xff] %v5487_v13  ;;  %2645 = vperm.xlu0 %3682, %v1311_v25   ;;  %v997_v25 = vsub.f32 %v5383_v49, %v7998_v5  ;;  %v8033_v13 = vld [vmem:[#allocation125_spill] sm:$0xff] }
 0x3ac   : > { %v5492_v35 = vpop.permute.xlu0 %2192  ;;  %1990 = vperm.xlu1 %3678, %v7993_v4   ;;  %v1317_v45 = vmul.f32 %v5347_v10, %v997_v25 }
 0x3ad   : > { %v5495_v57 = vpop.permute.xlu1 %1450 }
 0x3ae   : > { %7994 = vst [vmem:[#allocation13_spill] sm:$0xff] %v5495_v57  ;;  %2655 = vperm.xlu0 %3682, %v1313_v44   ;;  %v999_v44 = vsub.f32 %v5393_v43, %v8001_v9  ;;  %v8012_v9 = vld [vmem:[#allocation71_spill] sm:$0xff] }
 0x3af   : > { %v8030_v57 = vld [vmem:[#allocation123_spill] sm:$0xff] }
 0x3b0   : > { %2000 = vperm.xlu1 %3678, %v7996_v12   ;;  %v5505_v48 = vpop.permute.xlu0 %2200  ;;  %v1319_v41 = vmul.f32 %v5358_v16, %v999_v44  ;;  %v8005_v12 = vld [vmem:[#allocation22_spill] sm:$0xff] }
 0x3b1   : > { %v5501_v8 = vpop.permute.xlu1 %1460  ;;  %v8008_v16 = vld [vmem:[#allocation90_spill] sm:$0xff] }
 0x3b2   : > { %7997 = vst [vmem:[#allocation29_spill] sm:$0xff] %v5501_v8  ;;  %2665 = vperm.xlu0 %3682, %v1315_v17   ;;  %v1001_v17 = vsub.f32 %v5403_v22, %v8004_v20 }
 0x3b4   : > { %2010 = vperm.xlu1 %3678, %v7999_v34   ;;  %v5514_v4 = vpop.permute.xlu0 %2208  ;;  %v1321_v10 = vmul.f32 %v5375_v26, %v1001_v17  ;;  %v8011_v34 = vmov 1   ;;  %v8014_v26 = vld [vmem:[#allocation114_spill] sm:$0xff] }
 0x3b5   : > { %v5509_v54 = vpop.permute.xlu1 %1470 }
 0x3b6   : > { %8000 = vst [vmem:[#allocation14_spill] sm:$0xff] %v5509_v54  ;;  %2675 = vperm.xlu0 %3682, %v1317_v45  }
 0x3b8   : > { %2020 = vperm.xlu1 %3678, %v8002_v6   ;;  %v5523_v5 = vpop.permute.xlu0 %2216  ;;  %v8017_v6 = vld [vmem:[#allocation115_spill] sm:$0xff] }
 0x3b9   : > { %v5517_v49 = vpop.permute.xlu1 %1480  ;;  %8006 = vst [vmem:[#allocation15_spill] sm:$0xff] %v5523_v5 }
 0x3ba   : > { %8003 = vst [vmem:[#allocation30_spill] sm:$0xff] %v5517_v49  ;;  %2685 = vperm.xlu0 %3682, %v1319_v41  }
 0x3bc   : > { %2030 = vperm.xlu1 %3678, %v8005_v12   ;;  %v5530_v45 = vpop.permute.xlu0 %2224 }
 0x3bd   : > { %8010 = vst [vmem:[#allocation28_spill] sm:$0xff] %v5530_v45 }
 0x3be   : > { %2695 = vperm.xlu0 %3682, %v1321_v10   ;;  %v5525_v43 = vpop.permute.xlu1 %1560  ;;  %v8020_v10 = vld [vmem:[#allocation116_spill] sm:$0xff] }
 0x3bf   : > { %8007 = vst [vmem:[#allocation31_spill] sm:$0xff] %v5525_v43 }
 0x3c0   : > { %2040 = vperm.xlu1 %3678, %v8008_v16   ;;  %v5537_v44 = vpop.permute.xlu0 %2232  ;;  %v8022_v16 = vld [vmem:[#allocation117_spill] sm:$0xff] }
 0x3c1   : > { %8015 = vst [vmem:[#allocation32_spill] sm:$0xff] %v5537_v44  ;;  %v8054_v44 = vld [vmem:[#allocation80_spill] sm:$0xff] }
 0x3c2   : > { %v5528_v25 = vpop.permute.xlu1 %1564 }
 0x3c3   : > { %8009 = vst [vmem:[#allocation16_spill] sm:$0xff] %v5528_v25  ;;  %v8053_v25 = vld [vmem:[#allocation2_spill] sm:$0xff] }
 0x3c4   : > { %3681 = vset.pattern.permute.xlu1 %v8011_v34  ;;  %v5544_v17 = vpop.permute.xlu0 %2240 }
 0x3c5   : > { %2120 = vperm.xlu1 %3681, %v8012_v9   ;;  %8019 = vst [vmem:[#allocation19_spill] sm:$0xff] %v5544_v17  ;;  %v8050_v17 = vld [vmem:[#allocation78_spill] sm:$0xff] }
 0x3c6   : > { %v5534_v22 = vpop.permute.xlu1 %1572 }
 0x3c7   : > { %8013 = vst [vmem:[#allocation17_spill] sm:$0xff] %v5534_v22 }
 0x3c9   : > { %2124 = vperm.xlu1 %3681, %v8014_v26   ;;  %v5550_v34 = vpop.permute.xlu0 %1330  ;;  %v8025_v26 = vld [vmem:[#allocation119_spill] sm:$0xff] }
 0x3ca   : > { %v5539_v41 = vpop.permute.xlu1 %1580  ;;  %8023 = vst [vmem:[#allocation21_spill] sm:$0xff] %v5550_v34 }
 0x3cb   : > { %8016 = vst [vmem:[#allocation18_spill] sm:$0xff] %v5539_v41 }
 0x3cd   : > { %2132 = vperm.xlu1 %3681, %v8017_v6   ;;  %v5557_v54 = vpop.permute.xlu0 %1345  ;;  %v8028_v6 = vld [vmem:[#allocation121_spill] sm:$0xff] }
 0x3ce   : > { %v5542_v20 = vpop.permute.xlu1 %1588  ;;  %8027 = vst [vmem:[#allocation37_spill] sm:$0xff] %v5557_v54 }
 0x3cf   : > { %8018 = vst [vmem:[#allocation33_spill] sm:$0xff] %v5542_v20  ;;  %v8047_v20 = vld [vmem:[#allocation135_spill] sm:$0xff] }
 0x3d1   : > { %2140 = vperm.xlu1 %3681, %v8020_v10   ;;  %v5563_v10 = vpop.permute.xlu0 %1355 }
 0x3d2   : > { %v5547_v12 = vpop.permute.xlu1 %1596  ;;  %8031 = vst [vmem:[#allocation94_spill] sm:$0xff] %v5563_v10 }
 0x3d3   : > { %8021 = vst [vmem:[#allocation34_spill] sm:$0xff] %v5547_v12 }
 0x3d5   : > { %2148 = vperm.xlu1 %3681, %v8022_v16  }
 0x3d6   : > { %v5552_v9 = vpop.permute.xlu1 %1604 }
 0x3d7   : > { %8024 = vst [vmem:[#allocation35_spill] sm:$0xff] %v5552_v9  ;;  %v3684_v9 = vld [vmem:[%s3757_s12] sm:$0xff] }
 0x3d9   : > { %2156 = vperm.xlu1 %3681, %v8025_v26   ;;  %v5570_v26 = vpop.permute.xlu0 %1365 }
 0x3da   : > { %v5555_v49 = vpop.permute.xlu1 %1612  ;;  %8035 = vst [vmem:[#allocation93_spill] sm:$0xff] %v5570_v26 }
 0x3db   : > { %8026 = vst [vmem:[#allocation23_spill] sm:$0xff] %v5555_v49 }
 0x3dd   : > { %2164 = vperm.xlu1 %3681, %v8028_v6   ;;  %v8038_v6 = vld [vmem:[#allocation129_spill] sm:$0xff]  ;;  %v5576_v30 = vpop.permute.xlu0 %1375 }
 0x3de   : > { %v5560_v8 = vpop.permute.xlu1 %1620  ;;  %8039 = vst [vmem:[#allocation25_spill] sm:$0xff] %v5576_v30 }
 0x3df   : > { %8029 = vst [vmem:[#allocation106_spill] sm:$0xff] %v5560_v8  ;;  %v8041_v8 = vld [vmem:[#allocation131_spill] sm:$0xff] }
 0x3e1   : > { %2172 = vperm.xlu1 %3681, %v8030_v57   ;;  %v5583_v49 = vpop.permute.xlu0 %1385 }
 0x3e2   : > { %v5565_v16 = vpop.permute.xlu1 %1628  ;;  %8043 = vst [vmem:[#allocation124_spill] sm:$0xff] %v5583_v49 }
 0x3e3   : > { %8032 = vst [vmem:[#allocation24_spill] sm:$0xff] %v5565_v16 }
 0x3e5   : > { %2180 = vperm.xlu1 %3681, %v8033_v13   ;;  %v8044_v13 = vld [vmem:[#allocation133_spill] sm:$0xff]  ;;  %v5593_v30 = vpop.permute.xlu0 %1395 }
 0x3e6   : > { %v5568_v7 = vpop.permute.xlu1 %1636  ;;  %8048 = vst [vmem:[#allocation126_spill] sm:$0xff] %v5593_v30  ;;  %v8055_v30 = vld [vmem:[#allocation136_spill] sm:$0xff] }
 0x3e7   : > { %8034 = vst [vmem:[#allocation118_spill] sm:$0xff] %v5568_v7 }
 0x3e9   : > { %2188 = vperm.xlu1 %3681, %v8036_v38   ;;  %v8046_v38 = vld [vmem:[#allocation10_spill] sm:$0xff]  ;;  %v5600_v41 = vpop.permute.xlu0 %1405 }
 0x3ea   : > { %v5573_v18 = vpop.permute.xlu1 %1644  ;;  %v215_v12 = vmul.f32 %v3684_v9, %v8046_v38  ;;  %8052 = vst [vmem:[#allocation50_spill] sm:$0xff] %v5600_v41  ;;  %v8057_v41 = vld [vmem:[#allocation87_spill] sm:$0xff] }
 0x3eb   : > { %8037 = vst [vmem:[#allocation120_spill] sm:$0xff] %v5573_v18  ;;  %v3685_v18 = vld [vmem:[%s3757_s12 + $0x8] sm:$0xff]  ;;  %v973_v45 = vsub.f32 %v5117_v60, %v8057_v41 }
 0x3ec   : > { %v269_v49 = vrot.slane %v215_v12, 2  ;;  %v251_v22 = vrot.slane %v215_v12, 5  ;;  %v263_v31 = vrot.slane %v215_v12, 3 }
 0x3ed   : > { %2196 = vperm.xlu1 %3681, %v8038_v6   ;;  %v216_v6 = vmul.f32 %v3685_v18, %v8046_v38 }
 0x3ee   : > { %v5578_v57 = vpop.permute.xlu1 %1652  ;;  %v273_v54 = vadd.f32 %v3684_v9, %v269_v49  ;;  %v255_v58 = vadd.f32 %v3684_v9, %v251_v22 }
 0x3ef   : > { %8040 = vst [vmem:[#allocation122_spill] sm:$0xff] %v5578_v57  ;;  %v252_v38 = vrot.slane %v216_v6, 5 }
 0x3f1   : > { %2204 = vperm.xlu1 %3681, %v8041_v8   ;;  %v257_v8 = vrot.slane %v215_v12, 4  ;;  %v256_v5 = vadd.f32 %v3685_v18, %v252_v38  ;;  %v8059_v38 = vld [vmem:[#allocation96_spill] sm:$0xff] }
 0x3f2   : > { %v5581_v16 = vpop.permute.xlu1 %1660 }
 0x3f3   : > { %8042 = vst [vmem:[#allocation44_spill] sm:$0xff] %v5581_v16  ;;  %v258_v16 = vrot.slane %v216_v6, 4  ;;  %v261_v26 = vadd.f32 %v3684_v9, %v257_v8 }
 0x3f5   : > { %2212 = vperm.xlu1 %3681, %v8044_v13   ;;  %v270_v13 = vrot.slane %v216_v6, 2  ;;  %v829_v34 = vrot.slane %v261_v26, 6 }
 0x3f6   : > { %v5586_v7 = vpop.permute.xlu1 %1668 }
 0x3f7   : > { %8045 = vst [vmem:[#allocation46_spill] sm:$0xff] %v5586_v7  ;;  %v262_v7 = vadd.f32 %v3685_v18, %v258_v16  ;;  %v274_v43 = vadd.f32 %v3685_v18, %v270_v13  ;;  %v5621_v13 = vpop.permute.xlu0 %1415  ;;  %v833_v60 = vsub.f32 %v273_v54, %v829_v34  ;;  %v8062_v34 = vld [vmem:[#allocation62_spill] sm:$0xff] }
 0x3f8   : > { %8058 = vst [vmem:[#allocation52_spill] sm:$0xff] %v5621_v13 }
 0x3f9   : > { %2220 = vperm.xlu1 %3681, %v8047_v20   ;;  %v2045_v20 = vsub.s32 3, %v8053_v25  ;;  %v830_v16 = vrot.slane %v262_v7, 6 }
 0x3fa   : > { %v5595_v57 = vpop.permute.xlu1 %1676 }
 0x3fb   : > { %8049 = vst [vmem:[#allocation48_spill] sm:$0xff] %v5595_v57  ;;  %v971_v57 = vsub.f32 %v5110_v55, %v8055_v30  ;;  %v5615_v55 = vrot.slane %v274_v43, %v2045_v20  ;;  %v834_v22 = vsub.f32 %v274_v43, %v830_v16  ;;  %v837_v16 = vrot.slane %v833_v60, 1 }
 0x3fd   : > { %2228 = vperm.xlu1 %3681, %v8050_v17   ;;  %v2245_v17 = vsub.s32 1, %v8053_v25  ;;  %v838_v13 = vrot.slane %v834_v22, 1 }
 0x3ff   : > { %v5598_v10 = vpop.permute.xlu1 %1885  ;;  %v5617_v30 = vrot.slane %v261_v26, %v2245_v17  ;;  %v5619_v49 = vrot.slane %v262_v7, %v2245_v17  ;;  %v822_v17 = vrot.slane %v256_v5, 6 }
 0x400   : > { %8051 = vst [vmem:[#allocation128_spill] sm:$0xff] %v5598_v10  ;;  %v1291_v10 = vmul.f32 %v5211_v32, %v971_v57  ;;  %v1293_v32 = vmul.f32 %v5221_v23, %v973_v45  ;;  %v264_v57 = vrot.slane %v216_v6, 3  ;;  %v1685_v23 = vsub.s32 0, %v8053_v25 }
 0x401   : > { %2236 = vperm.xlu1 %3681, %v8054_v44   ;;  %v5613_v44 = vrot.slane %v273_v54, %v2045_v20  ;;  %v2258_v12 = vmax.f32 %v5428_v21, %v5619_v49  ;;  %v974_v20 = vsub.f32 %v5122_v63, %v8059_v38  ;;  %v267_v54 = vadd.f32 %v3684_v9, %v263_v31  ;;  %v5642_v38 = vpop.permute.xlu0 %1425 }
 0x402   : > { %v2262_v63 = vmax.f32 %v5436_v11, %v5619_v49 }
 0x403   : > { %v5607_v8 = vpop.permute.xlu1 %1895  ;;  %v1294_v6 = vmul.f32 %v8062_v34, %v974_v20 }
 0x404   : > { %8056 = vst [vmem:[#allocation130_spill] sm:$0xff] %v5607_v8 }
 0x405   : > { %3683 = vset.pattern.permute.xlu1 %v7925_v39  ;;  %v2257_v39 = vmax.f32 %v5428_v21, %v5617_v30  ;;  %v268_v21 = vadd.f32 %v3685_v18, %v264_v57  ;;  %v1485_v18 = vsub.s32 2, %v8053_v25 }
 0x406   : > { %2545 = vperm.xlu1 %3683, %v1291_v10   ;;  %v821_v10 = vrot.slane %v255_v58, 6 }
 0x407   : > { %v1901_v41 = vpop.permute.xlu1 %1900  ;;  %v826_v60 = vsub.f32 %v268_v21, %v822_v17  ;;  %v8066_v17 = vld [vmem:[#allocation98_spill] sm:$0xff] }
 0x408   : > { %v2057_v26 = vmin.f32 %v1901_v41, %v5613_v44  ;;  %v2058_v7 = vmin.f32 %v1901_v41, %v5615_v55  ;;  %v2261_v41 = vmax.f32 %v5436_v11, %v5617_v30  ;;  %v825_v57 = vsub.f32 %v267_v54, %v821_v10 }
 0x40a   : > { %v5633_v43 = vsub.f32 %v2057_v26, %v2257_v39  ;;  %v5635_v45 = vsub.f32 %v2058_v7, %v2258_v12  ;;  %2555 = vperm.xlu1 %3683, %v1293_v32   ;;  %v8063_v39 = vld [vmem:[#allocation97_spill] sm:$0xff]  ;;  %v841_v26 = vmul.f32 %v837_v16, %v825_v57  ;;  %v842_v7 = vmul.f32 %v838_v13, %v826_v60  ;;  %v5670_v16 = vpop.permute.xlu0 %1435  ;;  %v8072_v60 = vld [vmem:[#allocation100_spill] sm:$0xff] }
 0x40b   : > { %v1911_v8 = vpop.permute.xlu1 %1910  ;;  %v976_v32 = vsub.f32 %v5129_v56, %v8063_v39  ;;  %v2266_v56 = vmax.f32 %v5444_v28, %v5619_v49  ;;  %v5668_v13 = vrot.slane %v268_v21, %v1485_v18  ;;  %v2270_v21 = vmax.f32 %v5452_v62, %v5619_v49 }
 0x40c   : > { %8060 = vst [vmem:[#allocation132_spill] sm:$0xff] %v5633_v43  ;;  %8061 = vst [vmem:[#allocation54_spill] sm:$0xff] %v5635_v45  ;;  %v2061_v31 = vmin.f32 %v1911_v8, %v5613_v44  ;;  %v2062_v9 = vmin.f32 %v1911_v8, %v5615_v55  ;;  %v2265_v8 = vmax.f32 %v5444_v28, %v5617_v30 }
 0x40d   : > { %v1296_v11 = vmul.f32 %v5046_v27, %v976_v32  ;;  %v5666_v27 = vrot.slane %v256_v5, %v1685_v23 }
 0x40e   : > { %v5649_v22 = vsub.f32 %v2061_v31, %v2261_v41  ;;  %v5651_v12 = vsub.f32 %v2062_v9, %v2262_v63  ;;  %2560 = vperm.xlu1 %3683, %v1294_v6   ;;  %v978_v41 = vsub.f32 %v5136_v51, %v8066_v17  ;;  %v5662_v63 = vrot.slane %v255_v58, %v1685_v23  ;;  %v8071_v9 = vld [vmem:[#allocation99_spill] sm:$0xff] }
 0x40f   : > { %v1921_v20 = vpop.permute.xlu1 %1920  ;;  %v5664_v6 = vrot.slane %v267_v54, %v1485_v18  ;;  %v980_v39 = vsub.f32 %v5145_v3, %v8071_v9  ;;  %v5679_v58 = vrot.slane %v841_v26, %v1485_v18  ;;  %v5681_v54 = vrot.slane %v842_v7, %v1485_v18  ;;  %v8074_v26 = vld [vmem:[#allocation102_spill] sm:$0xff]  ;;  %v8075_v7 = vld [vmem:[#allocation103_spill] sm:$0xff] }
 0x410   : > { %8064 = vst [vmem:[#allocation134_spill] sm:$0xff] %v5649_v22  ;;  %8065 = vst [vmem:[#allocation56_spill] sm:$0xff] %v5651_v12  ;;  %v2065_v34 = vmin.f32 %v1921_v20, %v5613_v44  ;;  %v2066_v10 = vmin.f32 %v1921_v20, %v5615_v55  ;;  %v1298_v51 = vmul.f32 %v5052_v14, %v978_v41  ;;  %v8081_v41 = vld [vmem:[#allocation109_spill] sm:$0xff]  ;;  %v8082_v9 = vld [vmem:[#allocation51_spill] sm:$0xff] }
 0x411   : > { %8067 = vst [vmem:[#allocation84_spill] sm:$0xff] %v5662_v63  ;;  %8068 = vst [vmem:[#allocation58_spill] sm:$0xff] %v5664_v6  ;;  %v2269_v23 = vmax.f32 %v5452_v62, %v5617_v30  ;;  %v982_v3 = vsub.f32 %v5153_v46, %v8072_v60  ;;  %v986_v18 = vsub.f32 %v5169_v42, %v8074_v26  ;;  %v8077_v62 = vld [vmem:[#allocation105_spill] sm:$0xff]  ;;  %v8080_v46 = vld [vmem:[#allocation107_spill] sm:$0xff] }
 0x412   : > { %v5672_v31 = vsub.f32 %v2065_v34, %v2265_v8  ;;  %v5674_v28 = vsub.f32 %v2066_v10, %v2266_v56  ;;  %2570 = vperm.xlu1 %3683, %v1296_v11   ;;  %v8073_v11 = vld [vmem:[#allocation101_spill] sm:$0xff]  ;;  %v988_v20 = vsub.f32 %v5177_v47, %v8075_v7  ;;  %v8076_v8 = vld [vmem:[#allocation104_spill] sm:$0xff]  ;;  %v992_v34 = vsub.f32 %v5193_v59, %v8077_v62 }
 0x413   : > { %v1931_v5 = vpop.permute.xlu1 %1930  ;;  %v984_v14 = vsub.f32 %v5161_v37, %v8073_v11  ;;  %v990_v56 = vsub.f32 %v5185_v53, %v8076_v8  ;;  %v994_v37 = vsub.f32 %v5201_v2, %v8080_v46  ;;  %v996_v42 = vsub.f32 %v8082_v9, %v8081_v41  ;;  %v8084_v60 = vld [vmem:[#allocation53_spill] sm:$0xff]  ;;  %v8085_v11 = vld [vmem:[#allocation108_spill] sm:$0xff]  ;;  %v8092_v9 = vld [vmem:[#allocation66_spill] sm:$0xff] }
 0x414   : > { %8069 = vst [vmem:[#allocation20_spill] sm:$0xff] %v5672_v31  ;;  %8070 = vst [vmem:[#allocation60_spill] sm:$0xff] %v5674_v28  ;;  %v2069_v32 = vmin.f32 %v1931_v5, %v5613_v44  ;;  %v2070_v57 = vmin.f32 %v1931_v5, %v5615_v55  ;;  %v8083_v5 = vld [vmem:[#allocation110_spill] sm:$0xff]  ;;  %v1300_v26 = vmul.f32 %v8085_v11, %v980_v39  ;;  %v8089_v8 = vld [vmem:[#allocation113_spill] sm:$0xff] }
 0x415   : > { %v998_v47 = vsub.f32 %v8084_v60, %v8083_v5  ;;  %v2273_v59 = vmax.f32 %v5460_v61, %v5617_v30  ;;  %v8090_v62 = vld [vmem:[#allocation57_spill] sm:$0xff]  ;;  %v8091_v39 = vld [vmem:[#allocation64_spill] sm:$0xff]  ;;  %v1304_v5 = vmul.f32 %v8092_v9, %v984_v14  ;;  %v8100_v14 = vld [vmem:[#allocation139_spill] sm:$0xff]  ;;  %v1502_v22 = vmin.f32 %v5415_v33, %v5668_v13 }
 0x416   : > { %v5701_v10 = vsub.f32 %v2069_v32, %v2269_v23  ;;  %v5703_v17 = vsub.f32 %v2070_v57, %v2270_v21  ;;  %2580 = vperm.xlu1 %3683, %v1298_v51   ;;  %v2274_v23 = vmax.f32 %v5460_v61, %v5619_v49  ;;  %v5716_v21 = vpop.permute.xlu0 %1445  ;;  %v8087_v32 = vld [vmem:[#allocation111_spill] sm:$0xff]  ;;  %v1002_v46 = vsub.f32 %v8090_v62, %v8089_v8  ;;  %v8093_v60 = vld [vmem:[#allocation68_spill] sm:$0xff]  ;;  %v8099_v8 = vld [vmem:[#allocation138_spill] sm:$0xff] }
 0x417   : > { %v1941_v53 = vpop.permute.xlu1 %1940  ;;  %8086 = vst [vmem:[#allocation71_spill] sm:$0xff] %v5716_v21  ;;  %v8088_v57 = vld [vmem:[#allocation55_spill] sm:$0xff]  ;;  %v1302_v41 = vmul.f32 %v8091_v39, %v982_v3  ;;  %v1306_v11 = vmul.f32 %v8093_v60, %v986_v18  ;;  %v5741_v3 = vmul.f32 %v8099_v8, %v994_v37  ;;  %v5744_v62 = vmul.f32 %v8100_v14, %v996_v42  ;;  %v8192_v60 = vld [vmem:[#allocation106_spill] sm:$0xff] }
 0x418   : > { %8078 = vst [vmem:[#allocation22_spill] sm:$0xff] %v5701_v10  ;;  %8079 = vst [vmem:[#allocation90_spill] sm:$0xff] %v5703_v17  ;;  %v2073_v51 = vmin.f32 %v1941_v53, %v5613_v44  ;;  %v2074_v2 = vmin.f32 %v1941_v53, %v5615_v55  ;;  %v1000_v7 = vsub.f32 %v8088_v57, %v8087_v32  ;;  %v8094_v17 = vld [vmem:[#allocation69_spill] sm:$0xff]  ;;  %v8097_v53 = vld [vmem:[#allocation70_spill] sm:$0xff] }
 0x419   : > { %v5728_v61 = vmul.f32 %v8094_v17, %v988_v20  ;;  %v5735_v31 = vmul.f32 %v8097_v53, %v990_v56  ;;  %v8098_v32 = vld [vmem:[#allocation137_spill] sm:$0xff]  ;;  %v2277_v20 = vmax.f32 %v5468_v40, %v5617_v30  ;;  %v2278_v17 = vmax.f32 %v5468_v40, %v5619_v49  ;;  %v8105_v40 = vld [vmem:[#allocation43_spill] sm:$0xff] }
 0x41a   : > { %v5730_v10 = vsub.f32 %v2073_v51, %v2273_v59  ;;  %v5732_v28 = vsub.f32 %v2074_v2, %v2274_v23  ;;  %2590 = vperm.xlu1 %3683, %v1300_v26   ;;  %v5738_v57 = vmul.f32 %v8098_v32, %v992_v34  ;;  %v8101_v59 = vld [vmem:[#allocation82_spill] sm:$0xff]  ;;  %v8102_v23 = vld [vmem:[#allocation85_spill] sm:$0xff]  ;;  %v8103_v51 = vld [vmem:[#allocation40_spill] sm:$0xff]  ;;  %v5767_v53 = vpop.permute.xlu0 %1455 }
 0x41b   : > { %v1951_v18 = vpop.permute.xlu1 %1950  ;;  %v5753_v34 = vmul.f32 %v8101_v59, %v998_v47  ;;  %v5756_v37 = vmul.f32 %v8102_v23, %v1000_v7  ;;  %v5759_v42 = vmul.f32 %v8103_v51, %v1002_v46  ;;  %v8104_v2 = vld [vmem:[#allocation41_spill] sm:$0xff]  ;;  %8106 = vst [vmem:[#allocation116_spill] sm:$0xff] %v5767_v53  ;;  %v8109_v46 = vld [vmem:[#allocation112_spill] sm:$0xff]  ;;  %v8112_v14 = vld [vmem:[#allocation47_spill] sm:$0xff] }
 0x41c   : > { %8095 = vst [vmem:[#allocation114_spill] sm:$0xff] %v5730_v10  ;;  %8096 = vst [vmem:[#allocation115_spill] sm:$0xff] %v5732_v28  ;;  %v2077_v26 = vmin.f32 %v1951_v18, %v5613_v44  ;;  %v2078_v56 = vmin.f32 %v1951_v18, %v5615_v55  ;;  %v1691_v39 = vmax.f32 %v8104_v2, %v5662_v63  ;;  %v8110_v18 = vld [vmem:[#allocation45_spill] sm:$0xff]  ;;  %v8111_v51 = vld [vmem:[#allocation72_spill] sm:$0xff] }
 0x41d   : > { %v1692_v9 = vmax.f32 %v8104_v2, %v5666_v27  ;;  %v8120_v59 = vld [vmem:[#allocation83_spill] sm:$0xff]  ;;  %v8124_v7 = vld [vmem:[#allocation65_spill] sm:$0xff]  ;;  %v8152_v43 = vmax.f32 %v8111_v51, %v5662_v63 }
 0x41e   : > { %v5769_v32 = vsub.f32 %v2077_v26, %v2277_v20  ;;  %v5771_v47 = vsub.f32 %v2078_v56, %v2278_v17  ;;  %2600 = vperm.xlu1 %3683, %v1302_v41   ;;  %v2281_v20 = vmax.f32 %v5476_v24, %v5617_v30  ;;  %v2282_v17 = vmax.f32 %v5476_v24, %v5619_v49  ;;  %v8121_v2 = vld [vmem:[#allocation63_spill] sm:$0xff]  ;;  %v8130_v24 = vld [vmem:[#allocation36_spill] sm:$0xff] }
 0x41f   : > { %v1961_v23 = vpop.permute.xlu1 %1960 }
 0x420   : > { %8107 = vst [vmem:[#allocation117_spill] sm:$0xff] %v5769_v32  ;;  %8108 = vst [vmem:[#allocation119_spill] sm:$0xff] %v5771_v47  ;;  %v2081_v41 = vmin.f32 %v1961_v23, %v5613_v44  ;;  %v2082_v26 = vmin.f32 %v1961_v23, %v5615_v55  ;;  %v8128_v32 = vld [vmem:[#allocation92_spill] sm:$0xff] }
 0x422   : > { %v5799_v47 = vsub.f32 %v2081_v41, %v2281_v20  ;;  %v5801_v23 = vsub.f32 %v2082_v26, %v2282_v17  ;;  %2610 = vperm.xlu1 %3683, %v1304_v5   ;;  %v1491_v17 = vmin.f32 %v5385_v15, %v5664_v6  ;;  %v2286_v5 = vmax.f32 %v5484_v29, %v5619_v49  ;;  %v5817_v41 = vpop.permute.xlu0 %1465  ;;  %v8122_v29 = vld [vmem:[#allocation86_spill] sm:$0xff] }
 0x423   : > { %v1971_v28 = vpop.permute.xlu1 %1970  ;;  %8119 = vst [vmem:[#allocation125_spill] sm:$0xff] %v5817_v41  ;;  %v1492_v20 = vmin.f32 %v5385_v15, %v5668_v13  ;;  %v8125_v15 = vld [vmem:[#allocation89_spill] sm:$0xff] }
 0x424   : > { %8114 = vst [vmem:[#allocation121_spill] sm:$0xff] %v5799_v47  ;;  %8115 = vst [vmem:[#allocation123_spill] sm:$0xff] %v5801_v23  ;;  %v2086_v26 = vmin.f32 %v1971_v28, %v5615_v55  ;;  %v8126_v23 = vld [vmem:[#allocation67_spill] sm:$0xff]  ;;  %v5846_v28 = vsub.f32 %v1491_v17, %v1691_v39  ;;  %v8131_v17 = vld [vmem:[#allocation42_spill] sm:$0xff] }
 0x425   : > { %v5857_v8 = vsub.f32 %v1492_v20, %v1692_v9  ;;  %v1501_v20 = vmin.f32 %v5415_v33, %v5664_v6  ;;  %v8140_v33 = vmax.f32 %v8105_v40, %v5662_v63 }
 0x426   : > { %v5834_v47 = vsub.f32 %v2086_v26, %v2286_v5  ;;  %2620 = vperm.xlu1 %3683, %v1306_v11   ;;  %8127 = vst [vmem:[#allocation129_spill] sm:$0xff] %v5846_v28  ;;  %v2290_v11 = vmax.f32 %v5492_v35, %v5619_v49  ;;  %v5865_v12 = vpop.permute.xlu0 %1475  ;;  %v1514_v28 = vmin.f32 %v5439_v0, %v5668_v13 }
 0x427   : > { %v1981_v10 = vpop.permute.xlu1 %1980  ;;  %8129 = vst [vmem:[#allocation131_spill] sm:$0xff] %v5857_v8  ;;  %8133 = vst [vmem:[#allocation133_spill] sm:$0xff] %v5865_v12 }
 0x428   : > { %8123 = vst [vmem:[#allocation127_spill] sm:$0xff] %v5834_v47  ;;  %v2090_v5 = vmin.f32 %v1981_v10, %v5615_v55  ;;  %v1497_v47 = vmin.f32 %v5406_v1, %v5664_v6  ;;  %v1506_v10 = vmin.f32 %v5423_v36, %v5668_v13 }
 0x42a   : > { %v5867_v26 = vsub.f32 %v2090_v5, %v2290_v11  ;;  %2630 = vperm.xlu1 %3683, %v5728_v61   ;;  %v1498_v11 = vmin.f32 %v5406_v1, %v5668_v13  ;;  %v2294_v61 = vmax.f32 %v5505_v48, %v5619_v49  ;;  %v1509_v1 = vmin.f32 %v5431_v50, %v5664_v6 }
 0x42b   : > { %v1991_v45 = vpop.permute.xlu1 %1990  ;;  %v1510_v48 = vmin.f32 %v5431_v50, %v5668_v13  ;;  %v5905_v8 = vsub.f32 %v1497_v47, %v8140_v33  ;;  %v5920_v47 = vpop.permute.xlu0 %2550 }
 0x42c   : > { %8134 = vst [vmem:[#allocation10_spill] sm:$0xff] %v5867_v26  ;;  %v2094_v5 = vmin.f32 %v1991_v45, %v5615_v55  ;;  %v1505_v26 = vmin.f32 %v5423_v36, %v5664_v6  ;;  %v1513_v36 = vmin.f32 %v5439_v0, %v5664_v6  ;;  %v8144_v0 = vmax.f32 %v8109_v46, %v5662_v63 }
 0x42d   : > { %8141 = vst [vmem:[#allocation78_spill] sm:$0xff] %v5905_v8 }
 0x42e   : > { %v5897_v45 = vsub.f32 %v2094_v5, %v2294_v61  ;;  %2640 = vperm.xlu1 %3683, %v5735_v31   ;;  %v8142_v31 = vmax.f32 %v8105_v40, %v5666_v27  ;;  %v2298_v5 = vmax.f32 %v5514_v4, %v5619_v49  ;;  %v8146_v40 = vmax.f32 %v8109_v46, %v5666_v27 }
 0x42f   : > { %v2001_v39 = vpop.permute.xlu1 %2000  ;;  %v8148_v4 = vmax.f32 %v8110_v18, %v5662_v63  ;;  %v8154_v46 = vmax.f32 %v8111_v51, %v5666_v27 }
 0x430   : > { %8138 = vst [vmem:[#allocation135_spill] sm:$0xff] %v5897_v45  ;;  %v5916_v61 = vsub.f32 %v1498_v11, %v8142_v31  ;;  %v2098_v33 = vmin.f32 %v2001_v39, %v5615_v55  ;;  %v5928_v45 = vsub.f32 %v1501_v20, %v8144_v0  ;;  %v5933_v11 = vsub.f32 %v1502_v22, %v8146_v40 }
 0x431   : > { %v5938_v31 = vsub.f32 %v1505_v26, %v8148_v4  ;;  %v8150_v39 = vmax.f32 %v8110_v18, %v5666_v27  ;;  %v5948_v20 = vsub.f32 %v1509_v1, %v8152_v43  ;;  %v5953_v22 = vsub.f32 %v1510_v48, %v8154_v46  ;;  %v5985_v26 = vpop.permute.xlu0 %2565 }
 0x432   : > { %8143 = vst [vmem:[#allocation80_spill] sm:$0xff] %v5916_v61  ;;  %8145 = vst [vmem:[#allocation136_spill] sm:$0xff] %v5928_v45  ;;  %v5955_v0 = vsub.f32 %v2098_v33, %v2298_v5  ;;  %2650 = vperm.xlu1 %3683, %v5738_v57   ;;  %v8159_v43 = vmax.f32 %v8112_v14, %v5666_v27  ;;  %v8162_v33 = vld [vmem:[#allocation15_spill] sm:$0xff]  ;;  %v8175_v45 = vld [vmem:[#allocation93_spill] sm:$0xff] }
 0x433   : > { %8147 = vst [vmem:[#allocation87_spill] sm:$0xff] %v5933_v11  ;;  %8149 = vst [vmem:[#allocation96_spill] sm:$0xff] %v5938_v31  ;;  %v5943_v50 = vsub.f32 %v1506_v10, %v8150_v39  ;;  %v8157_v10 = vmax.f32 %v8112_v14, %v5662_v63  ;;  %v2011_v1 = vpop.permute.xlu1 %2010  ;;  %v2302_v4 = vmax.f32 %v8162_v33, %v5619_v49  ;;  %v8166_v14 = vld [vmem:[#allocation21_spill] sm:$0xff] }
 0x434   : > { %8153 = vst [vmem:[#allocation97_spill] sm:$0xff] %v5948_v20  ;;  %8155 = vst [vmem:[#allocation98_spill] sm:$0xff] %v5953_v22  ;;  %v5969_v51 = vsub.f32 %v1514_v28, %v8159_v43  ;;  %v2102_v39 = vmin.f32 %v2011_v1, %v5615_v55  ;;  %v8165_v43 = vld [vmem:[#allocation28_spill] sm:$0xff]  ;;  %v1507_v46 = vmin.f32 %v8175_v45, %v5664_v6 }
 0x435   : > { %8151 = vst [vmem:[#allocation62_spill] sm:$0xff] %v5943_v50  ;;  %8156 = vst [vmem:[#allocation99_spill] sm:$0xff] %v5955_v0  ;;  %v5964_v40 = vsub.f32 %v1513_v36, %v8157_v10  ;;  %v2306_v48 = vmax.f32 %v8165_v43, %v5619_v49  ;;  %v8167_v36 = vld [vmem:[#allocation31_spill] sm:$0xff]  ;;  %v8168_v10 = vld [vmem:[#allocation37_spill] sm:$0xff] }
 0x436   : > { %8160 = vst [vmem:[#allocation101_spill] sm:$0xff] %v5969_v51  ;;  %v5987_v33 = vsub.f32 %v2102_v39, %v2302_v4  ;;  %2660 = vperm.xlu1 %3683, %v5741_v3   ;;  %v1493_v4 = vmin.f32 %v8166_v14, %v5664_v6  ;;  %v1494_v3 = vmin.f32 %v8166_v14, %v5668_v13 }
 0x437   : > { %8158 = vst [vmem:[#allocation100_spill] sm:$0xff] %v5964_v40  ;;  %v2021_v28 = vpop.permute.xlu1 %2020  ;;  %v1693_v1 = vmax.f32 %v8167_v36, %v5662_v63  ;;  %v1694_v18 = vmax.f32 %v8167_v36, %v5666_v27  ;;  %v1499_v5 = vmin.f32 %v8168_v10, %v5664_v6  ;;  %v1500_v43 = vmin.f32 %v8168_v10, %v5668_v13  ;;  %v8172_v36 = vld [vmem:[#allocation17_spill] sm:$0xff]  ;;  %v8173_v10 = vld [vmem:[#allocation18_spill] sm:$0xff] }
 0x438   : > { %8163 = vst [vmem:[#allocation102_spill] sm:$0xff] %v5987_v33  ;;  %v2106_v39 = vmin.f32 %v2021_v28, %v5615_v55  ;;  %v8169_v33 = vld [vmem:[#allocation32_spill] sm:$0xff]  ;;  %v1699_v22 = vmax.f32 %v8172_v36, %v5662_v63  ;;  %v1700_v20 = vmax.f32 %v8172_v36, %v5666_v27  ;;  %v1703_v50 = vmax.f32 %v8173_v10, %v5662_v63 }
 0x439   : > { %v2310_v0 = vmax.f32 %v8169_v33, %v5619_v49  ;;  %v8174_v33 = vld [vmem:[#allocation94_spill] sm:$0xff]  ;;  %v6028_v11 = vsub.f32 %v1493_v4, %v1693_v1  ;;  %v6030_v28 = vsub.f32 %v1494_v3, %v1694_v18  ;;  %v1508_v1 = vmin.f32 %v8175_v45, %v5668_v13 }
 0x43a   : > { %v6017_v40 = vsub.f32 %v2106_v39, %v2306_v48  ;;  %2670 = vperm.xlu1 %3683, %v5744_v62   ;;  %v1503_v31 = vmin.f32 %v8174_v33, %v5664_v6  ;;  %v1504_v62 = vmin.f32 %v8174_v33, %v5668_v13  ;;  %v6034_v48 = vpop.permute.xlu0 %2575  ;;  %v6039_v36 = vsub.f32 %v1500_v43, %v1700_v20  ;;  %v8178_v20 = vld [vmem:[#allocation19_spill] sm:$0xff] }
 0x43b   : > { %v2031_v14 = vpop.permute.xlu1 %2030  ;;  %v1704_v18 = vmax.f32 %v8173_v10, %v5666_v27  ;;  %v6051_v3 = vadd.s32 8, %v8053_v25  ;;  %v2314_v43 = vmax.f32 %v8178_v20, %v5619_v49  ;;  %v8184_v20 = vld [vmem:[#allocation35_spill] sm:$0xff] }
 0x43c   : > { %8171 = vst [vmem:[#allocation103_spill] sm:$0xff] %v6017_v40  ;;  %v2110_v39 = vmin.f32 %v2031_v14, %v5615_v55  ;;  %v6037_v40 = vsub.f32 %v1499_v5, %v1699_v22  ;;  %v8177_v22 = vlaneseq  ;;  %v8179_v14 = vld [vmem:[#allocation33_spill] sm:$0xff]  ;;  %v6062_v10 = vsub.f32 %v1503_v31, %v1703_v50  ;;  %v8180_v50 = vld [vmem:[#allocation34_spill] sm:$0xff] }
 0x43d   : > { %v1707_v33 = vmax.f32 %v8179_v14, %v5662_v63  ;;  %v1708_v45 = vmax.f32 %v8179_v14, %v5666_v27  ;;  %v1711_v31 = vmax.f32 %v8180_v50, %v5662_v63  ;;  %v1715_v61 = vmax.f32 %v8184_v20, %v5662_v63 }
 0x43e   : > { %v6047_v4 = vsub.f32 %v2110_v39, %v2310_v0  ;;  %2680 = vperm.xlu1 %3683, %v5753_v34   ;;  %v6054_v5 = vand.u32 127, %v8177_v22  ;;  %v1821_v34 = vmax.f32 %v6028_v11, 0.0  ;;  %v1822_v39 = vmax.f32 %v6030_v28, 0.0  ;;  %v8181_v28 = vld [vmem:[#allocation25_spill] sm:$0xff] }
 0x43f   : > { %v2041_v0 = vpop.permute.xlu1 %2040  ;;  %v6071_v8 = vsub.f32 %v1507_v46, %v1707_v33  ;;  %v6073_v19 = vsub.f32 %v1508_v1, %v1708_v45  ;;  %v1712_v11 = vmax.f32 %v8180_v50, %v5666_v27  ;;  %v1512_v1 = vmin.f32 %v8181_v28, %v5668_v13  ;;  %v8183_v33 = vld [vmem:[#allocation124_spill] sm:$0xff]  ;;  %v8185_v50 = vld [vmem:[#allocation23_spill] sm:$0xff] }
 0x440   : > { %8176 = vst [vmem:[#allocation104_spill] sm:$0xff] %v6047_v4  ;;  %v6066_v4 = vsub.f32 %v1504_v62, %v1704_v18  ;;  %v2114_v22 = vmin.f32 %v2041_v0, %v5615_v55  ;;  %v1511_v62 = vmin.f32 %v8181_v28, %v5664_v6  ;;  %v6081_v18 = vpop.permute.xlu0 %2585  ;;  %v1515_v45 = vmin.f32 %v8183_v33, %v5664_v6 }
 0x441   : > { %v6092_v0 = vadd.s32 32, %v8053_v25  ;;  %v1719_v12 = vmax.f32 %v8185_v50, %v5662_v63  ;;  %v6115_v28 = vsub.f32 %v1512_v1, %v1712_v11  ;;  %vm2969_vm6 = vcmp.lt.s32.totalorder %v6051_v3, %v6054_v5  ;;  %v8189_v11 = vld [vmem:[#allocation130_spill] sm:$0xff] }
 0x442   : > { %v6083_v14 = vsub.f32 %v2114_v22, %v2314_v43  ;;  %2690 = vperm.xlu1 %3683, %v5756_v37   ;;  %v1716_v43 = vmax.f32 %v8184_v20, %v5666_v27  ;;  %v1516_v37 = vmin.f32 %v8183_v33, %v5668_v13  ;;  %v6105_v57 = vsub.f32 %v1511_v62, %v1711_v31 }
 0x443   : > { %v1720_v20 = vmax.f32 %v8185_v50, %v5666_v27  ;;  %v6113_v33 = vadd.s32 48, %v8053_v25  ;;  %v6117_v46 = vsub.f32 %v1515_v45, %v1715_v61  ;;  %v8186_v31 = vmin.f32 %v8120_v59, %v5613_v44 }
 0x444   : > { %8182 = vst [vmem:[#allocation105_spill] sm:$0xff] %v6083_v14  ;;  %v2121_v22 = vpop.permute.xlu1 %2120  ;;  %v6127_v41 = vsub.f32 %v1516_v37, %v1716_v43  ;;  %v2055_v61 = vmin.f32 %v8189_v11, %v5613_v44  ;;  %v2056_v1 = vmin.f32 %v8189_v11, %v5615_v55  ;;  %v6135_v45 = vpop.permute.xlu0 %2595  ;;  %v8190_v43 = vld [vmem:[#allocation50_spill] sm:$0xff]  ;;  %v2714_v11 = vadd.f32 %v5681_v54, %v5920_v47 }
 0x445   : > { %v2253_v14 = vmax.f32 %v2121_v22, %v5617_v30  ;;  %v2254_v52 = vmax.f32 %v2121_v22, %v5619_v49  ;;  %v8187_v22 = vmin.f32 %v8120_v59, %v5615_v55  ;;  %v1524_v37 = vmin.f32 %v8190_v43, %v5668_v13 }
 0x446   : > { %2700 = vperm.xlu1 %3683, %v5759_v42   ;;  %v8188_v42 = vld [vmem:[#allocation126_spill] sm:$0xff]  ;;  %v1724_v43 = vmax.f32 %v8192_v60, %v5666_v27  ;;  %v8193_v60 = vld [vmem:[#allocation24_spill] sm:$0xff]  ;;  %vm2975_vm7 = vcmp.lt.s32.totalorder %v6092_v0, %v6054_v5  ;;  %vm2979_vm11 = vcmp.lt.s32.totalorder %v6113_v33, %v6054_v5  ;;  %v8215_v0 = vmin.f32 %v8125_v15, %v5613_v44 }
 0x447   : > { %v2317_v62 = vsub.f32 %v8186_v31, %v2253_v14  ;;  %v2318_v50 = vsub.f32 %v8187_v22, %v2254_v52  ;;  %v1519_v9 = vmin.f32 %v8188_v42, %v5664_v6  ;;  %v1520_v59 = vmin.f32 %v8188_v42, %v5668_v13 }
 0x448   : > { %v2125_v56 = vpop.permute.xlu1 %2124  ;;  %v2713_v22 = vadd.f32 %v5679_v58, %v5920_v47  ;;  %v8204_v42 = vmax.f32 %v6039_v36, 0.0  ;;  %v8205_v36 = vmax.f32 %v6062_v10, 0.0  ;;  %v2728_v10 = vadd.f32 %v5681_v54, %v6081_v18 }
 0x449   : > { %v2381_v53 = vmax.f32 %v2317_v62, 0.0  ;;  %v2382_v14 = vmax.f32 %v2318_v50, 0.0  ;;  %v2255_v31 = vmax.f32 %v2125_v56, %v5617_v30  ;;  %v2256_v52 = vmax.f32 %v2125_v56, %v5619_v49 }
 0x44a   : > { %v6157_v63 = vsub.f32 %v1519_v9, %v1719_v12  ;;  %v1728_v9 = vmax.f32 %v8193_v60, %v5666_v27  ;;  %v2720_v60 = vadd.f32 %v5681_v54, %v5985_v26 }
 0x44b   : > { %v2445_v35 = vmul.f32 %v2381_v53, %v1821_v34  ;;  %v6147_v6 = vmul.f32 %v2382_v14, %v1822_v39  ;;  %v6149_v62 = vsub.f32 %v2055_v61, %v2255_v31  ;;  %v6151_v50 = vsub.f32 %v2056_v1, %v2256_v52  ;;  %v6167_v1 = vpop.permute.xlu0 %2605 }
 0x44c   : > { %v2133_v51 = vpop.permute.xlu1 %2132  ;;  %v6162_v34 = vadd.s32 64, %v8053_v25  ;;  %v6165_v61 = vsub.f32 %v1520_v59, %v1720_v20  ;;  %v6173_v31 = vsub.f32 %v1524_v37, %v1724_v43  ;;  %v8195_v20 = vmin.f32 %v8121_v2, %v5613_v44 }
 0x44d   : > { %8191 = vst [vmem:[#allocation107_spill] sm:$0xff] %v6147_v6  ;;  %v2777_v47 = vsub.f32 %v2713_v22, %v2445_v35  ;;  %v2778_v53 = vsub.f32 %v2714_v11, %v6147_v6  ;;  %v2259_v14 = vmax.f32 %v2133_v51, %v5617_v30  ;;  %v2260_v12 = vmax.f32 %v2133_v51, %v5619_v49 }
 0x44e   : > { %v8196_v51 = vmin.f32 %v8121_v2, %v5615_v55  ;;  %v6187_v37 = vadd.s32 80, %v8053_v25  ;;  %v8197_v2 = vmov 0  ;;  %vm2983_vm12 = vcmp.lt.s32.totalorder %v6162_v34, %v6054_v5 }
 0x44f   : > { %v2841_v52 = vmul.f32 0.5, %v2777_v47  ;;  %v6175_v22 = vmul.f32 0.5, %v2778_v53  ;;  %v2323_v59 = vsub.f32 %v8195_v20, %v2259_v14  ;;  %v6219_v53 = vpop.permute.xlu0 %2615  ;;  %v8226_v34 = vmin.f32 %v8128_v32, %v5613_v44 }
 0x450   : > { %v2324_v39 = vsub.f32 %v8196_v51, %v2260_v12  ;;  %v2141_v21 = vpop.permute.xlu1 %2140  ;;  %v8202_v51 = vmin.f32 %v8122_v29, %v5615_v55  ;;  %vm2987_vm0 = vcmp.lt.s32.totalorder %v6187_v37, %v6054_v5 }
 0x451   : > { %8194 = vst [vmem:[#allocation109_spill] sm:$0xff] %v6175_v22  ;;  %vm2905_vm8 = vcmp.gt.f32.partialorder %v2445_v35, %v2841_v52  ;;  %v2263_v43 = vmax.f32 %v2141_v21, %v5617_v30  ;;  %v2264_v47 = vmax.f32 %v2141_v21, %v5619_v49  ;;  %v2387_v14 = vmax.f32 %v2323_v59, 0.0  ;;  %v8200_v52 = vld [vmem:[#allocation52_spill] sm:$0xff] }
 0x452   : > { %vm6197_vm10 = vmand %vm2905_vm8, %vm2969_vm6  ;;  %v2388_v12 = vmax.f32 %v2324_v39, 0.0  ;;  %v6202_v35 = vadd.s32 96, %v8053_v25  ;;  %v1528_v20 = vmin.f32 %v8200_v52, %v5668_v13  ;;  %v8201_v21 = vmin.f32 %v8122_v29, %v5613_v44 }
 0x453   : > { %v8198_v2 = vsel %vm6197_vm10, 4294967295, %v8197_v2  ;;  %v2328_v59 = vsub.f32 %v8202_v51, %v2264_v47  ;;  %v2719_v39 = vadd.f32 %v5679_v58, %v5985_v26  ;;  %v8203_v52 = vmax.f32 %v6037_v40, 0.0 }
 0x454   : > { %8199 = vst [vmem:[#allocation51_spill] sm:$0xff] %v8198_v2  ;;  %v2327_v3 = vsub.f32 %v8201_v21, %v2263_v43  ;;  %v6225_v56 = vmul.f32 %v2388_v12, %v8204_v42  ;;  %v2149_v43 = vpop.permute.xlu1 %2148  ;;  %v2723_v51 = vadd.f32 %v5679_v58, %v6034_v48  ;;  %v2724_v26 = vadd.f32 %v5681_v54, %v6034_v48 }
 0x455   : > { %v2451_v11 = vmul.f32 %v2387_v14, %v8203_v52  ;;  %v2392_v2 = vmax.f32 %v2328_v59, 0.0  ;;  %v2267_v29 = vmax.f32 %v2149_v43, %v5617_v30  ;;  %v2268_v47 = vmax.f32 %v2149_v43, %v5619_v49 }
 0x456   : > { %v2391_v21 = vmax.f32 %v2327_v3, 0.0  ;;  %v2784_v40 = vsub.f32 %v2720_v60, %v6225_v56  ;;  %v8206_v14 = vmax.f32 %v6066_v4, 0.0  ;;  %v8207_v3 = vmin.f32 %v8124_v7, %v5613_v44 }
 0x457   : > { %v2783_v22 = vsub.f32 %v2719_v39, %v2451_v11  ;;  %v8208_v48 = vmin.f32 %v8124_v7, %v5615_v55  ;;  %v2727_v60 = vadd.f32 %v5679_v58, %v6081_v18  ;;  %v8210_v18 = vmov 0 }
 0x458   : > { %v2455_v42 = vmul.f32 %v2391_v21, %v8205_v36  ;;  %v6238_v12 = vmul.f32 %v2392_v2, %v8206_v14  ;;  %v2331_v59 = vsub.f32 %v8207_v3, %v2267_v29  ;;  %v6252_v2 = vmul.f32 0.5, %v2784_v40  ;;  %v2157_v52 = vpop.permute.xlu1 %2156  ;;  %v6255_v29 = vpop.permute.xlu0 %2625 }
 0x459   : > { %v2332_v39 = vsub.f32 %v8208_v48, %v2268_v47  ;;  %v2847_v4 = vmul.f32 0.5, %v2783_v22  ;;  %v2271_v7 = vmax.f32 %v2157_v52, %v5617_v30  ;;  %v2272_v47 = vmax.f32 %v2157_v52, %v5619_v49 }
 0x45a   : > { %8209 = vst [vmem:[#allocation110_spill] sm:$0xff] %v6252_v2  ;;  %v2787_v43 = vsub.f32 %v2723_v51, %v2455_v42  ;;  %v2788_v21 = vsub.f32 %v2724_v26, %v6238_v12  ;;  %v2395_v36 = vmax.f32 %v2331_v59, 0.0  ;;  %v8212_v26 = vmax.f32 %v6071_v8, 0.0 }
 0x45b   : > { %v2396_v14 = vmax.f32 %v2332_v39, 0.0  ;;  %vm2911_vm13 = vcmp.gt.f32.partialorder %v2451_v11, %v2847_v4  ;;  %v8213_v40 = vmax.f32 %v6073_v19, 0.0  ;;  %v6276_v59 = vsub.f32 %v1528_v20, %v1728_v9 }
 0x45c   : > { %vm6264_vm15 = vmand %vm2911_vm13, %vm2975_vm7  ;;  %v2851_v22 = vmul.f32 0.5, %v2787_v43  ;;  %v6268_v51 = vmul.f32 0.5, %v2788_v21  ;;  %v2459_v11 = vmul.f32 %v2395_v36, %v8212_v26  ;;  %v2335_v48 = vsub.f32 %v8215_v0, %v2271_v7  ;;  %v2165_v52 = vpop.permute.xlu1 %2164  ;;  %v6307_v33 = vpop.permute.xlu0 %2635 }
 0x45d   : > { %v8211_v18 = vsel %vm6264_vm15, 4294967295, %v8210_v18  ;;  %v6274_v3 = vmul.f32 %v2396_v14, %v8213_v40  ;;  %v8216_v39 = vmin.f32 %v8125_v15, %v5615_v55  ;;  %v6287_v8 = vadd.s32 112, %v8053_v25 }
 0x45e   : > { %vm2915_vm1 = vcmp.gt.f32.partialorder %v2455_v42, %v2851_v22  ;;  %v2791_v19 = vsub.f32 %v2727_v60, %v2459_v11  ;;  %v8217_v20 = vmov 0  ;;  %v2399_v15 = vmax.f32 %v2335_v48, 0.0 }
 0x45f   : > { %8214 = vst [vmem:[#allocation53_spill] sm:$0xff] %v6274_v3  ;;  %v2336_v4 = vsub.f32 %v8216_v39, %v2272_v47  ;;  %v2792_v9 = vsub.f32 %v2728_v10, %v6274_v3  ;;  %vm6295_vm3 = vmand %vm2915_vm1, %vm2979_vm11  ;;  %v2275_v21 = vmax.f32 %v2165_v52, %v5617_v30  ;;  %v2276_v36 = vmax.f32 %v2165_v52, %v5619_v49 }
 0x460   : > { %v8218_v20 = vsel %vm6295_vm3, 4294967295, %v8217_v20  ;;  %v2731_v42 = vadd.f32 %v5679_v58, %v6135_v45  ;;  %v2732_v60 = vadd.f32 %v5681_v54, %v6135_v45  ;;  %v2855_v10 = vmul.f32 0.5, %v2791_v19  ;;  %v2173_v39 = vpop.permute.xlu1 %2172 }
 0x461   : > { %v2400_v43 = vmax.f32 %v2336_v4, 0.0  ;;  %v6305_v14 = vmul.f32 0.5, %v2792_v9  ;;  %v8219_v7 = vmax.f32 %v6105_v57, 0.0  ;;  %v8220_v22 = vmax.f32 %v6115_v28, 0.0 }
 0x462   : > { %vm2991_vm4 = vcmp.lt.s32.totalorder %v6202_v35, %v6054_v5  ;;  %v8221_v40 = vmin.f32 %v8126_v23, %v5613_v44  ;;  %v8222_v45 = vmin.f32 %v8126_v23, %v5615_v55  ;;  %vm2919_vm5 = vcmp.gt.f32.partialorder %v2459_v11, %v2855_v10  ;;  %v8247_v35 = vld [vmem:[#allocation120_spill] sm:$0xff] }
 0x463   : > { %v2463_v47 = vmul.f32 %v2399_v15, %v8219_v7  ;;  %v6313_v26 = vmul.f32 %v2400_v43, %v8220_v22  ;;  %v2279_v57 = vmax.f32 %v2173_v39, %v5617_v30  ;;  %v2280_v28 = vmax.f32 %v2173_v39, %v5619_v49  ;;  %vm6330_vm7 = vmand %vm2919_vm5, %vm2983_vm12 }
 0x464   : > { %v2339_v0 = vsub.f32 %v8221_v40, %v2275_v21  ;;  %v2340_v48 = vsub.f32 %v8222_v45, %v2276_v36  ;;  %v8223_v4 = vmov 0  ;;  %v2735_v11 = vadd.f32 %v5679_v58, %v6167_v1  ;;  %v2181_v40 = vpop.permute.xlu1 %2180 }
 0x465   : > { %v8224_v4 = vsel %vm6330_vm7, 4294967295, %v8223_v4  ;;  %v2795_v52 = vsub.f32 %v2731_v42, %v2463_v47  ;;  %v2796_v23 = vsub.f32 %v2732_v60, %v6313_v26  ;;  %v2736_v15 = vadd.f32 %v5681_v54, %v6167_v1 }
 0x466   : > { %8225 = vst [vmem:[#allocation108_spill] sm:$0xff] %v8224_v4  ;;  %v2403_v19 = vmax.f32 %v2339_v0, 0.0  ;;  %v2404_v9 = vmax.f32 %v2340_v48, 0.0  ;;  %vm2995_vm8 = vcmp.lt.s32.totalorder %v6287_v8, %v6054_v5  ;;  %v2343_v43 = vsub.f32 %v8226_v34, %v2279_v57  ;;  %v8256_v8 = vld [vmem:[#allocation58_spill] sm:$0xff] }
 0x467   : > { %v8227_v21 = vmin.f32 %v8128_v32, %v5615_v55  ;;  %v2859_v42 = vmul.f32 0.5, %v2795_v52  ;;  %v6347_v60 = vmul.f32 0.5, %v2796_v23  ;;  %v8229_v10 = vmax.f32 %v6117_v46, 0.0  ;;  %v6358_v32 = vpop.permute.xlu0 %2645 }
 0x468   : > { %v8230_v22 = vmax.f32 %v6127_v41, 0.0  ;;  %v2739_v0 = vadd.f32 %v5679_v58, %v6219_v53  ;;  %v2407_v45 = vmax.f32 %v2343_v43, 0.0  ;;  %v2284_v39 = vmax.f32 %v2181_v40, %v5619_v49  ;;  %v2189_v43 = vpop.permute.xlu1 %2188 }
 0x469   : > { %v2344_v36 = vsub.f32 %v8227_v21, %v2280_v28  ;;  %8228 = vst [vmem:[#allocation111_spill] sm:$0xff] %v6347_v60  ;;  %v2467_v7 = vmul.f32 %v2403_v19, %v8229_v10  ;;  %vm2923_vm11 = vcmp.gt.f32.partialorder %v2463_v47, %v2859_v42  ;;  %v2740_v41 = vadd.f32 %v5681_v54, %v6219_v53 }
 0x46a   : > { %v6353_v1 = vmul.f32 %v2404_v9, %v8230_v22  ;;  %vm6368_vm13 = vmand %vm2923_vm11, %vm2987_vm0  ;;  %v8232_v28 = vmov 0  ;;  %v8235_v52 = vmax.f32 %v6157_v63, 0.0  ;;  %v8236_v47 = vmax.f32 %v6165_v61, 0.0 }
 0x46b   : > { %v2408_v48 = vmax.f32 %v2344_v36, 0.0  ;;  %v2799_v46 = vsub.f32 %v2735_v11, %v2467_v7  ;;  %v8233_v28 = vsel %vm6368_vm13, 4294967295, %v8232_v28  ;;  %v8238_v9 = vmin.f32 %v8130_v24, %v5615_v55 }
 0x46c   : > { %8231 = vst [vmem:[#allocation55_spill] sm:$0xff] %v6353_v1  ;;  %v2800_v57 = vsub.f32 %v2736_v15, %v6353_v1  ;;  %8234 = vst [vmem:[#allocation113_spill] sm:$0xff] %v8233_v28  ;;  %v2471_v23 = vmul.f32 %v2407_v45, %v8235_v52  ;;  %v1532_v53 = vmin.f32 %v5642_v38, %v5668_v13  ;;  %v2524_v34 = vadd.s32 128, %v8053_v25  ;;  %v8246_v45 = vld [vmem:[#allocation118_spill] sm:$0xff]  ;;  %v2197_v52 = vpop.permute.xlu1 %2196  ;;  %v8368_v1 = vld [vmem:[#allocation121_spill] sm:$0xff] }
 0x46d   : > { %v6376_v19 = vmul.f32 %v2408_v48, %v8236_v47  ;;  %v2348_v11 = vsub.f32 %v8238_v9, %v2284_v39  ;;  %v2863_v15 = vmul.f32 0.5, %v2799_v46  ;;  %v2288_v61 = vmax.f32 %v2189_v43, %v5619_v49  ;;  %v8248_v9 = vld [vmem:[#allocation71_spill] sm:$0xff] }
 0x46e   : > { %v6383_v37 = vmul.f32 0.5, %v2800_v57  ;;  %v2803_v21 = vsub.f32 %v2739_v0, %v2471_v23  ;;  %v2744_v42 = vadd.f32 %v5681_v54, %v6255_v29  ;;  %v6393_v38 = vadd.s32 128, %v6054_v5 }
 0x46f   : > { %8237 = vst [vmem:[#allocation57_spill] sm:$0xff] %v6376_v19  ;;  %v2804_v63 = vsub.f32 %v2740_v41, %v6376_v19  ;;  %v2412_v36 = vmax.f32 %v2348_v11, 0.0  ;;  %vm2927_vm0 = vcmp.gt.f32.partialorder %v2467_v7, %v2863_v15  ;;  %v8240_v24 = vmov 0  ;;  %v2656_v41 = vpop.permute.xlu0 %2655 }
 0x470   : > { %8239 = vst [vmem:[#allocation64_spill] sm:$0xff] %v6383_v37  ;;  %vm6398_vm5 = vmand %vm2927_vm0, %vm2991_vm4  ;;  %v2867_v10 = vmul.f32 0.5, %v2803_v21  ;;  %v8244_v40 = vmax.f32 %v6173_v31, 0.0  ;;  %v8245_v7 = vmin.f32 %v8131_v17, %v5615_v55  ;;  %v1732_v48 = vmax.f32 %v8246_v45, %v5666_v27  ;;  %v8252_v21 = vld [vmem:[#allocation16_spill] sm:$0xff]  ;;  %v8259_v45 = vld [vmem:[#allocation95_spill] sm:$0xff] }
 0x471   : > { %v8241_v24 = vsel %vm6398_vm5, 4294967295, %v8240_v24  ;;  %v6402_v22 = vmul.f32 0.5, %v2804_v63  ;;  %v1856_v39 = vmax.f32 %v6276_v59, 0.0  ;;  %v1736_v46 = vmax.f32 %v8247_v35, %v5666_v27  ;;  %v8253_v63 = vld [vmem:[#allocation84_spill] sm:$0xff]  ;;  %v2205_v35 = vpop.permute.xlu1 %2204 }
 0x472   : > { %8242 = vst [vmem:[#allocation66_spill] sm:$0xff] %v8241_v24  ;;  %v2476_v29 = vmul.f32 %v2412_v36, %v8244_v40  ;;  %v2352_v0 = vsub.f32 %v8245_v7, %v2288_v61  ;;  %v1536_v57 = vmin.f32 %v5670_v16, %v5668_v13  ;;  %vm2931_vm4 = vcmp.gt.f32.partialorder %v2471_v23, %v2867_v10  ;;  %v8255_v61 = vld [vmem:[#allocation5_spill] sm:$0xff]  ;;  %v8258_v40 = vld [vmem:[#allocation122_spill] sm:$0xff] }
 0x473   : > { %8243 = vst [vmem:[#allocation68_spill] sm:$0xff] %v6402_v22  ;;  %v1796_v47 = vsub.f32 %v1532_v53, %v1732_v48  ;;  %v1540_v11 = vmin.f32 %v8248_v9, %v5668_v13  ;;  %vm6423_vm0 = vmand %vm2931_vm4, %vm2995_vm8  ;;  %v8249_v59 = vmov 0  ;;  %vm3000_vm1 = vcmp.lt.s32.totalorder %v2524_v34, %v6393_v38  ;;  %v8269_v34 = vld [vmem:[#allocation44_spill] sm:$0xff] }
 0x474   : > { %v2808_v31 = vsub.f32 %v2744_v42, %v2476_v29  ;;  %v2416_v17 = vmax.f32 %v2352_v0, 0.0  ;;  %v8250_v59 = vsel %vm6423_vm0, 4294967295, %v8249_v59  ;;  %v2292_v16 = vmax.f32 %v2197_v52, %v5619_v49 }
 0x475   : > { %8251 = vst [vmem:[#allocation69_spill] sm:$0xff] %v8250_v59  ;;  %v2748_v23 = vadd.f32 %v5681_v54, %v6307_v33  ;;  %v2526_v53 = vadd.s32 144, %v8053_v25  ;;  %v8254_v36 = vmax.f32 %v8252_v21, %v8253_v63  ;;  %v8257_v42 = vmin.f32 %v8255_v61, %v8256_v8 }
 0x476   : > { %v2872_v15 = vmul.f32 0.5, %v2808_v31  ;;  %v2480_v43 = vmul.f32 %v2416_v17, %v1856_v39  ;;  %v1740_v7 = vmax.f32 %v8258_v40, %v5666_v27  ;;  %v1800_v0 = vsub.f32 %v1536_v57, %v1736_v46  ;;  %v2666_v46 = vpop.permute.xlu0 %2665 }
 0x477   : > { %v6438_v10 = vsub.f32 %v8257_v42, %v8254_v36  ;;  %v8260_v48 = vmin.f32 %v8259_v45, %v5615_v55  ;;  %v8261_v39 = vmax.f32 %v8252_v21, %v5666_v27  ;;  %v8262_v52 = vmin.f32 %v8255_v61, %v5668_v13  ;;  %v8266_v61 = vld [vmem:[#allocation116_spill] sm:$0xff] }
 0x478   : > { %vm2936_vm8 = vcmp.gt.f32.partialorder %v2476_v29, %v2872_v15  ;;  %v2812_v17 = vsub.f32 %v2748_v23, %v2480_v43  ;;  %v2296_v9 = vmax.f32 %v2205_v35, %v5619_v49  ;;  %v1860_v36 = vmax.f32 %v1796_v47, 0.0  ;;  %v8267_v23 = vld [vmem:[#allocation6_spill] sm:$0xff]  ;;  %v2213_v35 = vpop.permute.xlu1 %2212 }
 0x479   : > { %v2356_v33 = vsub.f32 %v8260_v48, %v2292_v16  ;;  %v6451_v31 = vsub.f32 %v8262_v52, %v8261_v39  ;;  %v1804_v42 = vsub.f32 %v1540_v11, %v1740_v7  ;;  %vm6456_vm4 = vmand %vm2936_vm8, %vm3000_vm1  ;;  %v8263_v57 = vmov 0 }
 0x47a   : > { %v8264_v57 = vsel %vm6456_vm4, 4294967295, %v8263_v57  ;;  %v2528_v16 = vadd.s32 160, %v8053_v25  ;;  %v1544_v40 = vmin.f32 %v8266_v61, %v5668_v13  ;;  %vm3004_vm11 = vcmp.lt.s32.totalorder %v2526_v53, %v6393_v38 }
 0x47b   : > { %8265 = vst [vmem:[#allocation70_spill] sm:$0xff] %v8264_v57  ;;  %v2420_v21 = vmax.f32 %v2356_v33, 0.0  ;;  %v2876_v29 = vmul.f32 0.5, %v2812_v17  ;;  %v8268_v47 = vmin.f32 %v8267_v23, %v5615_v55  ;;  %v1864_v15 = vmax.f32 %v1800_v0, 0.0  ;;  %v8270_v33 = vld [vmem:[#allocation46_spill] sm:$0xff] }
 0x47c   : > { %v1744_v7 = vmax.f32 %v8269_v34, %v5666_v27  ;;  %v2752_v45 = vadd.f32 %v5681_v54, %v6358_v32  ;;  %v1748_v39 = vmax.f32 %v8270_v33, %v5666_v27  ;;  %v2300_v53 = vmax.f32 %v2213_v35, %v5619_v49  ;;  %v8274_v23 = vld [vmem:[#allocation38_spill] sm:$0xff] }
 0x47d   : > { %v2360_v11 = vsub.f32 %v8268_v47, %v2296_v9  ;;  %v2484_v48 = vmul.f32 %v2420_v21, %v1860_v36  ;;  %vm2940_vm1 = vcmp.gt.f32.partialorder %v2480_v43, %v2876_v29  ;;  %v1868_v17 = vmax.f32 %v1804_v42, 0.0  ;;  %v8276_v47 = vld [vmem:[#allocation125_spill] sm:$0xff] }
 0x47e   : > { %vm6474_vm8 = vmand %vm2940_vm1, %vm3004_vm11  ;;  %v8271_v61 = vmov 0  ;;  %vm3008_vm12 = vcmp.lt.s32.totalorder %v2528_v16, %v6393_v38  ;;  %v2530_v9 = vadd.s32 176, %v8053_v25  ;;  %v1808_v32 = vsub.f32 %v1544_v40, %v1744_v7  ;;  %v8278_v40 = vld [vmem:[#allocation48_spill] sm:$0xff] }
 0x47f   : > { %v2424_v52 = vmax.f32 %v2360_v11, 0.0  ;;  %v8272_v61 = vsel %vm6474_vm8, 4294967295, %v8271_v61  ;;  %v2816_v0 = vsub.f32 %v2752_v45, %v2484_v48  ;;  %v2756_v36 = vadd.f32 %v5681_v54, %v2656_v41  ;;  %v8277_v11 = vld [vmem:[#allocation128_spill] sm:$0xff]  ;;  %v2676_v45 = vpop.permute.xlu0 %2675 }
 0x480   : > { %8273 = vst [vmem:[#allocation137_spill] sm:$0xff] %v8272_v61  ;;  %v8275_v43 = vmin.f32 %v8274_v23, %v5615_v55  ;;  %v1548_v42 = vmin.f32 %v8276_v47, %v5668_v13  ;;  %v2051_v34 = vmin.f32 %v8277_v11, %v5613_v44  ;;  %v2052_v35 = vmin.f32 %v8277_v11, %v5615_v55  ;;  %v2221_v61 = vpop.permute.xlu1 %2220  ;;  %v8283_v47 = vld [vmem:[#allocation7_spill] sm:$0xff] }
 0x481   : > { %v2488_v21 = vmul.f32 %v2424_v52, %v1864_v15  ;;  %v2880_v33 = vmul.f32 0.5, %v2816_v0  ;;  %v1752_v41 = vmax.f32 %v8278_v40, %v5666_v27  ;;  %v2304_v52 = vmax.f32 %v2221_v61, %v5619_v49 }
 0x482   : > { %v2364_v29 = vsub.f32 %v8275_v43, %v2300_v53  ;;  %v8279_v53 = vld [vmem:[#allocation133_spill] sm:$0xff]  ;;  %vm3012_vm1 = vcmp.lt.s32.totalorder %v2530_v9, %v6393_v38  ;;  %v2532_v44 = vadd.s32 192, %v8053_v25  ;;  %v2760_v43 = vadd.f32 %v5681_v54, %v2666_v46 }
 0x483   : > { %v2820_v15 = vsub.f32 %v2756_v36, %v2488_v21  ;;  %v1552_v23 = vmin.f32 %v8279_v53, %v5668_v13  ;;  %vm2944_vm11 = vcmp.gt.f32.partialorder %v2484_v48, %v2880_v33  ;;  %v8280_v0 = vmov 0  ;;  %v8285_v33 = vld [vmem:[#allocation88_spill] sm:$0xff] }
 0x484   : > { %v2428_v7 = vmax.f32 %v2364_v29, 0.0  ;;  %vm6500_vm6 = vmand %vm2944_vm11, %vm3008_vm12  ;;  %v8284_v61 = vmin.f32 %v8283_v47, %v5615_v55  ;;  %v1872_v40 = vmax.f32 %v1808_v32, 0.0  ;;  %v1812_v48 = vsub.f32 %v1548_v42, %v1748_v39  ;;  %v2229_v59 = vpop.permute.xlu1 %2228 }
 0x485   : > { %v8281_v0 = vsel %vm6500_vm6, 4294967295, %v8280_v0  ;;  %v2884_v36 = vmul.f32 0.5, %v2820_v15  ;;  %v8286_v53 = vmax.f32 %v8285_v33, %v5617_v30  ;;  %v8287_v46 = vmax.f32 %v8285_v33, %v5619_v49 }
 0x486   : > { %8282 = vst [vmem:[#allocation138_spill] sm:$0xff] %v8281_v0  ;;  %v2492_v29 = vmul.f32 %v2428_v7, %v1868_v17  ;;  %v2368_v11 = vsub.f32 %v8284_v61, %v2304_v52  ;;  %v2308_v17 = vmax.f32 %v2229_v59, %v5619_v49  ;;  %v1823_v15 = vmax.f32 %v6438_v10, 0.0  ;;  %v2686_v52 = vpop.permute.xlu0 %2685 }
 0x487   : > { %v2315_v57 = vsub.f32 %v2051_v34, %v8286_v53  ;;  %v2316_v16 = vsub.f32 %v2052_v35, %v8287_v46  ;;  %vm2948_vm12 = vcmp.gt.f32.partialorder %v2488_v21, %v2884_v36  ;;  %v1816_v7 = vsub.f32 %v1552_v23, %v1752_v41  ;;  %v8291_v34 = vld [vmem:[#allocation39_spill] sm:$0xff] }
 0x488   : > { %v2824_v22 = vsub.f32 %v2760_v43, %v2492_v29  ;;  %v2432_v0 = vmax.f32 %v2368_v11, 0.0  ;;  %vm6517_vm11 = vmand %vm2948_vm12, %vm3012_vm1  ;;  %v8288_v39 = vmov 0  ;;  %vm3016_vm2 = vcmp.lt.s32.totalorder %v2532_v44, %v6393_v38  ;;  %v2237_v43 = vpop.permute.xlu1 %2236  ;;  %v8298_v44 = vld [vmem:[#allocation129_spill] sm:$0xff] }
 0x489   : > { %v8289_v39 = vsel %vm6517_vm11, 4294967295, %v8288_v39  ;;  %v2534_v30 = vadd.s32 208, %v8053_v25  ;;  %v2764_v32 = vadd.f32 %v5681_v54, %v2676_v45  ;;  %v8292_v59 = vmin.f32 %v8291_v34, %v5615_v55 }
 0x48a   : > { %8290 = vst [vmem:[#allocation139_spill] sm:$0xff] %v8289_v39  ;;  %v2888_v21 = vmul.f32 0.5, %v2824_v22  ;;  %v2496_v42 = vmul.f32 %v2432_v0, %v1872_v40  ;;  %v1876_v35 = vmax.f32 %v1812_v48, 0.0  ;;  %v2379_v41 = vmax.f32 %v2315_v57, 0.0  ;;  %v8296_v48 = vld [vmem:[#allocation8_spill] sm:$0xff] }
 0x48b   : > { %v2372_v10 = vsub.f32 %v8292_v59, %v2308_v17  ;;  %v2380_v23 = vmax.f32 %v2316_v16, 0.0  ;;  %v2536_v9 = vadd.s32 224, %v8053_v25  ;;  %v2312_v61 = vmax.f32 %v2237_v43, %v5619_v49  ;;  %v8300_v17 = vld [vmem:[#allocation131_spill] sm:$0xff] }
 0x48c   : > { %vm2952_vm1 = vcmp.gt.f32.partialorder %v2492_v29, %v2888_v21  ;;  %v2828_v36 = vsub.f32 %v2764_v32, %v2496_v42  ;;  %v1824_v11 = vmax.f32 %v6451_v31, 0.0  ;;  %v1880_v45 = vmax.f32 %v1816_v7, 0.0  ;;  %v2696_v31 = vpop.permute.xlu0 %2695  ;;  %v2546_v59 = vpop.permute.xlu1 %2545 }
 0x48d   : > { %v2436_v47 = vmax.f32 %v2372_v10, 0.0  ;;  %vm6532_vm12 = vmand %vm2952_vm1, %vm3016_vm2  ;;  %v8293_v22 = vmov 0  ;;  %vm3020_vm14 = vcmp.lt.s32.totalorder %v2534_v30, %v6393_v38  ;;  %v2538_v57 = vadd.s32 240, %v8053_v25 }
 0x48e   : > { %v8294_v22 = vsel %vm6532_vm12, 4294967295, %v8293_v22  ;;  %v2768_v0 = vadd.f32 %v5681_v54, %v2686_v52  ;;  %v2892_v29 = vmul.f32 0.5, %v2828_v36  ;;  %v8297_v49 = vmin.f32 %v8296_v48, %v5615_v55  ;;  %v8302_v55 = vld [vmem:[#allocation132_spill] sm:$0xff] }
 0x48f   : > { %8295 = vst [vmem:[#allocation82_spill] sm:$0xff] %v8294_v22  ;;  %v2500_v40 = vmul.f32 %v2436_v47, %v1876_v35  ;;  %v2383_v53 = vmax.f32 %v6149_v62, 0.0  ;;  %v8299_v46 = vmax.f32 %v8298_v44, 0.0  ;;  %v8301_v7 = vmax.f32 %v8300_v17, 0.0  ;;  %v8303_v35 = vld [vmem:[#allocation54_spill] sm:$0xff] }
 0x490   : > { %v2376_v33 = vsub.f32 %v8297_v49, %v2312_v61  ;;  %v2384_v52 = vmax.f32 %v6151_v50, 0.0  ;;  %vm2956_vm1 = vcmp.gt.f32.partialorder %v2496_v42, %v2892_v29  ;;  %v2385_v10 = vmax.f32 %v8302_v55, 0.0  ;;  %v2556_v29 = vpop.permute.xlu1 %2555 }
 0x491   : > { %v2443_v16 = vmul.f32 %v2379_v41, %v8299_v46  ;;  %v6548_v32 = vmul.f32 %v2380_v23, %v8301_v7  ;;  %v2832_v21 = vsub.f32 %v2768_v0, %v2500_v40  ;;  %v2386_v43 = vmax.f32 %v8303_v35, 0.0  ;;  %vm6555_vm9 = vmand %vm2956_vm1, %vm3020_vm14  ;;  %v8311_v7 = vld [vmem:[#allocation78_spill] sm:$0xff]  ;;  %v8316_v35 = vld [vmem:[#allocation56_spill] sm:$0xff] }
 0x492   : > { %v2440_v34 = vmax.f32 %v2376_v33, 0.0  ;;  %v8304_v62 = vmov 0  ;;  %v2711_v41 = vadd.f32 %v5679_v58, %v2546_v59  ;;  %v2712_v23 = vadd.f32 %v5681_v54, %v2546_v59  ;;  %v8315_v59 = vld [vmem:[#allocation134_spill] sm:$0xff] }
 0x493   : > { %v8305_v62 = vsel %vm6555_vm9, 4294967295, %v8304_v62  ;;  %v2772_v50 = vadd.f32 %v5681_v54, %v2696_v31  ;;  %v2896_v42 = vmul.f32 0.5, %v2832_v21  ;;  %vm2967_vm12 = vcmp.lt.s32.totalorder %v8053_v25, %v6054_v5 }
 0x494   : > { %8306 = vst [vmem:[#allocation85_spill] sm:$0xff] %v8305_v62  ;;  %v2504_v36 = vmul.f32 %v2440_v34, %v1880_v45  ;;  %v2775_v47 = vsub.f32 %v2711_v41, %v2443_v16  ;;  %v2776_v30 = vsub.f32 %v2712_v23, %v6548_v32  ;;  %v2510_v61 = vadd.s32 16, %v8053_v25 }
 0x495   : > { %vm2960_vm14 = vcmp.gt.f32.partialorder %v2500_v40, %v2896_v42  ;;  %v2447_v48 = vmul.f32 %v2383_v53, %v1823_v15  ;;  %v6567_v49 = vmul.f32 %v2384_v52, %v1824_v11  ;;  %vm8307_vm1 = vcmp.lt.s32.totalorder %v2536_v9, %v6393_v38  ;;  %v8313_v53 = vld [vmem:[#allocation80_spill] sm:$0xff] }
 0x496   : > { %v2836_v0 = vsub.f32 %v2772_v50, %v2504_v36  ;;  %vm6571_vm9 = vmand %vm2960_vm14, %vm8307_vm1  ;;  %v8308_v33 = vmov 0  ;;  %v2839_v45 = vmul.f32 0.5, %v2775_v47  ;;  %v6575_v31 = vmul.f32 0.5, %v2776_v30  ;;  %v8323_v47 = vld [vmem:[#allocation73_spill] sm:$0xff] }
 0x497   : > { %v8309_v33 = vsel %vm6571_vm9, 4294967295, %v8308_v33  ;;  %v2715_v44 = vadd.f32 %v5679_v58, %v2556_v29  ;;  %v2716_v46 = vadd.f32 %v5681_v54, %v2556_v29  ;;  %v2511_v40 = vadd.s32 24, %v8053_v25 }
 0x498   : > { %8310 = vst [vmem:[#allocation40_spill] sm:$0xff] %v8309_v33  ;;  %v2900_v17 = vmul.f32 0.5, %v2836_v0  ;;  %v8312_v15 = vmax.f32 %v8311_v7, 0.0  ;;  %v8314_v52 = vmax.f32 %v8313_v53, 0.0  ;;  %vm2903_vm14 = vcmp.gt.f32.partialorder %v2443_v16, %v2839_v45  ;;  %v2561_v16 = vpop.permute.xlu1 %2560  ;;  %v8325_v0 = vld [vmem:[#allocation9_spill] sm:$0xff]  ;;  %v8329_v53 = vld [vmem:[#allocation20_spill] sm:$0xff] }
 0x499   : > { %v2779_v21 = vsub.f32 %v2715_v44, %v2447_v48  ;;  %v2780_v34 = vsub.f32 %v2716_v46, %v6567_v49  ;;  %v2389_v55 = vmax.f32 %v8315_v59, 0.0  ;;  %v2390_v41 = vmax.f32 %v8316_v35, 0.0  ;;  %vm6594_vm9 = vmand %vm2903_vm14, %vm2967_vm12 }
 0x49a   : > { %v2449_v11 = vmul.f32 %v2385_v10, %v8312_v15  ;;  %v6584_v9 = vmul.f32 %v2386_v43, %v8314_v52  ;;  %vm2964_vm2 = vcmp.gt.f32.partialorder %v2504_v36, %v2900_v17  ;;  %v8317_v10 = vmov 0 }
 0x49b   : > { %v8318_v10 = vsel %vm6594_vm9, 4294967295, %v8317_v10  ;;  %vm2971_vm11 = vcmp.lt.s32.totalorder %v2510_v61, %v6054_v5  ;;  %vm8319_vm1 = vcmp.lt.s32.totalorder %v2538_v57, %v6393_v38  ;;  %v8320_v43 = vmov 0 }
 0x49c   : > { %vm6601_vm6 = vmand %vm2964_vm2, %vm8319_vm1  ;;  %v2843_v23 = vmul.f32 0.5, %v2779_v21  ;;  %v6605_v50 = vmul.f32 0.5, %v2780_v34  ;;  %v2717_v42 = vadd.f32 %v5679_v58, %v2561_v16  ;;  %v2718_v36 = vadd.f32 %v5681_v54, %v2561_v16  ;;  %v8330_v21 = vld [vmem:[#allocation60_spill] sm:$0xff]  ;;  %v2571_v35 = vpop.permute.xlu1 %2570 }
 0x49d   : > { %v8321_v43 = vsel %vm6601_vm6, 4294967295, %v8320_v43  ;;  %v8324_v30 = vmax.f32 %v8323_v47, %v8253_v63  ;;  %v8326_v29 = vmin.f32 %v8325_v0, %v8256_v8  ;;  %v8327_v57 = vmax.f32 %v8323_v47, %v5666_v27  ;;  %v8333_v16 = vld [vmem:[#allocation136_spill] sm:$0xff] }
 0x49e   : > { %8322 = vst [vmem:[#allocation41_spill] sm:$0xff] %v8321_v43  ;;  %v8328_v44 = vmin.f32 %v8325_v0, %v5668_v13  ;;  %vm2973_vm12 = vcmp.lt.s32.totalorder %v2511_v40, %v6054_v5  ;;  %v2513_v17 = vadd.s32 40, %v8053_v25  ;;  %vm2907_vm2 = vcmp.gt.f32.partialorder %v2447_v48, %v2843_v23  ;;  %v8335_v23 = vld [vmem:[#allocation87_spill] sm:$0xff] }
 0x49f   : > { %v6615_v45 = vsub.f32 %v8326_v29, %v8324_v30  ;;  %v2781_v7 = vsub.f32 %v2717_v42, %v2449_v11  ;;  %v2782_v15 = vsub.f32 %v2718_v36, %v6584_v9  ;;  %v2393_v52 = vmax.f32 %v8329_v53, 0.0  ;;  %vm6634_vm1 = vmand %vm2907_vm2, %vm2971_vm11  ;;  %v8346_v40 = vld [vmem:[#allocation91_spill] sm:$0xff] }
 0x4a0   : > { %v6623_v46 = vsub.f32 %v8328_v44, %v8327_v57  ;;  %v2394_v34 = vmax.f32 %v8330_v21, 0.0  ;;  %v8331_v59 = vmov 0  ;;  %v8334_v47 = vmax.f32 %v8333_v16, 0.0  ;;  %v8339_v21 = vld [vmem:[#allocation90_spill] sm:$0xff] }
 0x4a1   : > { %v8332_v59 = vsel %vm6634_vm1, 4294967295, %v8331_v59  ;;  %v8336_v30 = vmax.f32 %v8335_v23, 0.0  ;;  %v2845_v42 = vmul.f32 0.5, %v2781_v7  ;;  %v6644_v36 = vmul.f32 0.5, %v2782_v15  ;;  %v8338_v7 = vld [vmem:[#allocation22_spill] sm:$0xff] }
 0x4a2   : > { %v2453_v48 = vmul.f32 %v2389_v55, %v8334_v47  ;;  %v2721_v29 = vadd.f32 %v5679_v58, %v2571_v35  ;;  %v2722_v57 = vadd.f32 %v5681_v54, %v2571_v35  ;;  %v1845_v61 = vmax.f32 %v6615_v45, 0.0  ;;  %v2581_v35 = vpop.permute.xlu1 %2580  ;;  %v8342_v47 = vld [vmem:[#allocation96_spill] sm:$0xff] }
 0x4a3   : > { %v6642_v0 = vmul.f32 %v2390_v41, %v8336_v30  ;;  %vm2977_vm11 = vcmp.lt.s32.totalorder %v2513_v17, %v6054_v5  ;;  %v2515_v53 = vadd.s32 56, %v8053_v25  ;;  %vm2909_vm2 = vcmp.gt.f32.partialorder %v2449_v11, %v2845_v42  ;;  %v8344_v30 = vld [vmem:[#allocation62_spill] sm:$0xff]  ;;  %v8355_v17 = vld [vmem:[#allocation49_spill] sm:$0xff] }
 0x4a4   : > { %v2785_v55 = vsub.f32 %v2721_v29, %v2453_v48  ;;  %v2397_v15 = vmax.f32 %v8338_v7, 0.0  ;;  %v2398_v16 = vmax.f32 %v8339_v21, 0.0  ;;  %vm6659_vm6 = vmand %vm2909_vm2, %vm2973_vm12  ;;  %v8340_v45 = vmov 0 }
 0x4a5   : > { %8337 = vst [vmem:[#allocation43_spill] sm:$0xff] %v6642_v0  ;;  %v2786_v41 = vsub.f32 %v2722_v57, %v6642_v0  ;;  %v8341_v45 = vsel %vm6659_vm6, 4294967295, %v8340_v45  ;;  %v8343_v23 = vmax.f32 %v8342_v47, 0.0  ;;  %v8345_v42 = vmax.f32 %v8344_v30, 0.0 }
 0x4a6   : > { %v2849_v29 = vmul.f32 0.5, %v2785_v55  ;;  %v2725_v7 = vadd.f32 %v5679_v58, %v2581_v35  ;;  %v2726_v21 = vadd.f32 %v5681_v54, %v2581_v35  ;;  %v1521_v43 = vmin.f32 %v8346_v40, %v8256_v8  ;;  %v8348_v35 = vld [vmem:[#allocation115_spill] sm:$0xff]  ;;  %v2591_v30 = vpop.permute.xlu1 %2590 }
 0x4a7   : > { %v2457_v11 = vmul.f32 %v2393_v52, %v8343_v23  ;;  %v6667_v44 = vmul.f32 %v2394_v34, %v8345_v42  ;;  %v6669_v57 = vmul.f32 0.5, %v2786_v41  ;;  %v1522_v33 = vmin.f32 %v8346_v40, %v5668_v13  ;;  %v8347_v41 = vld [vmem:[#allocation114_spill] sm:$0xff]  ;;  %v8351_v42 = vld [vmem:[#allocation97_spill] sm:$0xff] }
 0x4a8   : > { %vm2981_vm12 = vcmp.lt.s32.totalorder %v2515_v53, %v6054_v5  ;;  %v2517_v52 = vadd.s32 72, %v8053_v25  ;;  %vm2913_vm2 = vcmp.gt.f32.partialorder %v2453_v48, %v2849_v29  ;;  %v2401_v47 = vmax.f32 %v8347_v41, 0.0  ;;  %v8353_v29 = vld [vmem:[#allocation98_spill] sm:$0xff] }
 0x4a9   : > { %v2789_v34 = vsub.f32 %v2725_v7, %v2457_v11  ;;  %v2790_v55 = vsub.f32 %v2726_v21, %v6667_v44  ;;  %v2402_v23 = vmax.f32 %v8348_v35, 0.0  ;;  %vm6686_vm8 = vmand %vm2913_vm2, %vm2977_vm11  ;;  %v8349_v8 = vmov 0 }
 0x4aa   : > { %v8350_v8 = vsel %vm6686_vm8, 4294967295, %v8349_v8  ;;  %v8352_v40 = vmax.f32 %v8351_v42, 0.0  ;;  %v8354_v62 = vmax.f32 %v8353_v29, 0.0  ;;  %v2729_v41 = vadd.f32 %v5679_v58, %v2591_v30 }
 0x4ab   : > { %v2853_v7 = vmul.f32 0.5, %v2789_v34  ;;  %v6696_v21 = vmul.f32 0.5, %v2790_v55  ;;  %v2730_v35 = vadd.f32 %v5681_v54, %v2591_v30  ;;  %v8356_v39 = vmax.f32 %v8355_v17, %v8253_v63  ;;  %v8359_v34 = vld [vmem:[#allocation119_spill] sm:$0xff]  ;;  %v8364_v30 = vld [vmem:[#allocation101_spill] sm:$0xff] }
 0x4ac   : > { %v2461_v48 = vmul.f32 %v2397_v15, %v8352_v40  ;;  %v6694_v22 = vmul.f32 %v2398_v16, %v8354_v62  ;;  %v8357_v24 = vmax.f32 %v8355_v17, %v5666_v27  ;;  %v8358_v15 = vld [vmem:[#allocation117_spill] sm:$0xff]  ;;  %vm2985_vm11 = vcmp.lt.s32.totalorder %v2517_v52, %v6054_v5 }
 0x4ad   : > { %v1785_v19 = vsub.f32 %v1521_v43, %v8356_v39  ;;  %v2405_v40 = vmax.f32 %v8358_v15, 0.0  ;;  %vm2917_vm2 = vcmp.gt.f32.partialorder %v2457_v11, %v2853_v7  ;;  %v2406_v55 = vmax.f32 %v8359_v34, 0.0  ;;  %v2601_v39 = vpop.permute.xlu1 %2600  ;;  %v8367_v34 = vld [vmem:[#allocation11_spill] sm:$0xff] }
 0x4ae   : > { %v1786_v42 = vsub.f32 %v1522_v33, %v8357_v24  ;;  %v2793_v62 = vsub.f32 %v2729_v41, %v2461_v48  ;;  %v2794_v16 = vsub.f32 %v2730_v35, %v6694_v22  ;;  %vm6714_vm4 = vmand %vm2917_vm2, %vm2981_vm12  ;;  %v8360_v63 = vmov 0  ;;  %v8362_v33 = vld [vmem:[#allocation100_spill] sm:$0xff] }
 0x4af   : > { %v8361_v63 = vsel %vm6714_vm4, 4294967295, %v8360_v63  ;;  %v2519_v24 = vadd.s32 88, %v8053_v25  ;;  %v8363_v43 = vmax.f32 %v8362_v33, 0.0  ;;  %v8365_v29 = vmax.f32 %v8364_v30, 0.0 }
 0x4b0   : > { %v2857_v41 = vmul.f32 0.5, %v2793_v62  ;;  %v6725_v35 = vmul.f32 0.5, %v2794_v16  ;;  %v2733_v17 = vadd.f32 %v5679_v58, %v2601_v39  ;;  %v2734_v53 = vadd.f32 %v5681_v54, %v2601_v39  ;;  %v8369_v62 = vld [vmem:[#allocation123_spill] sm:$0xff] }
 0x4b1   : > { %v2465_v11 = vmul.f32 %v2401_v47, %v8363_v43  ;;  %v6723_v7 = vmul.f32 %v2402_v23, %v8365_v29  ;;  %v1849_v15 = vmax.f32 %v1785_v19, 0.0  ;;  %v1526_v37 = vmin.f32 %v8367_v34, %v5668_v13  ;;  %v2611_v19 = vpop.permute.xlu1 %2610  ;;  %v8373_v29 = vld [vmem:[#allocation74_spill] sm:$0xff] }
 0x4b2   : > { %v2409_v28 = vmax.f32 %v8368_v1, 0.0  ;;  %v2469_v60 = vmul.f32 %v2405_v40, %v1845_v61  ;;  %vm2921_vm12 = vcmp.gt.f32.partialorder %v2461_v48, %v2857_v41  ;;  %v2410_v16 = vmax.f32 %v8369_v62, 0.0 }
 0x4b3   : > { %8366 = vst [vmem:[#allocation112_spill] sm:$0xff] %v6723_v7  ;;  %v2797_v47 = vsub.f32 %v2733_v17, %v2465_v11  ;;  %v2798_v23 = vsub.f32 %v2734_v53, %v6723_v7  ;;  %vm6738_vm14 = vmand %vm2921_vm12, %vm2985_vm11  ;;  %v8370_v39 = vmov 0  ;;  %vm2989_vm0 = vcmp.lt.s32.totalorder %v2519_v24, %v6054_v5  ;;  %v8375_v53 = vld [vmem:[#allocation26_spill] sm:$0xff]  ;;  %v8379_v24 = vld [vmem:[#allocation75_spill] sm:$0xff] }
 0x4b4   : > { %v8371_v39 = vsel %vm6738_vm14, 4294967295, %v8370_v39  ;;  %v2521_v1 = vadd.s32 104, %v8053_v25  ;;  %v8372_v61 = vmax.f32 %v6623_v46, 0.0  ;;  %v2737_v43 = vadd.f32 %v5679_v58, %v2611_v19 }
 0x4b5   : > { %v2861_v40 = vmul.f32 0.5, %v2797_v47  ;;  %v6748_v33 = vmul.f32 0.5, %v2798_v23  ;;  %v2738_v52 = vadd.f32 %v5681_v54, %v2611_v19  ;;  %v1850_v30 = vmax.f32 %v1786_v42, 0.0  ;;  %v8376_v47 = vld [vmem:[#allocation127_spill] sm:$0xff] }
 0x4b6   : > { %v6746_v48 = vmul.f32 %v2406_v55, %v8372_v61  ;;  %v8374_v41 = vmax.f32 %v8373_v29, %v5666_v27  ;;  %v1530_v34 = vmin.f32 %v8375_v53, %v5668_v13  ;;  %v2473_v62 = vmul.f32 %v2409_v28, %v1849_v15  ;;  %v2621_v28 = vpop.permute.xlu1 %2620 }
 0x4b7   : > { %vm2925_vm11 = vcmp.gt.f32.partialorder %v2465_v11, %v2861_v40  ;;  %v2801_v46 = vsub.f32 %v2737_v43, %v2469_v60  ;;  %v2414_v23 = vmax.f32 %v8376_v47, 0.0  ;;  %v8377_v42 = vmov 0 }
 0x4b8   : > { %v1790_v17 = vsub.f32 %v1526_v37, %v8374_v41  ;;  %v2802_v55 = vsub.f32 %v2738_v52, %v6746_v48  ;;  %vm6763_vm2 = vmand %vm2925_vm11, %vm2989_vm0  ;;  %vm2993_vm5 = vcmp.lt.s32.totalorder %v2521_v1, %v6054_v5  ;;  %v2523_v37 = vadd.s32 120, %v8053_v25  ;;  %v8381_v41 = vld [vmem:[#allocation12_spill] sm:$0xff] }
 0x4b9   : > { %v8378_v42 = vsel %vm6763_vm2, 4294967295, %v8377_v42  ;;  %v6769_v11 = vmul.f32 %v2410_v16, %v1850_v30  ;;  %v2865_v15 = vmul.f32 0.5, %v2801_v46  ;;  %v2741_v61 = vadd.f32 %v5679_v58, %v2621_v28  ;;  %v8382_v46 = vld [vmem:[#allocation76_spill] sm:$0xff] }
 0x4ba   : > { %v6771_v19 = vmul.f32 0.5, %v2802_v55  ;;  %v2742_v40 = vadd.f32 %v5681_v54, %v2621_v28  ;;  %v1854_v43 = vmax.f32 %v1790_v17, 0.0  ;;  %v8380_v52 = vmax.f32 %v8379_v24, %v5666_v27  ;;  %v8383_v55 = vld [vmem:[#allocation10_spill] sm:$0xff] }
 0x4bb   : > { %v1534_v53 = vmin.f32 %v8381_v41, %v5668_v13  ;;  %vm2929_vm0 = vcmp.gt.f32.partialorder %v2469_v60, %v2865_v15  ;;  %v2805_v16 = vsub.f32 %v2741_v61, %v2473_v62  ;;  %v1734_v58 = vmax.f32 %v8382_v46, %v5666_v27  ;;  %v2631_v60 = vpop.permute.xlu1 %2630  ;;  %v8387_v41 = vld [vmem:[#allocation27_spill] sm:$0xff] }
 0x4bc   : > { %v1794_v29 = vsub.f32 %v1530_v34, %v8380_v52  ;;  %v2806_v30 = vsub.f32 %v2742_v40, %v6769_v11  ;;  %v2418_v47 = vmax.f32 %v8383_v55, 0.0  ;;  %vm6788_vm12 = vmand %vm2929_vm0, %vm2993_vm5  ;;  %v8384_v17 = vmov 0  ;;  %v8388_v55 = vld [vmem:[#allocation77_spill] sm:$0xff] }
 0x4bd   : > { %v8385_v17 = vsel %vm6788_vm12, 4294967295, %v8384_v17  ;;  %vm2997_vm2 = vcmp.lt.s32.totalorder %v2523_v37, %v6054_v5  ;;  %v2478_v34 = vmul.f32 %v2414_v23, %v1854_v43  ;;  %v2869_v28 = vmul.f32 0.5, %v2805_v16  ;;  %v8389_v43 = vld [vmem:[#allocation135_spill] sm:$0xff] }
 0x4be   : > { %v6793_v15 = vmul.f32 0.5, %v2806_v30  ;;  %v2525_v61 = vadd.s32 136, %v8053_v25  ;;  %v2746_v40 = vadd.f32 %v5681_v54, %v2631_v60  ;;  %v1858_v24 = vmax.f32 %v1794_v29, 0.0  ;;  %v8394_v37 = vld [vmem:[#allocation79_spill] sm:$0xff] }
 0x4bf   : > { %v1798_v52 = vsub.f32 %v1534_v53, %v1734_v58  ;;  %v1538_v1 = vmin.f32 %v8387_v41, %v5668_v13  ;;  %vm2933_vm5 = vcmp.gt.f32.partialorder %v2473_v62, %v2869_v28  ;;  %v1738_v23 = vmax.f32 %v8388_v55, %v5666_v27  ;;  %v2641_v29 = vpop.permute.xlu1 %2640  ;;  %v8393_v41 = vld [vmem:[#allocation13_spill] sm:$0xff] }
 0x4c0   : > { %8386 = vst [vmem:[#allocation45_spill] sm:$0xff] %v6793_v15  ;;  %v2810_v46 = vsub.f32 %v2746_v40, %v2478_v34  ;;  %v2422_v16 = vmax.f32 %v8389_v43, 0.0  ;;  %vm6806_vm11 = vmand %vm2933_vm5, %vm2997_vm2  ;;  %v8390_v30 = vmov 0  ;;  %v2482_v53 = vmul.f32 %v2418_v47, %v1858_v24 }
 0x4c1   : > { %v8391_v30 = vsel %vm6806_vm11, 4294967295, %v8390_v30  ;;  %vm3002_vm12 = vcmp.lt.s32.totalorder %v2525_v61, %v6393_v38  ;;  %v2527_v58 = vadd.s32 152, %v8053_v25  ;;  %v2750_v60 = vadd.f32 %v5681_v54, %v2641_v29  ;;  %v8399_v29 = vld [vmem:[#allocation29_spill] sm:$0xff] }
 0x4c2   : > { %8392 = vst [vmem:[#allocation72_spill] sm:$0xff] %v8391_v30  ;;  %v2874_v62 = vmul.f32 0.5, %v2810_v46  ;;  %v1862_v28 = vmax.f32 %v1798_v52, 0.0  ;;  %v1802_v40 = vsub.f32 %v1538_v1, %v1738_v23  ;;  %v1542_v55 = vmin.f32 %v8393_v41, %v5668_v13  ;;  %v8395_v30 = vld [vmem:[#allocation99_spill] sm:$0xff] }
 0x4c3   : > { %v2814_v5 = vsub.f32 %v2750_v60, %v2482_v53  ;;  %v1742_v43 = vmax.f32 %v8394_v37, %v5666_v27  ;;  %v2426_v15 = vmax.f32 %v8395_v30, 0.0  ;;  %v8396_v47 = vmov 0  ;;  %v2651_v61 = vpop.permute.xlu1 %2650  ;;  %v8400_v60 = vld [vmem:[#allocation59_spill] sm:$0xff]  ;;  %v8401_v37 = vld [vmem:[#allocation102_spill] sm:$0xff] }
 0x4c4   : > { %vm2938_vm0 = vcmp.gt.f32.partialorder %v2478_v34, %v2874_v62  ;;  %v2486_v24 = vmul.f32 %v2422_v16, %v1862_v28  ;;  %vm3006_vm5 = vcmp.lt.s32.totalorder %v2527_v58, %v6393_v38  ;;  %v2529_v1 = vadd.s32 168, %v8053_v25 }
 0x4c5   : > { %vm6818_vm2 = vmand %vm2938_vm0, %vm3002_vm12  ;;  %v2878_v52 = vmul.f32 0.5, %v2814_v5  ;;  %v2754_v46 = vadd.f32 %v5681_v54, %v2651_v61  ;;  %v1866_v34 = vmax.f32 %v1802_v40, 0.0  ;;  %v1806_v23 = vsub.f32 %v1542_v55, %v1742_v43  ;;  %v8405_v61 = vld [vmem:[#allocation14_spill] sm:$0xff] }
 0x4c6   : > { %v8397_v47 = vsel %vm6818_vm2, 4294967295, %v8396_v47  ;;  %v1546_v62 = vmin.f32 %v8399_v29, %v5668_v13  ;;  %v1746_v41 = vmax.f32 %v8400_v60, %v5666_v27  ;;  %v8402_v16 = vmov 0  ;;  %v8406_v29 = vld [vmem:[#allocation81_spill] sm:$0xff] }
 0x4c7   : > { %8398 = vst [vmem:[#allocation47_spill] sm:$0xff] %v8397_v47  ;;  %vm2942_vm11 = vcmp.gt.f32.partialorder %v2482_v53, %v2878_v52  ;;  %v2818_v30 = vsub.f32 %v2754_v46, %v2486_v24  ;;  %v2430_v47 = vmax.f32 %v8401_v37, 0.0  ;;  %v2661_v58 = vpop.permute.xlu1 %2660  ;;  %v2490_v28 = vmul.f32 %v2426_v15, %v1866_v34  ;;  %v8407_v37 = vld [vmem:[#allocation103_spill] sm:$0xff] }
 0x4c8   : > { %vm6830_vm12 = vmand %vm2942_vm11, %vm3006_vm5  ;;  %vm3010_vm0 = vcmp.lt.s32.totalorder %v2529_v1, %v6393_v38  ;;  %v2531_v55 = vadd.s32 184, %v8053_v25  ;;  %v2758_v5 = vadd.f32 %v5681_v54, %v2661_v58  ;;  %v1870_v53 = vmax.f32 %v1806_v23, 0.0  ;;  %v8411_v58 = vld [vmem:[#allocation30_spill] sm:$0xff] }
 0x4c9   : > { %v8403_v16 = vsel %vm6830_vm12, 4294967295, %v8402_v16  ;;  %v2882_v40 = vmul.f32 0.5, %v2818_v30  ;;  %v1810_v43 = vsub.f32 %v1546_v62, %v1746_v41  ;;  %v1550_v52 = vmin.f32 %v8405_v61, %v5668_v13  ;;  %v8412_v61 = vld [vmem:[#allocation61_spill] sm:$0xff] }
 0x4ca   : > { %8404 = vst [vmem:[#allocation83_spill] sm:$0xff] %v8403_v16  ;;  %v2822_v46 = vsub.f32 %v2758_v5, %v2490_v28  ;;  %v1750_v60 = vmax.f32 %v8406_v29, %v5666_v27  ;;  %v2434_v16 = vmax.f32 %v8407_v37, 0.0  ;;  %v8408_v15 = vmov 0  ;;  %v8413_v37 = vld [vmem:[#allocation104_spill] sm:$0xff] }
 0x4cb   : > { %vm2946_vm2 = vcmp.gt.f32.partialorder %v2486_v24, %v2882_v40  ;;  %v2671_v1 = vpop.permute.xlu1 %2670  ;;  %v2494_v34 = vmul.f32 %v2430_v47, %v1870_v53  ;;  %vm3014_vm5 = vcmp.lt.s32.totalorder %v2531_v55, %v6393_v38  ;;  %v2533_v62 = vadd.s32 200, %v8053_v25 }
 0x4cc   : > { %vm6842_vm11 = vmand %vm2946_vm2, %vm3010_vm0  ;;  %v2886_v23 = vmul.f32 0.5, %v2822_v46  ;;  %v2762_v30 = vadd.f32 %v5681_v54, %v2671_v1  ;;  %v1874_v24 = vmax.f32 %v1810_v43, 0.0  ;;  %v1814_v41 = vsub.f32 %v1550_v52, %v1750_v60 }
 0x4cd   : > { %v8409_v15 = vsel %vm6842_vm11, 4294967295, %v8408_v15  ;;  %v1554_v40 = vmin.f32 %v8411_v58, %v5668_v13  ;;  %v1754_v29 = vmax.f32 %v8412_v61, %v5666_v27  ;;  %v8414_v47 = vmov 0  ;;  %v8416_v27 = vld [vmem:[#allocation105_spill] sm:$0xff] }
 0x4ce   : > { %8410 = vst [vmem:[#allocation63_spill] sm:$0xff] %v8409_v15  ;;  %vm2950_vm12 = vcmp.gt.f32.partialorder %v2490_v28, %v2886_v23  ;;  %v2826_v5 = vsub.f32 %v2762_v30, %v2494_v34  ;;  %v2438_v15 = vmax.f32 %v8413_v37, 0.0  ;;  %v2498_v53 = vmul.f32 %v2434_v16, %v1874_v24 }
 0x4cf   : > { %vm6854_vm2 = vmand %vm2950_vm12, %vm3014_vm5  ;;  %v2681_v55 = vpop.permute.xlu1 %2680  ;;  %vm3018_vm0 = vcmp.lt.s32.totalorder %v2533_v62, %v6393_v38  ;;  %v2535_v52 = vadd.s32 216, %v8053_v25  ;;  %v1878_v28 = vmax.f32 %v1814_v41, 0.0  ;;  %v1818_v46 = vsub.f32 %v1554_v40, %v1754_v29 }
 0x4d0   : > { %v8415_v47 = vsel %vm6854_vm2, 4294967295, %v8414_v47  ;;  %v2890_v43 = vmul.f32 0.5, %v2826_v5  ;;  %v2766_v13 = vadd.f32 %v5681_v54, %v2681_v55  ;;  %v2442_v1 = vmax.f32 %v8416_v27, 0.0 }
 0x4d1   : > { %v8417_v23 = vmov 0  ;;  %v2502_v58 = vmul.f32 %v2438_v15, %v1878_v28  ;;  %vm3022_vm12 = vcmp.lt.s32.totalorder %v2535_v52, %v6393_v38  ;;  %v2537_v62 = vadd.s32 232, %v8053_v25 }
 0x4d2   : > { %vm2954_vm11 = vcmp.gt.f32.partialorder %v2494_v34, %v2890_v43  ;;  %v2830_v60 = vsub.f32 %v2766_v13, %v2498_v53  ;;  %v1882_v5 = vmax.f32 %v1818_v46, 0.0  ;;  %v8419_v34 = vmov 0  ;;  %v8425_v13 = vld [vmem:[#allocation3_spill] sm:$0xff] }
 0x4d3   : > { %vm6862_vm13 = vmand %vm2954_vm11, %vm3018_vm0  ;;  %v2691_v30 = vpop.permute.xlu1 %2690  ;;  %vm3026_vm11 = vcmp.lt.s32.totalorder %v2537_v62, %v6393_v38  ;;  %v2539_v15 = vadd.s32 248, %v8053_v25  ;;  %v8423_v52 = vmov 0  ;;  %v8426_v25 = vld [vmem:[#allocation4_spill] sm:$0xff] }
 0x4d4   : > { %v8418_v23 = vsel %vm6862_vm13, 4294967295, %v8417_v23  ;;  %v2894_v16 = vmul.f32 0.5, %v2830_v60  ;;  %v2770_v24 = vadd.f32 %v5681_v54, %v2691_v30  ;;  %v2506_v61 = vmul.f32 %v2442_v1, %v1882_v5 }
 0x4d6   : > { %vm2958_vm5 = vcmp.gt.f32.partialorder %v2498_v53, %v2894_v16  ;;  %v2834_v41 = vsub.f32 %v2770_v24, %v2502_v58 }
 0x4d7   : > { %vm6869_vm2 = vmand %vm2958_vm5, %vm3022_vm12  ;;  %v2701_v40 = vpop.permute.xlu1 %2700  ;;  %vm3030_vm12 = vcmp.lt.s32.totalorder %v2539_v15, %v6393_v38 }
 0x4d8   : > { %v8420_v34 = vsel %vm6869_vm2, 4294967295, %v8419_v34  ;;  %v2898_v29 = vmul.f32 0.5, %v2834_v41  ;;  %v2774_v37 = vadd.f32 %v5681_v54, %v2701_v40 }
 0x4da   : > { %vm2962_vm0 = vcmp.gt.f32.partialorder %v2502_v58, %v2898_v29  ;;  %v2838_v55 = vsub.f32 %v2774_v37, %v2506_v61 }
 0x4db   : > { %vm6876_vm13 = vmand %vm2962_vm0, %vm3026_vm11 }
 0x4dc   : > { %v2902_v53 = vmul.f32 0.5, %v2838_v55 }
 0x4de   : > { %vm2966_vm5 = vcmp.gt.f32.partialorder %v2506_v61, %v2902_v53 }
 0x4df   : > { %vm6881_vm2 = vmand %vm2966_vm5, %vm3030_vm12 }
 0x4e0   : > { %v8424_v52 = vsel %vm6881_vm2, 4294967295, %v8423_v52 }
 0x4e1 LB: >> { %vm8427_vm11 = vcmp.gt.f32.partialorder %v6548_v32, %v6575_v31  ;;  %v8428_v6 = vld [vmem:[#allocation107_spill] sm:$0xff]  ;;  %v8429_v54 = vld [vmem:[#allocation109_spill] sm:$0xff]  ;;  %v3729_v28 = vmov 1.0|1.0   ;;  %vm8433_vm9 = vnez %v8318_v10  ;;  %v3209_v1 = vpack.c.bf16 %v3708_v13, %v3708_v13  ;;  %v8446_v2 = vld [vmem:[#allocation110_spill] sm:$0xff]  ;;  %s3368_s22 = sadd.s32 3, %s3716_s22   ;;  %s3716_s22 = sphi %s6891_s22, %s3368_s22   ;;  %v3712_v25 = vphi %v8426_v25, %v8565_v25   ;;  %v3708_v13 = vphi %v8425_v13, %v8564_v13  }
 0x4e2   : >> { %vm8430_vm0 = vcmp.gt.f32.partialorder %v8428_v6, %v8429_v54  ;;  %v8434_v46 = vld [vmem:[#allocation51_spill] sm:$0xff]  ;;  %vm8442_vm1 = vnez %v8332_v59  ;;  %vm8443_vm6 = vnez %v8341_v45  ;;  %vm8452_vm15 = vnez %v8211_v18  ;;  %v8464_v3 = vld [vmem:[#allocation53_spill] sm:$0xff]  ;;  %v8469_v4 = vld [vmem:[#allocation108_spill] sm:$0xff]  ;;  %p3202_p5 = scmp.lt.s32.totalorder %s3368_s22, 256 }
 0x4e3   : >> { %vm6908_vm12 = vmpackc.low %vm8430_vm0, %vm8427_vm11  ;;  %vm8435_vm10 = vnez %v8434_v46  ;;  %vm8438_vm11 = vcmp.gt.f32.partialorder %v6567_v49, %v6605_v50  ;;  %vm8439_vm0 = vcmp.gt.f32.partialorder %v6584_v9, %v6644_v36  ;;  %v8448_v0 = vld [vmem:[#allocation43_spill] sm:$0xff]  ;;  %3242 = vmatprep.mubr.bf16.mxu0 %v3209_v1  ;;  %vm8453_vm8 = vnez %v8350_v8  ;;  %v8476_v7 = vld [vmem:[#allocation112_spill] sm:$0xff] }
 0x4e4   : >> { %3468 = vmatprep.subr.msk.bf16.mxu0 %vm6908_vm12, %v3729_v28  ;;  %vm6919_vm5 = vmpackc.low %vm8435_vm10, %vm8433_vm9  ;;  %3516 = vmatprep.subr.msk.bf16.mxu1 %vm6908_vm12, %v3729_v28  ;;  %vm8460_vm3 = vnez %v8218_v20  ;;  %vm8461_vm4 = vnez %v8361_v63  ;;  %v8467_v5 = vmov 0  ;;  %vm8470_vm7 = vnez %v8469_v4  ;;  %v8474_v40 = vld [vmem:[#allocation111_spill] sm:$0xff]  ;;  %v8480_v29 = vld [vmem:[#allocation113_spill] sm:$0xff] }
 0x4e5   : >> { %3470 = vmatpush1.bf16.msk.msra.mxu0 %vm6919_vm5, %v3729_v28  ;;  %vm6935_vm2 = vmpackc.low %vm8439_vm0, %vm8438_vm11  ;;  %3518 = vmatpush1.bf16.msk.msra.mxu1 %vm6919_vm5, %v3729_v28  ;;  %vm8447_vm11 = vcmp.gt.f32.partialorder %v6225_v56, %v8446_v2  ;;  %vm8449_vm0 = vcmp.gt.f32.partialorder %v8448_v0, %v6669_v57  ;;  %vm8471_vm14 = vnez %v8371_v39  ;;  %v8472_v41 = vmov 0  ;;  %v8485_v37 = vld [vmem:[#allocation55_spill] sm:$0xff]  ;;  %v8486_v55 = vld [vmem:[#allocation64_spill] sm:$0xff] }
 0x4e6   : >> { %3472 = vmatprep.subr.msk.bf16.mxu0 %vm6935_vm2, %v3729_v28  ;;  %vm6951_vm9 = vmpackc.low %vm8443_vm6, %vm8442_vm1  ;;  %3520 = vmatprep.subr.msk.bf16.mxu1 %vm6935_vm2, %v3729_v28  ;;  %vm8457_vm1 = vcmp.gt.f32.partialorder %v6667_v44, %v6696_v21  ;;  %v8478_v61 = vmov 0  ;;  %v8483_v15 = vmov 0  ;;  %v8489_v53 = vmov 0  ;;  %v8491_v54 = vld [vmem:[#allocation66_spill] sm:$0xff]  ;;  %v8496_v1 = vld [vmem:[#allocation57_spill] sm:$0xff] }
 0x4e7   : >> { %vm6964_vm10 = vmpackc.low %vm8449_vm0, %vm8447_vm11  ;;  %vm8456_vm0 = vcmp.gt.f32.partialorder %v6238_v12, %v6268_v51  ;;  %v8494_v46 = vmov 0  ;;  %v8513_v0 = vmov 0  ;;  %v8525_v2 = vmov 0  ;;  %v8537_v4 = vld [vmem:[#allocation85_spill] sm:$0xff]  ;;  %v8542_v6 = vld [vmem:[#allocation40_spill] sm:$0xff] }
 0x4e8   : >> { %vm6981_vm11 = vmpackc.low %vm8453_vm8, %vm8452_vm15  ;;  %vm8466_vm8 = vcmp.gt.f32.partialorder %v6694_v22, %v6725_v35  ;;  %v8563_v27 = vld [vmem:[#allocation4_spill] sm:$0xff] }
 0x4e9   : >> { %3474 = vmatpush1.bf16.msk.msra.mxu0 %vm6951_vm9, %v3729_v28  ;;  %3522 = vmatpush1.bf16.msk.msra.mxu1 %vm6951_vm9, %v3729_v28  ;;  %vm6994_vm6 = vmpackc.low %vm8457_vm1, %vm8456_vm0  ;;  %vm8465_vm0 = vcmp.gt.f32.partialorder %v8464_v3, %v6305_v14  ;;  %v8527_v3 = vld [vmem:[#allocation139_spill] sm:$0xff]  ;;  %v3567_v30 = vpack.c.bf16 %v8563_v27, %v8563_v27 }
 0x4ea   : >> { %3476 = vmatprep.subr.msk.bf16.mxu0 %vm6964_vm10, %v3729_v28  ;;  %3524 = vmatprep.subr.msk.bf16.mxu1 %vm6964_vm10, %v3729_v28  ;;  %vm7011_vm1 = vmpackc.low %vm8461_vm4, %vm8460_vm3  ;;  %vm8477_vm3 = vcmp.gt.f32.partialorder %v8476_v7, %v6748_v33  ;;  %v8546_v7 = vld [vmem:[#allocation41_spill] sm:$0xff] }
 0x4eb   : >> { %vm7024_vm15 = vmpackc.low %vm8466_vm8, %vm8465_vm0  ;;  %vm8475_vm0 = vcmp.gt.f32.partialorder %v6313_v26, %v8474_v40  ;;  %v8497_v40 = vld [vmem:[#allocation68_spill] sm:$0xff] }
 0x4ec   : >> { %v8468_v5 = vsel %vm7024_vm15, 4294967295, %v8467_v5  ;;  %vm7041_vm8 = vmpackc.low %vm8471_vm14, %vm8470_vm7  ;;  %vm8481_vm7 = vnez %v8480_v29  ;;  %vm8482_vm14 = vnez %v8378_v42  ;;  %v8499_v29 = vld [vmem:[#allocation45_spill] sm:$0xff] }
 0x4ed   : >> { %3478 = vmatpush1.bf16.msk.msra.mxu0 %vm6981_vm11, %v3729_v28  ;;  %3526 = vmatpush1.bf16.msk.msra.mxu1 %vm6981_vm11, %v3729_v28  ;;  %v8473_v41 = vsel %vm7041_vm8, 4294967295, %v8472_v41  ;;  %vm7054_vm4 = vmpackc.low %vm8477_vm3, %vm8475_vm0  ;;  %vm8487_vm0 = vcmp.gt.f32.partialorder %v8485_v37, %v8486_v55  ;;  %v8503_v55 = vld [vmem:[#allocation69_spill] sm:$0xff] }
 0x4ee   : >> { %3480 = vmatprep.subr.msk.bf16.mxu0 %vm6994_vm6, %v3729_v28  ;;  %3528 = vmatprep.subr.msk.bf16.mxu1 %vm6994_vm6, %v3729_v28  ;;  %v8479_v61 = vsel %vm7054_vm4, 4294967295, %v8478_v61  ;;  %vm7071_vm3 = vmpackc.low %vm8482_vm14, %vm8481_vm7  ;;  %vm8492_vm7 = vnez %v8491_v54  ;;  %vm8493_vm14 = vnez %v8385_v17  ;;  %v8505_v54 = vld [vmem:[#allocation72_spill] sm:$0xff] }
 0x4ef   : >> { %v8484_v15 = vsel %vm7071_vm3, 4294967295, %v8483_v15 }
 0x4f1   : >> { %3482 = vmatpush1.bf16.msk.msra.mxu0 %vm7011_vm1, %v3729_v28  ;;  %3530 = vmatpush1.bf16.msk.msra.mxu1 %vm7011_vm1, %v3729_v28 }
 0x4f2   : >> { %3484 = vmatprep.subr.msk.bf16.mxu0 %vm7024_vm15, %v3729_v28  ;;  %3532 = vmatprep.subr.msk.bf16.mxu1 %vm7024_vm15, %v3729_v28 }
 0x4f5   : >> { %3486 = vmatpush1.bf16.msk.msra.mxu0 %vm7041_vm8, %v3729_v28  ;;  %3534 = vmatpush1.bf16.msk.msra.mxu1 %vm7041_vm8, %v3729_v28  ;;  %vm8488_vm8 = vcmp.gt.f32.partialorder %v6746_v48, %v6771_v19 }
 0x4f6   : >> { %3488 = vmatprep.subr.msk.bf16.mxu0 %vm7054_vm4, %v3729_v28  ;;  %3536 = vmatprep.subr.msk.bf16.mxu1 %vm7054_vm4, %v3729_v28  ;;  %vm7084_vm15 = vmpackc.low %vm8488_vm8, %vm8487_vm0  ;;  %vm8498_vm0 = vcmp.gt.f32.partialorder %v8496_v1, %v8497_v40  ;;  %v8509_v40 = vld [vmem:[#allocation70_spill] sm:$0xff]  ;;  %v3731_v1 = vmov 0.0  }
 0x4f7   : >> { %v8490_v53 = vsel %vm7084_vm15, 4294967295, %v8489_v53  ;;  %vm7101_vm8 = vmpackc.low %vm8493_vm14, %vm8492_vm7  ;;  %vm8504_vm7 = vnez %v8503_v55  ;;  %vm8506_vm14 = vnez %v8505_v54  ;;  %v8515_v55 = vld [vmem:[#allocation137_spill] sm:$0xff]  ;;  %v8517_v54 = vld [vmem:[#allocation83_spill] sm:$0xff] }
 0x4f8   : >> { %v8495_v46 = vsel %vm7101_vm8, 4294967295, %v8494_v46 }
 0x4f9   : >> { %3490 = vmatpush1.bf16.msk.msra.mxu0 %vm7071_vm3, %v3729_v28  ;;  %3538 = vmatpush1.bf16.msk.msra.mxu1 %vm7071_vm3, %v3729_v28  ;;  %vm8500_vm3 = vcmp.gt.f32.partialorder %v6769_v11, %v8499_v29  ;;  %v8511_v29 = vld [vmem:[#allocation47_spill] sm:$0xff] }
 0x4fa   : >> { %3492 = vmatprep.subr.msk.bf16.mxu0 %vm7084_vm15, %v3729_v28  ;;  %3540 = vmatprep.subr.msk.bf16.mxu1 %vm7084_vm15, %v3729_v28  ;;  %vm7114_vm4 = vmpackc.low %vm8500_vm3, %vm8498_vm0  ;;  %vm8510_vm0 = vnez %v8509_v40  ;;  %v8519_v40 = vmov 0 }
 0x4fb   : >> { %vm7131_vm3 = vmpackc.low %vm8506_vm14, %vm8504_vm7  ;;  %vm8518_vm7 = vnez %v8517_v54  ;;  %v8523_v54 = vld [vmem:[#allocation63_spill] sm:$0xff] }
 0x4fd   : >> { %3494 = vmatpush1.bf16.msk.msra.mxu0 %vm7101_vm8, %v3729_v28  ;;  %3542 = vmatpush1.bf16.msk.msra.mxu1 %vm7101_vm8, %v3729_v28  ;;  %vm8512_vm8 = vnez %v8511_v29  ;;  %v3730_v29 = vmov 0.0|0.0  }
 0x4fe   : >> { %3496 = vmatprep.subr.msk.bf16.mxu0 %vm7114_vm4, %v3729_v28  ;;  %3544 = vmatprep.subr.msk.bf16.mxu1 %vm7114_vm4, %v3729_v28  ;;  %vm7142_vm15 = vmpackc.low %vm8512_vm8, %vm8510_vm0  ;;  %vm8516_vm8 = vnez %v8515_v55  ;;  %v8521_v55 = vld [vmem:[#allocation138_spill] sm:$0xff] }
 0x4ff   : >> { %v8514_v0 = vsel %vm7142_vm15, 4294967295, %v8513_v0  ;;  %vm7162_vm14 = vmpackc.low %vm8518_vm7, %vm8516_vm8  ;;  %vm8522_vm0 = vnez %v8521_v55  ;;  %vm8524_vm8 = vnez %v8523_v54  ;;  %v8530_v55 = vmov 0  ;;  %v8532_v54 = vld [vmem:[#allocation82_spill] sm:$0xff] }
 0x500   : >> { %v8520_v40 = vsel %vm7162_vm14, 4294967295, %v8519_v40  ;;  %vm7178_vm7 = vmpackc.low %vm8524_vm8, %vm8522_vm0  ;;  %vm8533_vm8 = vnez %v8532_v54  ;;  %v8540_v54 = vmov 0 }
 0x501   : >> { %3498 = vmatpush1.bf16.msk.msra.mxu0 %vm7131_vm3, %v3729_v28  ;;  %3546 = vmatpush1.bf16.msk.msra.mxu1 %vm7131_vm3, %v3729_v28  ;;  %v8526_v2 = vsel %vm7178_vm7, 4294967295, %v8525_v2 }
 0x502   : >> { %3500 = vmatprep.subr.msk.bf16.mxu0 %vm7142_vm15, %v3729_v28  ;;  %3548 = vmatprep.subr.msk.bf16.mxu1 %vm7142_vm15, %v3729_v28  ;;  %vm8529_vm15 = vnez %v8415_v47 }
 0x505   : >> { %3227 = vmatpush1.bf16.msra.mxu0 %v3730_v29  ;;  %3274 = vmatpush1.bf16.msra.mxu1 %v3730_v29 }
 0x506   : >> { %3502 = vmatprep.subr.msk.bf16.mxu0 %vm7162_vm14, %v3729_v28  ;;  %3550 = vmatprep.subr.msk.bf16.mxu1 %vm7162_vm14, %v3729_v28  ;;  %vm8528_vm14 = vnez %v8527_v3 }
 0x507   : >> { %vm7194_vm0 = vmpackc.low %vm8529_vm15, %vm8528_vm14  ;;  %vm8538_vm14 = vnez %v8537_v4 }
 0x508   : >> { %v8531_v55 = vsel %vm7194_vm0, 4294967295, %v8530_v55 }
 0x509   : >> { %3229 = vmatpush1.bf16.msra.mxu0 %v3730_v29  ;;  %3276 = vmatpush1.bf16.msra.mxu1 %v3730_v29 }
 0x50a   : >> { %3504 = vmatprep.subr.msk.bf16.mxu0 %vm7178_vm7, %v3729_v28  ;;  %3552 = vmatprep.subr.msk.bf16.mxu1 %vm7178_vm7, %v3729_v28  ;;  %vm8534_vm7 = vnez %v8418_v23 }
 0x50b   : >> { %vm7210_vm15 = vmpackc.low %vm8534_vm7, %vm8533_vm8  ;;  %vm8543_vm8 = vnez %v8542_v6 }
 0x50d   : >> { %3231 = vmatpush1.bf16.msra.mxu0 %v3730_v29  ;;  %3278 = vmatpush1.bf16.msra.mxu1 %v3730_v29 }
 0x50e   : >> { %3506 = vmatprep.subr.msk.bf16.mxu0 %vm7194_vm0, %v3729_v28  ;;  %3554 = vmatprep.subr.msk.bf16.mxu1 %vm7194_vm0, %v3729_v28  ;;  %vm8539_vm0 = vnez %v8420_v34 }
 0x50f   : >> { %vm7226_vm7 = vmpackc.low %vm8539_vm0, %vm8538_vm14  ;;  %vm8547_vm14 = vnez %v8546_v7  ;;  %v3208_v7 = vpack.c.bf16 %v3712_v25, %v3712_v25 }
 0x510   : >> { %v8541_v54 = vsel %vm7226_vm7, 4294967295, %v8540_v54  ;;  %vm7242_vm0 = vmpackc.low %vm6876_vm13, %vm8543_vm8 }
 0x511   : >> { %3233 = vmatpush1.bf16.msra.mxu0 %v3730_v29  ;;  %3280 = vmatpush1.bf16.msra.mxu1 %v3730_v29 }
 0x512   : >> { %3508 = vmatprep.subr.msk.bf16.mxu0 %vm7210_vm15, %v3729_v28  ;;  %3556 = vmatprep.subr.msk.bf16.mxu1 %vm7210_vm15, %v3729_v28 }
 0x515   : >> { %3235 = vmatpush1.bf16.msra.mxu0 %v3730_v29  ;;  %3282 = vmatpush1.bf16.msra.mxu1 %v3730_v29 }
 0x516   : >> { %3510 = vmatprep.subr.msk.bf16.mxu0 %vm7226_vm7, %v3729_v28  ;;  %3558 = vmatprep.subr.msk.bf16.mxu1 %vm7226_vm7, %v3729_v28  ;;  %vm8548_vm7 = vnez %v8424_v52 }
 0x517   : >> { %vm7258_vm8 = vmpackc.low %vm8548_vm7, %vm8547_vm14  ;;  %vm8559_vm7 = vnez %v8526_v2 }
 0x519   : >> { %3237 = vmatpush1.bf16.msra.mxu0 %v3730_v29  ;;  %3284 = vmatpush1.bf16.msra.mxu1 %v3730_v29 }
 0x51a   : >> { %3512 = vmatprep.subr.msk.bf16.mxu0 %vm7242_vm0, %v3729_v28  ;;  %3560 = vmatprep.subr.msk.bf16.mxu1 %vm7242_vm0, %v3729_v28 }
 0x51d   : >> { %3239 = vmatpush1.bf16.msra.mxu0 %v3730_v29  ;;  %3286 = vmatpush1.bf16.msra.mxu1 %v3730_v29 }
 0x51e   : >> { %3514 = vmatprep.subr.msk.bf16.mxu0 %vm7258_vm8, %v3729_v28  ;;  %3562 = vmatprep.subr.msk.bf16.mxu1 %vm7258_vm8, %v3729_v28 }
 0x521   : >> { %3241 = vmatpush1.bf16.msra.mxu0 %v3730_v29  ;;  %3288 = vmatpush1.bf16.msra.mxu1 %v3730_v29 }
 0x522   : >> { %3570 = vmatprep.subr.msk.bf16.mxu0 %vm6908_vm12, %v3729_v28  ;;  %vm8554_vm12 = vnez %v8484_v15 }
 0x524   : >> { %3243 = vmatmul.mubr.bf16.vlgmr.msra.gmra.mrb[0].mxu0 %v3208_v7 }
 0x525   : >> { %3572 = vmatpush1.bf16.msk.msra.mxu0 %vm6919_vm5, %v3729_v28  ;;  %vm8556_vm5 = vnez %v8495_v46 }
 0x526   : >> { %3574 = vmatprep.subr.msk.bf16.mxu0 %vm6935_vm2, %v3729_v28  ;;  %vm8551_vm2 = vnez %v8468_v5 }
 0x529   : >> { %3576 = vmatpush1.bf16.msk.msra.mxu0 %vm6951_vm9, %v3729_v28  ;;  %vm8552_vm9 = vnez %v8473_v41 }
 0x52a   : >> { %3578 = vmatprep.subr.msk.bf16.mxu0 %vm6964_vm10, %v3729_v28  ;;  %vm8553_vm10 = vnez %v8479_v61 }
 0x52d   : >> { %3580 = vmatpush1.bf16.msk.msra.mxu0 %vm6981_vm11, %v3729_v28  ;;  %vm8557_vm11 = vnez %v8514_v0  ;;  %v8562_v0 = vld [vmem:[#allocation3_spill] sm:$0xff] }
 0x52e   : >> { %3582 = vmatprep.subr.msk.bf16.mxu0 %vm6994_vm6, %v3729_v28  ;;  %vm8555_vm6 = vnez %v8490_v53  ;;  %v3564_v38 = vpack.c.bf16 %v8562_v0, %v8562_v0 }
 0x531   : >> { %3584 = vmatpush1.bf16.msk.msra.mxu0 %vm7011_vm1, %v3729_v28  ;;  %vm8558_vm1 = vnez %v8520_v40 }
 0x532   : >> { %3586 = vmatprep.subr.msk.bf16.mxu0 %vm8551_vm2, %v3729_v28 }
 0x535   : >> { %3588 = vmatpush1.bf16.msk.msra.mxu0 %vm8552_vm9, %v3729_v28 }
 0x536   : >> { %3590 = vmatprep.subr.msk.bf16.mxu0 %vm8553_vm10, %v3729_v28 }
 0x539   : >> { %3592 = vmatpush1.bf16.msk.msra.mxu0 %vm8554_vm12, %v3729_v28 }
 0x53a   : >> { %3594 = vmatprep.subr.msk.bf16.mxu0 %vm8555_vm6, %v3729_v28 }
 0x53d   : >> { %3596 = vmatpush1.bf16.msk.msra.mxu0 %vm8556_vm5, %v3729_v28 }
 0x53e   : >> { %3598 = vmatprep.subr.msk.bf16.mxu0 %vm7114_vm4, %v3729_v28  ;;  %vm8560_vm4 = vnez %v8531_v55 }
 0x541   : >> { %3600 = vmatpush1.bf16.msk.msra.mxu0 %vm7131_vm3, %v3729_v28  ;;  %vm8561_vm3 = vnez %v8541_v54 }
 0x542   : >> { %3602 = vmatprep.subr.msk.bf16.mxu0 %vm8557_vm11, %v3729_v28  ;;  %vm3353_vm11 = vcmask 1040384  }
 0x545   : >> { %3321 = vmatpush1.bf16.msra.mxu0 %v3730_v29 }
 0x546   : >> { %3604 = vmatprep.subr.msk.bf16.mxu0 %vm8558_vm1, %v3729_v28 }
 0x549   : >> { %3323 = vmatpush1.bf16.msra.mxu0 %v3730_v29 }
 0x54a   : >> { %3606 = vmatprep.subr.msk.bf16.mxu0 %vm8559_vm7, %v3729_v28 }
 0x54d   : >> { %3325 = vmatpush1.bf16.msra.mxu0 %v3730_v29 }
 0x54e   : >> { %3608 = vmatprep.subr.msk.bf16.mxu0 %vm8560_vm4, %v3729_v28 }
 0x551   : >> { %3327 = vmatpush1.bf16.msra.mxu0 %v3730_v29 }
 0x552   : >> { %3610 = vmatprep.subr.msk.bf16.mxu0 %vm7210_vm15, %v3729_v28 }
 0x555   : >> { %3329 = vmatpush1.bf16.msra.mxu0 %v3730_v29 }
 0x556   : >> { %3612 = vmatprep.subr.msk.bf16.mxu0 %vm8561_vm3, %v3729_v28 }
 0x559   : >> { %3331 = vmatpush1.bf16.msra.mxu0 %v3730_v29 }
 0x55a   : >> { %3614 = vmatprep.subr.msk.bf16.mxu0 %vm7242_vm0, %v3729_v28 }
 0x55d   : >> { %3333 = vmatpush1.bf16.msra.mxu0 %v3730_v29 }
 0x55e   : >> { %3616 = vmatprep.subr.msk.bf16.mxu0 %vm7258_vm8, %v3729_v28 }
 0x561   : >> { %3335 = vmatpush1.bf16.msra.mxu0 %v3730_v29 }
 0x5f7   : >> { %v3244_v2 = vpop.f32.mrb[0].mxu0 }
 0x5f8   : >> { %vm3251_vm15 = vcmp.lt.f32.partialorder %v3244_v2, 0.5  ;;  %v3246_v60 = vpop.f32.mrb[1].mxu0 }
 0x5f9   : >> { %vm3252_vm14 = vcmp.lt.f32.partialorder %v3246_v60, 0.5  ;;  %v3248_v58 = vpop.f32.mrb[2].mxu0  ;;  %vm3566_vm2 = vmpackc.low %vm3251_vm15, %vm3251_vm15 }
 0x5fa   : >> { %v3249_v16 = vpop.f32.mrb[3].mxu0  ;;  %vm3563_vm0 = vmpackc.low %vm3252_vm14, %vm3252_vm14 }
 0x5fb   : >> { %3565 = vmatprep.mubr.msk.bf16.mxu1 %vm3563_vm0, %v3564_v38 }
 0x5fc   : >> { %3568 = vmatmul.mubr.msk.bf16.vlgmr.msra.gmra.mrb[0].mxu1 %vm3566_vm2, %v3567_v30 }
 0x6cf   : >> { %v3291_v62 = vpop.f32.mrb[0].mxu1 }
 0x6d0   : >> { %vm3298_vm8 = vcmp.lt.f32.partialorder %v3291_v62, 0.5  ;;  %v3293_v28 = vpop.f32.mrb[1].mxu1 }
 0x6d1   : >> { %vm3299_vm9 = vcmp.lt.f32.partialorder %v3293_v28, 0.5  ;;  %v3295_v24 = vpop.f32.mrb[2].mxu1  ;;  %vm3620_vm12 = vmpackc.low %vm3298_vm8, %vm3298_vm8 }
 0x6d2   : >> { %vm3617_vm10 = vmpackc.low %vm3299_vm9, %vm3299_vm9  ;;  %v3296_v5 = vpop.f32.mrb[3].mxu1 }
 0x6d3   : >> { %3619 = vmatprep.mubr.msk.bf16.mxu0 %vm3617_vm10, %v3564_v38 }
 0x6d4   : >> { %3622 = vmatmul.mubr.msk.bf16.vlgmr.msra.gmra.mrb[4].mxu0 %vm3620_vm12, %v3567_v30 }
 0x7a7   : >> { %v3338_v41 = vpop.f32.mrb[4].mxu0 }
 0x7a8   : >> { %vm3345_vm6 = vcmp.lt.f32.partialorder %v3338_v41, 0.5  ;;  %v3340_v61 = vpop.f32.mrb[5].mxu0 }
 0x7a9   : >> { %v3347_v15 = vsel %vm3345_vm6, %v8563_v27, 0.0   ;;  %vm3346_vm5 = vcmp.lt.f32.partialorder %v3340_v61, 0.5  ;;  %v3342_v53 = vpop.f32.mrb[6].mxu0 }
 0x7aa   : >> { %vm3349_vm1 = vcmp.ne.f32.partialorder %v3347_v15, %v3712_v25  ;;  %v3348_v46 = vsel %vm3346_vm5, %v8562_v0, 0.0   ;;  %v3343_v37 = vpop.f32.mrb[7].mxu0 }
 0x7ab   : >> { %vm3350_vm7 = vcmp.ne.f32.partialorder %v3348_v46, %v3708_v13  ;;  %v3351_v40 = vsel %vm3349_vm1, 1.0, %v3731_v1  ;;  %v8564_v13 = vmov %v3348_v46 }
 0x7ac   : >> { %v3352_v29 = vsel %vm3350_vm7, 1.0, %v3731_v1  ;;  %v3354_v55 = vsel %vm3353_vm11, %v3351_v40, -inf }
 0x7ad   : >> { %v3355_v3 = vsel %vm3353_vm11, %v3352_v29, -inf }
 0x7ae   : >> { %v3356_v54 = vmax.f32 %v3354_v55, %v3355_v3 }
 0x7b0   : >> { %3357 = vmax.xlane.f32.xlu0 %v3356_v54 }
 0x83d   : >> { %v3358_v4 = vpop.xlane.xlu0 %3357 }
 0x83e   : >> { %v3359_v6 = vrot.slane %v3358_v4, 4 }
 0x840   : >> { %v3360_v7 = vmax.f32 %v3358_v4, %v3359_v6 }
 0x842   : >> { %v3361_v2 = vrot.slane %v3360_v7, 2 }
 0x844   : >> { %v3362_v38 = vmax.f32 %v3360_v7, %v3361_v2 }
 0x846   : >> { %v3363_v60 = vrot.slane %v3362_v38, 1 }
 0x848   : >> { %v3364_v25 = vmax.f32 %v3362_v38, %v3363_v60 }
 0x84a   : >> { %3626 = vpush %v3364_v25  ;;  %v8565_v25 = vmov %v3347_v15 }
 0x87b   : >> { %s3627_s23 = spop %3626 }
 0x87c   : >> { %p3366_p4 = scmp.gt.f32.partialorder %s3627_s23, 0.0 }
 0x87e   : >> { %p3204_p6 = pnand %p3366_p4, %p3202_p5 }
 0x87f   : > { %v3732_v0 = vmov (%p3204_p6), 1966171168   ;;  %v3371_v30 = vcombine.low (%p3204_p6), %v3347_v15, %v3348_v46  ;;  %v8566_v16 = vld [vmem:[#allocation2_spill] sm:$0xff] (%p3204_p6)  ;;  %v8567_v24 = vlaneseq (%p3204_p6) }
 0x880   : > { %3207 = sbr.rel (!%p3204_p6) target bundleno = 1249 (0x4e1), region = 61  ;;  %v3373_v27 = vunpack.c.l.s4 (%p3204_p6), %v3732_v0 }
 0x881   : > { %vm3389_vm4 = vcmp.lt.s32.totalorder (%p3204_p6), %v8567_v24, 256 }
 0x882   : > { %v3374_v58 = vunpack.c.0.s8 (%p3204_p6), %v3373_v27 }
 0x884   : > { %v3377_v62 = vsub.s32 (%p3204_p6), %v3374_v58, %v8566_v16 }
 0x886   : > { %v3378_v28 = vrot.slane (%p3204_p6), %v3371_v30, %v3377_v62 }
 0x888   : > { %v3385_v5 = vrot.slane %v3378_v28, %v3377_v62 }
 0x88a   : > { %3391 = vst.msk [vmem:[%s3762_s15] sm:$0x3] %vm3389_vm4, %v3385_v5 }
 0x88b PF: > { %s11_s6 = sadd.s32 1, %s3704_s6  }
 0x88c   : > { %p8_p7 = scmp.ge.s32.totalorder %s11_s6, 4  }
 0x88e   :  { %10 = sbr.rel (!%p8_p7) target bundleno = 1 (0x1), region = 72 }

</bundles_post_ra>
